<compile_context>
chip_gen: v7x
topology: tpu7x:2x2x1
jax: 0.10.0
libtpu: 0.0.40
codegen_flags: <defaults>
</compile_context>

<pallas_src>
import numpy as np
import jax
import jax.numpy as jnp
from jax import lax
from jax.experimental import pallas as pl
from jax.experimental.pallas import tpu as pltpu

# ---------------- configuration (small shapes consistent with the module) ----
IMG_SIZE    = 16          # cubic 3D volume: 16 x 16 x 16
PATCH_SIZE  = 8           # -> 2 x 2 x 2 = 8 patches
IN_CHANS    = 4
EMBED_DIM   = 32
DEPTH       = 2
NUM_HEADS   = 4
MLP_RATIO   = 4.0
LN_EPS      = 1e-6
NUM_PATCHES = (IMG_SIZE // PATCH_SIZE) ** 3          # 8
HEAD_DIM    = EMBED_DIM // NUM_HEADS                 # 8
HIDDEN_DIM  = int(EMBED_DIM * MLP_RATIO)             # 128
SEQ_LEN     = NUM_PATCHES + 1                        # 9 (patches + cls)
SEQ_PAD     = 16                                     # padded to sublane multiple
KPATCH      = IN_CHANS * PATCH_SIZE ** 3             # 2048
NEG_INF     = -1e30
CLS_ROW     = NUM_PATCHES                            # cls token lives at row 8


# ------------------------------ in-kernel math helpers ------------------------
def _erf_approx(z):
    # Abramowitz & Stegun 7.1.26 (|err| < 1.5e-7).
    a = jnp.abs(z)
    t = 1.0 / (1.0 + 0.3275911 * a)
    poly = ((((1.061405429 * t - 1.453152027) * t + 1.421413741) * t
             - 0.284496736) * t + 0.254829592) * t
    y = 1.0 - poly * jnp.exp(-a * a)
    return jnp.where(z >= 0.0, y, -y)


def _gelu_exact(x):
    # nn.GELU() default (approximate='none'):  0.5 * x * (1 + erf(x / sqrt(2)))
    return 0.5 * x * (1.0 + _erf_approx(x * 0.7071067811865476))


def _layernorm(x, g, b):
    # LayerNorm over last dim, eps=1e-6, biased variance (PyTorch semantics).
    mean = jnp.mean(x, axis=-1, keepdims=True)
    xc = x - mean
    var = jnp.mean(xc * xc, axis=-1, keepdims=True)
    return xc * lax.rsqrt(var + LN_EPS) * g + b


# ------------------------------ the single fused kernel -----------------------
def _fused_vit_kernel(xp_ref, base_ref, mask_ref, patch_w_ref,
                      qkv_w_ref, qkv_b_ref, proj_w_ref, proj_b_ref,
                      ln1_g_ref, ln1_b_ref, ln2_g_ref, ln2_b_ref,
                      fc1_w_ref, fc1_b_ref, fc2_w_ref, fc2_b_ref,
                      norm_g_ref, norm_b_ref, out_ref):
    """One grid step = BT batch elements.

    Token layout per batch element (SEQ_PAD=16 rows):
      rows 0..7  : patch tokens (patch-embed result lands at this 8-aligned slot)
      row  8     : cls token
      rows 9..15 : zero padding (masked as attention keys)

    xp_ref   : (BT, NUM_PATCHES, KPATCH)  bf16 flattened real patches
    base_ref : (BT*SEQ_PAD, E)  f32  pos+patch_bias / cls+pos / zero rows
    mask_ref : (BT*SEQ_PAD, BT*SEQ_PAD) f32 block-diagonal + pad-key bias
    weights  : per-block tensors stacked over DEPTH on the leading axis
    out_ref  : (BT, 1, E)  final-LayerNorm'd cls tokens
    """
    BT = xp_ref.shape[0]
    patch_w = patch_w_ref[...]                             # (KPATCH, E) bf16

    # ---- patch embedding on the 8 real rows per batch element ----
    zero_tail = jnp.zeros((SEQ_PAD - NUM_PATCHES, EMBED_DIM), jnp.float32)
    pieces = []
    for b in range(BT):                                    # static unroll
        emb_b = jnp.dot(xp_ref[b], patch_w,
                        preferred_element_type=jnp.float32)       # (8, E) f32
        pieces.append(emb_b)
        pieces.append(zero_tail)
    tok = jnp.concatenate(pieces, axis=0) + base_ref[...]  # (BT*SEQ_PAD, E)

    mask_bias = mask_ref[...]                              # (BT*S, BT*S)

    for d in range(DEPTH):                                 # static unroll, DEPTH=2
        # ---- attention branch:  x = x + proj(attn(LN1(x))) ----
        h = _layernorm(tok, ln1_g_ref[d], ln1_b_ref[d])
        qkv = jnp.dot(h, qkv_w_ref[d],
                      preferred_element_type=jnp.float32) + qkv_b_ref[d]  # (S,3E)

        pw = proj_w_ref[d]                                 # (E, E) loaded once
        o_acc = None
        for hd in range(NUM_HEADS):                        # static lane sub-ranges
            q = qkv[:, hd * HEAD_DIM:(hd + 1) * HEAD_DIM]  # scale pre-folded into q
            k = qkv[:, EMBED_DIM + hd * HEAD_DIM:EMBED_DIM + (hd + 1) * HEAD_DIM]
            v = qkv[:, 2 * EMBED_DIM + hd * HEAD_DIM:2 * EMBED_DIM + (hd + 1) * HEAD_DIM]
            s = jnp.einsum("qd,kd->qk", q, k,
                           preferred_element_type=jnp.float32) + mask_bias
            m = jnp.max(s, axis=-1, keepdims=True)
            p = jnp.exp(s - m)
            p = p / jnp.sum(p, axis=-1, keepdims=True)     # exact divide (tiny cost)
            hv = jnp.dot(p, v, preferred_element_type=jnp.float32)   # (S, Dh)
            # fold directly into the projection: 8-row sublane slice of proj_w,
            # no cross-lane head concatenation.
            contrib = jnp.dot(hv, pw[hd * HEAD_DIM:(hd + 1) * HEAD_DIM, :],
                              preferred_element_type=jnp.float32)
            o_acc = contrib if o_acc is None else o_acc + contrib
        tok = tok + o_acc + proj_b_ref[d]

        # ---- MLP branch:  x = x + fc2(gelu(fc1(LN2(x)))) ----
        h2 = _layernorm(tok, ln2_g_ref[d], ln2_b_ref[d])
        m1 = _gelu_exact(jnp.dot(h2, fc1_w_ref[d],
                                 preferred_element_type=jnp.float32) + fc1_b_ref[d])
        tok = tok + jnp.dot(m1, fc2_w_ref[d],
                            preferred_element_type=jnp.float32) + fc2_b_ref[d]

    # ---- final norm on the cls rows only (head = nn.Identity()) ----
    cls_rows = [tok[b * SEQ_PAD + CLS_ROW:b * SEQ_PAD + CLS_ROW + 1, :]
                for b in range(BT)]
    cls = cls_rows[0] if BT == 1 else jnp.concatenate(cls_rows, axis=0)  # (BT, E)
    out = _layernorm(cls, norm_g_ref[...], norm_b_ref[...])
    out_ref[...] = out.reshape(BT, 1, EMBED_DIM)


# ------------------------------ wrapper ----------------------------------------
def _full_spec(shape):
    nd = len(shape)
    return pl.BlockSpec(shape, lambda b, _nd=nd: (0,) * _nd)


def _pick_bt(batch):
    # Largest BT (<= 8) dividing the batch while keeping >= 2 grid steps so both
    # v7x TensorCores get work; BT*SEQ_PAD rows fill MXU sublanes as B grows.
    for bt in (8, 4, 2):
        if batch % bt == 0 and batch // bt >= 2:
            return bt
    return 1


@jax.jit
def vit_forward(x, kp):
    """Equivalent of VisionTransformer.forward(x) (is_training=False, masks=None):
       returns x_norm_clstoken of shape (B, embed_dim)."""
    B = x.shape[0]
    BT = _pick_bt(B)
    num_tiles = B // BT
    p = PATCH_SIZE
    Wp = Hp = Dp = IMG_SIZE // p

    # Patch extraction: (B,C,W,H,D) -> (B, N, C*p^3), flatten order (C,pw,ph,pd)
    # matching the Conv3d weight layout.  Tiny at 16^3; kept in JAX.
    xp = x.reshape(B, IN_CHANS, Wp, p, Hp, p, Dp, p)
    xp = xp.transpose(0, 2, 4, 6, 1, 3, 5, 7).reshape(B, NUM_PATCHES, KPATCH)
    xp = xp.astype(jnp.bfloat16)            # bf16 operand, f32 MXU accumulation

    # Base token matrix replicated over the batch tile (tiny: BT*16*32 f32).
    base_bt = jnp.tile(kp["base"], (BT, 1))                 # (BT*SEQ_PAD, E)

    # Precomputed attention bias (compile-time constant): block-diagonal over
    # batch elements, and pad keys (col % 16 >= SEQ_LEN) masked with -1e30.
    S = BT * SEQ_PAD
    ii = np.arange(S)
    same_batch = (ii[:, None] // SEQ_PAD) == (ii[None, :] // SEQ_PAD)
    key_valid = (ii[None, :] % SEQ_PAD) < SEQ_LEN
    mask = jnp.asarray(np.where(same_batch & key_valid, 0.0, NEG_INF)
                       .astype(np.float32))                 # (S, S)

    grid_spec = pltpu.PrefetchScalarGridSpec(
        num_scalar_prefetch=0,
        grid=(num_tiles,),
        in_specs=[
            pl.BlockSpec((BT, NUM_PATCHES, KPATCH), lambda i: (i, 0, 0)),  # xp (bf16)
            _full_spec((BT * SEQ_PAD, EMBED_DIM)),                         # base_bt
            _full_spec((S, S)),                                            # mask
            _full_spec((KPATCH, EMBED_DIM)),                               # patch_w (bf16)
            _full_spec((DEPTH, EMBED_DIM, 3 * EMBED_DIM)),                 # qkv_w
            _full_spec((DEPTH, 1, 3 * EMBED_DIM)),                         # qkv_b
            _full_spec((DEPTH, EMBED_DIM, EMBED_DIM)),                     # proj_w
            _full_spec((DEPTH, 1, EMBED_DIM)),                             # proj_b
            _full_spec((DEPTH, 1, EMBED_DIM)),                             # ln1_g
            _full_spec((DEPTH, 1, EMBED_DIM)),                             # ln1_b
            _full_spec((DEPTH, 1, EMBED_DIM)),                             # ln2_g
            _full_spec((DEPTH, 1, EMBED_DIM)),                             # ln2_b
            _full_spec((DEPTH, EMBED_DIM, HIDDEN_DIM)),                    # fc1_w
            _full_spec((DEPTH, 1, HIDDEN_DIM)),                            # fc1_b
            _full_spec((DEPTH, HIDDEN_DIM, EMBED_DIM)),                    # fc2_w
            _full_spec((DEPTH, 1, EMBED_DIM)),                             # fc2_b
            _full_spec((1, EMBED_DIM)),                                    # norm_g
            _full_spec((1, EMBED_DIM)),                                    # norm_b
        ],
        out_specs=pl.BlockSpec((BT, 1, EMBED_DIM), lambda i: (i, 0, 0)),
    )

    out = pl.pallas_call(
        _fused_vit_kernel,
        out_shape=jax.ShapeDtypeStruct((B, 1, EMBED_DIM), jnp.float32),
        grid_spec=grid_spec,
        compiler_params=pltpu.CompilerParams(
            dimension_semantics=("parallel",)),      # 2 TCs on v7x split the grid
    )(xp, base_bt, mask, kp["patch_w"],
      kp["qkv_w"], kp["qkv_b"], kp["proj_w"], kp["proj_b"],
      kp["ln1_g"], kp["ln1_b"], kp["ln2_g"], kp["ln2_b"],
      kp["fc1_w"], kp["fc1_b"], kp["fc2_w"], kp["fc2_b"],
      kp["norm_g"], kp["norm_b"])

    return out[:, 0, :]                               # normalized cls token (B, E)


# ------------------------------ parameter prep ----------------------------------
def prepare_kernel_params(params):
    """Stack per-block weights over DEPTH, fold the attention scale into the q
    rows of qkv, cast the patch-embed weight to bf16, and prebuild the base
    token matrix (patch rows 0..7 = pos+patch_bias, row 8 = cls+pos, rest 0)."""
    scale = HEAD_DIM ** -0.5
    blocks = params["blocks"]

    def stack(key):
        return jnp.stack([blk[key] for blk in blocks])

    qkv_w = stack("qkv_w")                                        # (D, E, 3E)
    qkv_b = stack("qkv_b")                                        # (D, 3E)
    qkv_w = qkv_w.at[:, :, :EMBED_DIM].multiply(scale)            # fold q*scale
    qkv_b = qkv_b.at[:, :EMBED_DIM].multiply(scale)

    pos = params["pos_embed"][0]                                  # (SEQ_LEN, E): [cls, patches...]
    cls = params["cls_token"][0, 0]                               # (E,)
    base = jnp.zeros((SEQ_PAD, EMBED_DIM), jnp.float32)
    base = base.at[:NUM_PATCHES].set(pos[1:] + params["patch_b"][None, :])
    base = base.at[CLS_ROW].set(cls + pos[0])

    return {
        "base": base,                                             # (SEQ_PAD, E)
        "patch_w": params["patch_w"].astype(jnp.bfloat16),        # (KPATCH, E) bf16
        "qkv_w": qkv_w,
        "qkv_b": qkv_b.reshape(DEPTH, 1, 3 * EMBED_DIM),
        "proj_w": stack("proj_w"),
        "proj_b": stack("proj_b").reshape(DEPTH, 1, EMBED_DIM),
        "ln1_g": stack("ln1_g").reshape(DEPTH, 1, EMBED_DIM),
        "ln1_b": stack("ln1_b").reshape(DEPTH, 1, EMBED_DIM),
        "ln2_g": stack("ln2_g").reshape(DEPTH, 1, EMBED_DIM),
        "ln2_b": stack("ln2_b").reshape(DEPTH, 1, EMBED_DIM),
        "fc1_w": stack("fc1_w"),
        "fc1_b": stack("fc1_b").reshape(DEPTH, 1, HIDDEN_DIM),
        "fc2_w": stack("fc2_w"),
        "fc2_b": stack("fc2_b").reshape(DEPTH, 1, EMBED_DIM),
        "norm_g": params["norm_g"].reshape(1, EMBED_DIM),
        "norm_b": params["norm_b"].reshape(1, EMBED_DIM),
    }


# ------------------------------ deterministic init -------------------------------
def init_params(key):
    p = PATCH_SIZE
    kdim = IN_CHANS * p * p * p
    keys = iter(jax.random.split(key, 8 + 8 * DEPTH))

    def tn(k, shape, std=0.02):
        # trunc_normal_(std=0.02) equivalent: normal clipped to +-2*std
        return jnp.clip(jax.random.normal(k, shape, jnp.float32) * std,
                        -2.0 * std, 2.0 * std)

    params = {
        # Conv3d weight (E, C, p, p, p) flattened+transposed -> (C*p^3, E)
        "patch_w": tn(next(keys), (kdim, EMBED_DIM)),
        "patch_b": jnp.zeros((EMBED_DIM,), jnp.float32),
        "cls_token": jax.random.normal(next(keys), (1, 1, EMBED_DIM), jnp.float32) * 1e-6,
        "pos_embed": tn(next(keys), (1, NUM_PATCHES + 1, EMBED_DIM)),
        "norm_g": jnp.ones((EMBED_DIM,), jnp.float32),
        "norm_b": jnp.zeros((EMBED_DIM,), jnp.float32),
        "blocks": [],
    }
    for _ in range(DEPTH):
        blk = {
            "ln1_g": jnp.ones((EMBED_DIM,), jnp.float32),
            "ln1_b": jnp.zeros((EMBED_DIM,), jnp.float32),
            "qkv_w": tn(next(keys), (EMBED_DIM, 3 * EMBED_DIM)),
            "qkv_b": jnp.zeros((3 * EMBED_DIM,), jnp.float32),
            "proj_w": tn(next(keys), (EMBED_DIM, EMBED_DIM)),
            "proj_b": jnp.zeros((EMBED_DIM,), jnp.float32),
            "ln2_g": jnp.ones((EMBED_DIM,), jnp.float32),
            "ln2_b": jnp.zeros((EMBED_DIM,), jnp.float32),
            "fc1_w": tn(next(keys), (EMBED_DIM, HIDDEN_DIM)),
            "fc1_b": jnp.zeros((HIDDEN_DIM,), jnp.float32),
            "fc2_w": tn(next(keys), (HIDDEN_DIM, EMBED_DIM)),
            "fc2_b": jnp.zeros((EMBED_DIM,), jnp.float32),
        }
        params["blocks"].append(blk)
    return params


# ------------------------------ main ----------------------------------------------
if __name__ == "__main__":
    key = jax.random.PRNGKey(0)
    pkey, xkey = jax.random.split(key)
    params = init_params(pkey)
    kparams = prepare_kernel_params(params)

    B = 2
    x = jax.random.normal(xkey, (B, IN_CHANS, IMG_SIZE, IMG_SIZE, IMG_SIZE), jnp.float32)

    out = vit_forward(x, kparams)
    out = jax.block_until_ready(out)
    assert out.shape == (B, EMBED_DIM), out.shape
    assert bool(jnp.all(jnp.isfinite(out)))
    print("KERNEL_OK")
</pallas_src>

<mosaic_0001>
module attributes {stable_mosaic.version = 11 : i64} {
  func.func @_fused_vit_kernel(%arg0: i32, %arg1: memref<1x8x2048xbf16, #tpu.memory_space<vmem>>, %arg2: memref<16x32xf32, #tpu.memory_space<vmem>>, %arg3: memref<16x16xf32, #tpu.memory_space<vmem>>, %arg4: memref<2048x32xbf16, #tpu.memory_space<vmem>>, %arg5: memref<2x32x96xf32, #tpu.memory_space<vmem>>, %arg6: memref<2x1x96xf32, #tpu.memory_space<vmem>>, %arg7: memref<2x32x32xf32, #tpu.memory_space<vmem>>, %arg8: memref<2x1x32xf32, #tpu.memory_space<vmem>>, %arg9: memref<2x1x32xf32, #tpu.memory_space<vmem>>, %arg10: memref<2x1x32xf32, #tpu.memory_space<vmem>>, %arg11: memref<2x1x32xf32, #tpu.memory_space<vmem>>, %arg12: memref<2x1x32xf32, #tpu.memory_space<vmem>>, %arg13: memref<2x32x128xf32, #tpu.memory_space<vmem>>, %arg14: memref<2x1x128xf32, #tpu.memory_space<vmem>>, %arg15: memref<2x128x32xf32, #tpu.memory_space<vmem>>, %arg16: memref<2x1x32xf32, #tpu.memory_space<vmem>>, %arg17: memref<1x32xf32, #tpu.memory_space<vmem>>, %arg18: memref<1x32xf32, #tpu.memory_space<vmem>>, %arg19: memref<1x1x32xf32, #tpu.memory_space<vmem>>) attributes {dimension_semantics = [#tpu.dimension_semantics<parallel>], iteration_bounds = array<i64: 2>, scalar_prefetch = 0 : i64, scratch_operands = 0 : i64, tpu.core_type = #tpu.core_type<tc>, window_params = [{transform_indices = @transform_0, window_bounds = array<i64: 1, 8, 2048>}, {pipeline_mode = #tpu.pipeline_mode<synchronous>, transform_indices = @transform_1, window_bounds = array<i64: 16, 32>}, {pipeline_mode = #tpu.pipeline_mode<synchronous>, transform_indices = @transform_2, window_bounds = array<i64: 16, 16>}, {pipeline_mode = #tpu.pipeline_mode<synchronous>, transform_indices = @transform_3, window_bounds = array<i64: 2048, 32>}, {pipeline_mode = #tpu.pipeline_mode<synchronous>, transform_indices = @transform_4, window_bounds = array<i64: 2, 32, 96>}, {pipeline_mode = #tpu.pipeline_mode<synchronous>, transform_indices = @transform_5, window_bounds = array<i64: 2, 1, 96>}, {pipeline_mode = #tpu.pipeline_mode<synchronous>, transform_indices = @transform_6, window_bounds = array<i64: 2, 32, 32>}, {pipeline_mode = #tpu.pipeline_mode<synchronous>, transform_indices = @transform_7, window_bounds = array<i64: 2, 1, 32>}, {pipeline_mode = #tpu.pipeline_mode<synchronous>, transform_indices = @transform_8, window_bounds = array<i64: 2, 1, 32>}, {pipeline_mode = #tpu.pipeline_mode<synchronous>, transform_indices = @transform_9, window_bounds = array<i64: 2, 1, 32>}, {pipeline_mode = #tpu.pipeline_mode<synchronous>, transform_indices = @transform_10, window_bounds = array<i64: 2, 1, 32>}, {pipeline_mode = #tpu.pipeline_mode<synchronous>, transform_indices = @transform_11, window_bounds = array<i64: 2, 1, 32>}, {pipeline_mode = #tpu.pipeline_mode<synchronous>, transform_indices = @transform_12, window_bounds = array<i64: 2, 32, 128>}, {pipeline_mode = #tpu.pipeline_mode<synchronous>, transform_indices = @transform_13, window_bounds = array<i64: 2, 1, 128>}, {pipeline_mode = #tpu.pipeline_mode<synchronous>, transform_indices = @transform_14, window_bounds = array<i64: 2, 128, 32>}, {pipeline_mode = #tpu.pipeline_mode<synchronous>, transform_indices = @transform_15, window_bounds = array<i64: 2, 1, 32>}, {pipeline_mode = #tpu.pipeline_mode<synchronous>, transform_indices = @transform_16, window_bounds = array<i64: 1, 32>}, {pipeline_mode = #tpu.pipeline_mode<synchronous>, transform_indices = @transform_17, window_bounds = array<i64: 1, 32>}, {transform_indices = @transform_18, window_bounds = array<i64: 1, 1, 32>}]} {
    %c0 = arith.constant 0 : index
    %c0_0 = arith.constant 0 : index
    %0 = vector.load %arg4[%c0, %c0_0] : memref<2048x32xbf16, #tpu.memory_space<vmem>>, vector<2048x32xbf16>
    %cst = arith.constant 0.000000e+00 : f32
    %1 = vector.broadcast %cst : f32 to vector<8x32xf32>
    %c0_1 = arith.constant 0 : index
    %c0_2 = arith.constant 0 : index
    %c0_3 = arith.constant 0 : index
    %2 = vector.load %arg1[%c0_1, %c0_2, %c0_3] : memref<1x8x2048xbf16, #tpu.memory_space<vmem>>, vector<1x8x2048xbf16>
    %3 = vector.shape_cast %2 : vector<1x8x2048xbf16> to vector<8x2048xbf16>
    %cst_4 = arith.constant dense<0.000000e+00> : vector<8x32xf32>
    %4 = tpu.matmul %3, %0, %cst_4 {dimension_numbers = #tpu.dot_dimension_numbers<[1], [0], [0], [1], [0, 0, 1, 1], [], []>} : vector<8x2048xbf16>, vector<2048x32xbf16>, vector<8x32xf32> -> vector<8x32xf32>
    %5 = tpu.concatenate %4, %1 in 0 : vector<8x32xf32>, vector<8x32xf32> -> vector<16x32xf32>
    %c0_5 = arith.constant 0 : index
    %c0_6 = arith.constant 0 : index
    %6 = vector.load %arg2[%c0_5, %c0_6] : memref<16x32xf32, #tpu.memory_space<vmem>>, vector<16x32xf32>
    %7 = arith.addf %5, %6 : vector<16x32xf32>
    %c0_7 = arith.constant 0 : index
    %c0_8 = arith.constant 0 : index
    %8 = vector.load %arg3[%c0_7, %c0_8] : memref<16x16xf32, #tpu.memory_space<vmem>>, vector<16x16xf32>
    %c0_9 = arith.constant 0 : index
    %c0_10 = arith.constant 0 : index
    %c0_11 = arith.constant 0 : index
    %9 = vector.load %arg9[%c0_9, %c0_10, %c0_11] : memref<2x1x32xf32, #tpu.memory_space<vmem>>, vector<1x1x32xf32>
    %10 = vector.shape_cast %9 : vector<1x1x32xf32> to vector<1x32xf32>
    %c0_12 = arith.constant 0 : index
    %c0_13 = arith.constant 0 : index
    %c0_14 = arith.constant 0 : index
    %11 = vector.load %arg10[%c0_12, %c0_13, %c0_14] : memref<2x1x32xf32, #tpu.memory_space<vmem>>, vector<1x1x32xf32>
    %12 = vector.shape_cast %11 : vector<1x1x32xf32> to vector<1x32xf32>
    %cst_15 = arith.constant dense<0.000000e+00> : vector<16xf32>
    %13 = vector.multi_reduction <add>, %7, %cst_15 [1] : vector<16x32xf32> to vector<16xf32>
    %14 = vector.shape_cast %13 : vector<16xf32> to vector<16x1xf32>
    %cst_16 = arith.constant 3.200000e+01 : f32
    %15 = vector.broadcast %cst_16 : f32 to vector<16x1xf32>
    %16 = arith.divf %14, %15 : vector<16x1xf32>
    %17 = vector.broadcast %16 : vector<16x1xf32> to vector<16x32xf32>
    %18 = arith.subf %7, %17 : vector<16x32xf32>
    %19 = arith.mulf %18, %18 : vector<16x32xf32>
    %cst_17 = arith.constant dense<0.000000e+00> : vector<16xf32>
    %20 = vector.multi_reduction <add>, %19, %cst_17 [1] : vector<16x32xf32> to vector<16xf32>
    %21 = vector.shape_cast %20 : vector<16xf32> to vector<16x1xf32>
    %cst_18 = arith.constant 3.200000e+01 : f32
    %22 = vector.broadcast %cst_18 : f32 to vector<16x1xf32>
    %23 = arith.divf %21, %22 : vector<16x1xf32>
    %cst_19 = arith.constant 9.99999997E-7 : f32
    %24 = vector.broadcast %cst_19 : f32 to vector<16x1xf32>
    %25 = arith.addf %23, %24 : vector<16x1xf32>
    %26 = math.rsqrt %25 : vector<16x1xf32>
    %27 = vector.broadcast %26 : vector<16x1xf32> to vector<16x32xf32>
    %28 = arith.mulf %18, %27 : vector<16x32xf32>
    %29 = vector.broadcast %10 : vector<1x32xf32> to vector<16x32xf32>
    %30 = arith.mulf %28, %29 : vector<16x32xf32>
    %31 = vector.broadcast %12 : vector<1x32xf32> to vector<16x32xf32>
    %32 = arith.addf %30, %31 : vector<16x32xf32>
    %c0_20 = arith.constant 0 : index
    %c0_21 = arith.constant 0 : index
    %c0_22 = arith.constant 0 : index
    %33 = vector.load %arg5[%c0_20, %c0_21, %c0_22] : memref<2x32x96xf32, #tpu.memory_space<vmem>>, vector<1x32x96xf32>
    %34 = vector.shape_cast %33 : vector<1x32x96xf32> to vector<32x96xf32>
    %cst_23 = arith.constant dense<0.000000e+00> : vector<16x96xf32>
    %35 = tpu.matmul %32, %34, %cst_23 {dimension_numbers = #tpu.dot_dimension_numbers<[1], [0], [0], [1], [0, 0, 1, 1], [], []>} : vector<16x32xf32>, vector<32x96xf32>, vector<16x96xf32> -> vector<16x96xf32>
    %c0_24 = arith.constant 0 : index
    %c0_25 = arith.constant 0 : index
    %c0_26 = arith.constant 0 : index
    %36 = vector.load %arg6[%c0_24, %c0_25, %c0_26] : memref<2x1x96xf32, #tpu.memory_space<vmem>>, vector<1x1x96xf32>
    %37 = vector.shape_cast %36 : vector<1x1x96xf32> to vector<1x96xf32>
    %38 = vector.broadcast %37 : vector<1x96xf32> to vector<16x96xf32>
    %39 = arith.addf %35, %38 : vector<16x96xf32>
    %c0_27 = arith.constant 0 : index
    %c0_28 = arith.constant 0 : index
    %c0_29 = arith.constant 0 : index
    %40 = vector.load %arg7[%c0_27, %c0_28, %c0_29] : memref<2x32x32xf32, #tpu.memory_space<vmem>>, vector<1x32x32xf32>
    %41 = vector.shape_cast %40 : vector<1x32x32xf32> to vector<32x32xf32>
    %42 = vector.extract_strided_slice %39 {offsets = [0, 0], sizes = [16, 8], strides = [1, 1]} : vector<16x96xf32> to vector<16x8xf32>
    %43 = vector.extract_strided_slice %39 {offsets = [0, 32], sizes = [16, 8], strides = [1, 1]} : vector<16x96xf32> to vector<16x8xf32>
    %44 = vector.extract_strided_slice %39 {offsets = [0, 64], sizes = [16, 8], strides = [1, 1]} : vector<16x96xf32> to vector<16x8xf32>
    "tpu.trace_start"() <{level = 10 : i32, message = "qd,kd->qk"}> : () -> ()
    %cst_30 = arith.constant dense<0.000000e+00> : vector<16x16xf32>
    %45 = tpu.matmul %42, %43, %cst_30 {dimension_numbers = #tpu.dot_dimension_numbers<[1], [1], [0], [0], [0, 0, 1, 0], [], []>} : vector<16x8xf32>, vector<16x8xf32>, vector<16x16xf32> -> vector<16x16xf32>
    "tpu.trace_stop"() : () -> ()
    %46 = arith.addf %45, %8 : vector<16x16xf32>
    %cst_31 = arith.constant dense<0xFF800000> : vector<16xf32>
    %47 = vector.multi_reduction <maximumf>, %46, %cst_31 [1] : vector<16x16xf32> to vector<16xf32>
    %48 = vector.shape_cast %47 : vector<16xf32> to vector<16x1xf32>
    %49 = vector.broadcast %48 : vector<16x1xf32> to vector<16x16xf32>
    %50 = arith.subf %46, %49 : vector<16x16xf32>
    %51 = math.exp %50 : vector<16x16xf32>
    %cst_32 = arith.constant dense<0.000000e+00> : vector<16xf32>
    %52 = vector.multi_reduction <add>, %51, %cst_32 [1] : vector<16x16xf32> to vector<16xf32>
    %53 = vector.shape_cast %52 : vector<16xf32> to vector<16x1xf32>
    %54 = vector.broadcast %53 : vector<16x1xf32> to vector<16x16xf32>
    %55 = arith.divf %51, %54 : vector<16x16xf32>
    %cst_33 = arith.constant dense<0.000000e+00> : vector<16x8xf32>
    %56 = tpu.matmul %55, %44, %cst_33 {dimension_numbers = #tpu.dot_dimension_numbers<[1], [0], [0], [1], [0, 0, 1, 1], [], []>} : vector<16x16xf32>, vector<16x8xf32>, vector<16x8xf32> -> vector<16x8xf32>
    %57 = vector.extract_strided_slice %41 {offsets = [0, 0], sizes = [8, 32], strides = [1, 1]} : vector<32x32xf32> to vector<8x32xf32>
    %cst_34 = arith.constant dense<0.000000e+00> : vector<16x32xf32>
    %58 = tpu.matmul %56, %57, %cst_34 {dimension_numbers = #tpu.dot_dimension_numbers<[1], [0], [0], [1], [0, 0, 1, 1], [], []>} : vector<16x8xf32>, vector<8x32xf32>, vector<16x32xf32> -> vector<16x32xf32>
    %59 = vector.extract_strided_slice %39 {offsets = [0, 8], sizes = [16, 8], strides = [1, 1]} : vector<16x96xf32> to vector<16x8xf32>
    %60 = vector.extract_strided_slice %39 {offsets = [0, 40], sizes = [16, 8], strides = [1, 1]} : vector<16x96xf32> to vector<16x8xf32>
    %61 = vector.extract_strided_slice %39 {offsets = [0, 72], sizes = [16, 8], strides = [1, 1]} : vector<16x96xf32> to vector<16x8xf32>
    "tpu.trace_start"() <{level = 10 : i32, message = "qd,kd->qk"}> : () -> ()
    %cst_35 = arith.constant dense<0.000000e+00> : vector<16x16xf32>
    %62 = tpu.matmul %59, %60, %cst_35 {dimension_numbers = #tpu.dot_dimension_numbers<[1], [1], [0], [0], [0, 0, 1, 0], [], []>} : vector<16x8xf32>, vector<16x8xf32>, vector<16x16xf32> -> vector<16x16xf32>
    "tpu.trace_stop"() : () -> ()
    %63 = arith.addf %62, %8 : vector<16x16xf32>
    %cst_36 = arith.constant dense<0xFF800000> : vector<16xf32>
    %64 = vector.multi_reduction <maximumf>, %63, %cst_36 [1] : vector<16x16xf32> to vector<16xf32>
    %65 = vector.shape_cast %64 : vector<16xf32> to vector<16x1xf32>
    %66 = vector.broadcast %65 : vector<16x1xf32> to vector<16x16xf32>
    %67 = arith.subf %63, %66 : vector<16x16xf32>
    %68 = math.exp %67 : vector<16x16xf32>
    %cst_37 = arith.constant dense<0.000000e+00> : vector<16xf32>
    %69 = vector.multi_reduction <add>, %68, %cst_37 [1] : vector<16x16xf32> to vector<16xf32>
    %70 = vector.shape_cast %69 : vector<16xf32> to vector<16x1xf32>
    %71 = vector.broadcast %70 : vector<16x1xf32> to vector<16x16xf32>
    %72 = arith.divf %68, %71 : vector<16x16xf32>
    %cst_38 = arith.constant dense<0.000000e+00> : vector<16x8xf32>
    %73 = tpu.matmul %72, %61, %cst_38 {dimension_numbers = #tpu.dot_dimension_numbers<[1], [0], [0], [1], [0, 0, 1, 1], [], []>} : vector<16x16xf32>, vector<16x8xf32>, vector<16x8xf32> -> vector<16x8xf32>
    %74 = vector.extract_strided_slice %41 {offsets = [8, 0], sizes = [8, 32], strides = [1, 1]} : vector<32x32xf32> to vector<8x32xf32>
    %cst_39 = arith.constant dense<0.000000e+00> : vector<16x32xf32>
    %75 = tpu.matmul %73, %74, %cst_39 {dimension_numbers = #tpu.dot_dimension_numbers<[1], [0], [0], [1], [0, 0, 1, 1], [], []>} : vector<16x8xf32>, vector<8x32xf32>, vector<16x32xf32> -> vector<16x32xf32>
    %76 = arith.addf %58, %75 : vector<16x32xf32>
    %77 = vector.extract_strided_slice %39 {offsets = [0, 16], sizes = [16, 8], strides = [1, 1]} : vector<16x96xf32> to vector<16x8xf32>
    %78 = vector.extract_strided_slice %39 {offsets = [0, 48], sizes = [16, 8], strides = [1, 1]} : vector<16x96xf32> to vector<16x8xf32>
    %79 = vector.extract_strided_slice %39 {offsets = [0, 80], sizes = [16, 8], strides = [1, 1]} : vector<16x96xf32> to vector<16x8xf32>
    "tpu.trace_start"() <{level = 10 : i32, message = "qd,kd->qk"}> : () -> ()
    %cst_40 = arith.constant dense<0.000000e+00> : vector<16x16xf32>
    %80 = tpu.matmul %77, %78, %cst_40 {dimension_numbers = #tpu.dot_dimension_numbers<[1], [1], [0], [0], [0, 0, 1, 0], [], []>} : vector<16x8xf32>, vector<16x8xf32>, vector<16x16xf32> -> vector<16x16xf32>
    "tpu.trace_stop"() : () -> ()
    %81 = arith.addf %80, %8 : vector<16x16xf32>
    %cst_41 = arith.constant dense<0xFF800000> : vector<16xf32>
    %82 = vector.multi_reduction <maximumf>, %81, %cst_41 [1] : vector<16x16xf32> to vector<16xf32>
    %83 = vector.shape_cast %82 : vector<16xf32> to vector<16x1xf32>
    %84 = vector.broadcast %83 : vector<16x1xf32> to vector<16x16xf32>
    %85 = arith.subf %81, %84 : vector<16x16xf32>
    %86 = math.exp %85 : vector<16x16xf32>
    %cst_42 = arith.constant dense<0.000000e+00> : vector<16xf32>
    %87 = vector.multi_reduction <add>, %86, %cst_42 [1] : vector<16x16xf32> to vector<16xf32>
    %88 = vector.shape_cast %87 : vector<16xf32> to vector<16x1xf32>
    %89 = vector.broadcast %88 : vector<16x1xf32> to vector<16x16xf32>
    %90 = arith.divf %86, %89 : vector<16x16xf32>
    %cst_43 = arith.constant dense<0.000000e+00> : vector<16x8xf32>
    %91 = tpu.matmul %90, %79, %cst_43 {dimension_numbers = #tpu.dot_dimension_numbers<[1], [0], [0], [1], [0, 0, 1, 1], [], []>} : vector<16x16xf32>, vector<16x8xf32>, vector<16x8xf32> -> vector<16x8xf32>
    %92 = vector.extract_strided_slice %41 {offsets = [16, 0], sizes = [8, 32], strides = [1, 1]} : vector<32x32xf32> to vector<8x32xf32>
    %cst_44 = arith.constant dense<0.000000e+00> : vector<16x32xf32>
    %93 = tpu.matmul %91, %92, %cst_44 {dimension_numbers = #tpu.dot_dimension_numbers<[1], [0], [0], [1], [0, 0, 1, 1], [], []>} : vector<16x8xf32>, vector<8x32xf32>, vector<16x32xf32> -> vector<16x32xf32>
    %94 = arith.addf %76, %93 : vector<16x32xf32>
    %95 = vector.extract_strided_slice %39 {offsets = [0, 24], sizes = [16, 8], strides = [1, 1]} : vector<16x96xf32> to vector<16x8xf32>
    %96 = vector.extract_strided_slice %39 {offsets = [0, 56], sizes = [16, 8], strides = [1, 1]} : vector<16x96xf32> to vector<16x8xf32>
    %97 = vector.extract_strided_slice %39 {offsets = [0, 88], sizes = [16, 8], strides = [1, 1]} : vector<16x96xf32> to vector<16x8xf32>
    "tpu.trace_start"() <{level = 10 : i32, message = "qd,kd->qk"}> : () -> ()
    %cst_45 = arith.constant dense<0.000000e+00> : vector<16x16xf32>
    %98 = tpu.matmul %95, %96, %cst_45 {dimension_numbers = #tpu.dot_dimension_numbers<[1], [1], [0], [0], [0, 0, 1, 0], [], []>} : vector<16x8xf32>, vector<16x8xf32>, vector<16x16xf32> -> vector<16x16xf32>
    "tpu.trace_stop"() : () -> ()
    %99 = arith.addf %98, %8 : vector<16x16xf32>
    %cst_46 = arith.constant dense<0xFF800000> : vector<16xf32>
    %100 = vector.multi_reduction <maximumf>, %99, %cst_46 [1] : vector<16x16xf32> to vector<16xf32>
    %101 = vector.shape_cast %100 : vector<16xf32> to vector<16x1xf32>
    %102 = vector.broadcast %101 : vector<16x1xf32> to vector<16x16xf32>
    %103 = arith.subf %99, %102 : vector<16x16xf32>
    %104 = math.exp %103 : vector<16x16xf32>
    %cst_47 = arith.constant dense<0.000000e+00> : vector<16xf32>
    %105 = vector.multi_reduction <add>, %104, %cst_47 [1] : vector<16x16xf32> to vector<16xf32>
    %106 = vector.shape_cast %105 : vector<16xf32> to vector<16x1xf32>
    %107 = vector.broadcast %106 : vector<16x1xf32> to vector<16x16xf32>
    %108 = arith.divf %104, %107 : vector<16x16xf32>
    %cst_48 = arith.constant dense<0.000000e+00> : vector<16x8xf32>
    %109 = tpu.matmul %108, %97, %cst_48 {dimension_numbers = #tpu.dot_dimension_numbers<[1], [0], [0], [1], [0, 0, 1, 1], [], []>} : vector<16x16xf32>, vector<16x8xf32>, vector<16x8xf32> -> vector<16x8xf32>
    %110 = vector.extract_strided_slice %41 {offsets = [24, 0], sizes = [8, 32], strides = [1, 1]} : vector<32x32xf32> to vector<8x32xf32>
    %cst_49 = arith.constant dense<0.000000e+00> : vector<16x32xf32>
    %111 = tpu.matmul %109, %110, %cst_49 {dimension_numbers = #tpu.dot_dimension_numbers<[1], [0], [0], [1], [0, 0, 1, 1], [], []>} : vector<16x8xf32>, vector<8x32xf32>, vector<16x32xf32> -> vector<16x32xf32>
    %112 = arith.addf %94, %111 : vector<16x32xf32>
    %113 = arith.addf %7, %112 : vector<16x32xf32>
    %c0_50 = arith.constant 0 : index
    %c0_51 = arith.constant 0 : index
    %c0_52 = arith.constant 0 : index
    %114 = vector.load %arg8[%c0_50, %c0_51, %c0_52] : memref<2x1x32xf32, #tpu.memory_space<vmem>>, vector<1x1x32xf32>
    %115 = vector.shape_cast %114 : vector<1x1x32xf32> to vector<1x32xf32>
    %116 = vector.broadcast %115 : vector<1x32xf32> to vector<16x32xf32>
    %117 = arith.addf %113, %116 : vector<16x32xf32>
    %c0_53 = arith.constant 0 : index
    %c0_54 = arith.constant 0 : index
    %c0_55 = arith.constant 0 : index
    %118 = vector.load %arg11[%c0_53, %c0_54, %c0_55] : memref<2x1x32xf32, #tpu.memory_space<vmem>>, vector<1x1x32xf32>
    %119 = vector.shape_cast %118 : vector<1x1x32xf32> to vector<1x32xf32>
    %c0_56 = arith.constant 0 : index
    %c0_57 = arith.constant 0 : index
    %c0_58 = arith.constant 0 : index
    %120 = vector.load %arg12[%c0_56, %c0_57, %c0_58] : memref<2x1x32xf32, #tpu.memory_space<vmem>>, vector<1x1x32xf32>
    %121 = vector.shape_cast %120 : vector<1x1x32xf32> to vector<1x32xf32>
    %cst_59 = arith.constant dense<0.000000e+00> : vector<16xf32>
    %122 = vector.multi_reduction <add>, %117, %cst_59 [1] : vector<16x32xf32> to vector<16xf32>
    %123 = vector.shape_cast %122 : vector<16xf32> to vector<16x1xf32>
    %cst_60 = arith.constant 3.200000e+01 : f32
    %124 = vector.broadcast %cst_60 : f32 to vector<16x1xf32>
    %125 = arith.divf %123, %124 : vector<16x1xf32>
    %126 = vector.broadcast %125 : vector<16x1xf32> to vector<16x32xf32>
    %127 = arith.subf %117, %126 : vector<16x32xf32>
    %128 = arith.mulf %127, %127 : vector<16x32xf32>
    %cst_61 = arith.constant dense<0.000000e+00> : vector<16xf32>
    %129 = vector.multi_reduction <add>, %128, %cst_61 [1] : vector<16x32xf32> to vector<16xf32>
    %130 = vector.shape_cast %129 : vector<16xf32> to vector<16x1xf32>
    %cst_62 = arith.constant 3.200000e+01 : f32
    %131 = vector.broadcast %cst_62 : f32 to vector<16x1xf32>
    %132 = arith.divf %130, %131 : vector<16x1xf32>
    %cst_63 = arith.constant 9.99999997E-7 : f32
    %133 = vector.broadcast %cst_63 : f32 to vector<16x1xf32>
    %134 = arith.addf %132, %133 : vector<16x1xf32>
    %135 = math.rsqrt %134 : vector<16x1xf32>
    %136 = vector.broadcast %135 : vector<16x1xf32> to vector<16x32xf32>
    %137 = arith.mulf %127, %136 : vector<16x32xf32>
    %138 = vector.broadcast %119 : vector<1x32xf32> to vector<16x32xf32>
    %139 = arith.mulf %137, %138 : vector<16x32xf32>
    %140 = vector.broadcast %121 : vector<1x32xf32> to vector<16x32xf32>
    %141 = arith.addf %139, %140 : vector<16x32xf32>
    %c0_64 = arith.constant 0 : index
    %c0_65 = arith.constant 0 : index
    %c0_66 = arith.constant 0 : index
    %142 = vector.load %arg13[%c0_64, %c0_65, %c0_66] : memref<2x32x128xf32, #tpu.memory_space<vmem>>, vector<1x32x128xf32>
    %143 = vector.shape_cast %142 : vector<1x32x128xf32> to vector<32x128xf32>
    %cst_67 = arith.constant dense<0.000000e+00> : vector<16x128xf32>
    %144 = tpu.matmul %141, %143, %cst_67 {dimension_numbers = #tpu.dot_dimension_numbers<[1], [0], [0], [1], [0, 0, 1, 1], [], []>} : vector<16x32xf32>, vector<32x128xf32>, vector<16x128xf32> -> vector<16x128xf32>
    %c0_68 = arith.constant 0 : index
    %c0_69 = arith.constant 0 : index
    %c0_70 = arith.constant 0 : index
    %145 = vector.load %arg14[%c0_68, %c0_69, %c0_70] : memref<2x1x128xf32, #tpu.memory_space<vmem>>, vector<1x1x128xf32>
    %146 = vector.shape_cast %145 : vector<1x1x128xf32> to vector<1x128xf32>
    %147 = vector.broadcast %146 : vector<1x128xf32> to vector<16x128xf32>
    %148 = arith.addf %144, %147 : vector<16x128xf32>
    %cst_71 = arith.constant 5.000000e-01 : f32
    %149 = vector.broadcast %cst_71 : f32 to vector<16x128xf32>
    %150 = arith.mulf %149, %148 : vector<16x128xf32>
    %cst_72 = arith.constant 0.707106769 : f32
    %151 = vector.broadcast %cst_72 : f32 to vector<16x128xf32>
    %152 = arith.mulf %148, %151 : vector<16x128xf32>
    %153 = math.absf %152 : vector<16x128xf32>
    %cst_73 = arith.constant 0.327591091 : f32
    %154 = vector.broadcast %cst_73 : f32 to vector<16x128xf32>
    %155 = arith.mulf %154, %153 : vector<16x128xf32>
    %cst_74 = arith.constant 1.000000e+00 : f32
    %156 = vector.broadcast %cst_74 : f32 to vector<16x128xf32>
    %157 = arith.addf %156, %155 : vector<16x128xf32>
    %cst_75 = arith.constant 1.000000e+00 : f32
    %158 = vector.broadcast %cst_75 : f32 to vector<16x128xf32>
    %159 = arith.divf %158, %157 : vector<16x128xf32>
    %cst_76 = arith.constant 1.06140542 : f32
    %160 = vector.broadcast %cst_76 : f32 to vector<16x128xf32>
    %161 = arith.mulf %160, %159 : vector<16x128xf32>
    %cst_77 = arith.constant 1.45315206 : f32
    %162 = vector.broadcast %cst_77 : f32 to vector<16x128xf32>
    %163 = arith.subf %161, %162 : vector<16x128xf32>
    %164 = arith.mulf %163, %159 : vector<16x128xf32>
    %cst_78 = arith.constant 1.42141378 : f32
    %165 = vector.broadcast %cst_78 : f32 to vector<16x128xf32>
    %166 = arith.addf %164, %165 : vector<16x128xf32>
    %167 = arith.mulf %166, %159 : vector<16x128xf32>
    %cst_79 = arith.constant 0.284496725 : f32
    %168 = vector.broadcast %cst_79 : f32 to vector<16x128xf32>
    %169 = arith.subf %167, %168 : vector<16x128xf32>
    %170 = arith.mulf %169, %159 : vector<16x128xf32>
    %cst_80 = arith.constant 0.254829586 : f32
    %171 = vector.broadcast %cst_80 : f32 to vector<16x128xf32>
    %172 = arith.addf %170, %171 : vector<16x128xf32>
    %173 = arith.mulf %172, %159 : vector<16x128xf32>
    %cst_81 = arith.constant 0.000000e+00 : f32
    %174 = vector.broadcast %cst_81 : f32 to vector<16x128xf32>
    %175 = arith.subf %174, %153 : vector<16x128xf32>
    %176 = arith.mulf %175, %153 : vector<16x128xf32>
    %177 = math.exp %176 : vector<16x128xf32>
    %178 = arith.mulf %173, %177 : vector<16x128xf32>
    %cst_82 = arith.constant 1.000000e+00 : f32
    %179 = vector.broadcast %cst_82 : f32 to vector<16x128xf32>
    %180 = arith.subf %179, %178 : vector<16x128xf32>
    %cst_83 = arith.constant 0.000000e+00 : f32
    %181 = vector.broadcast %cst_83 : f32 to vector<16x128xf32>
    %182 = arith.cmpf oge, %152, %181 : vector<16x128xf32>
    %cst_84 = arith.constant 0.000000e+00 : f32
    %183 = vector.broadcast %cst_84 : f32 to vector<16x128xf32>
    %184 = arith.subf %183, %180 : vector<16x128xf32>
    %185 = arith.select %182, %180, %184 : vector<16x128xi1>, vector<16x128xf32>
    %cst_85 = arith.constant 1.000000e+00 : f32
    %186 = vector.broadcast %cst_85 : f32 to vector<16x128xf32>
    %187 = arith.addf %186, %185 : vector<16x128xf32>
    %188 = arith.mulf %150, %187 : vector<16x128xf32>
    %c0_86 = arith.constant 0 : index
    %c0_87 = arith.constant 0 : index
    %c0_88 = arith.constant 0 : index
    %189 = vector.load %arg15[%c0_86, %c0_87, %c0_88] : memref<2x128x32xf32, #tpu.memory_space<vmem>>, vector<1x128x32xf32>
    %190 = vector.shape_cast %189 : vector<1x128x32xf32> to vector<128x32xf32>
    %cst_89 = arith.constant dense<0.000000e+00> : vector<16x32xf32>
    %191 = tpu.matmul %188, %190, %cst_89 {dimension_numbers = #tpu.dot_dimension_numbers<[1], [0], [0], [1], [0, 0, 1, 1], [], []>} : vector<16x128xf32>, vector<128x32xf32>, vector<16x32xf32> -> vector<16x32xf32>
    %192 = arith.addf %117, %191 : vector<16x32xf32>
    %c0_90 = arith.constant 0 : index
    %c0_91 = arith.constant 0 : index
    %c0_92 = arith.constant 0 : index
    %193 = vector.load %arg16[%c0_90, %c0_91, %c0_92] : memref<2x1x32xf32, #tpu.memory_space<vmem>>, vector<1x1x32xf32>
    %194 = vector.shape_cast %193 : vector<1x1x32xf32> to vector<1x32xf32>
    %195 = vector.broadcast %194 : vector<1x32xf32> to vector<16x32xf32>
    %196 = arith.addf %192, %195 : vector<16x32xf32>
    %c1 = arith.constant 1 : index
    %c0_93 = arith.constant 0 : index
    %c0_94 = arith.constant 0 : index
    %197 = vector.load %arg9[%c1, %c0_93, %c0_94] : memref<2x1x32xf32, #tpu.memory_space<vmem>>, vector<1x1x32xf32>
    %198 = vector.shape_cast %197 : vector<1x1x32xf32> to vector<1x32xf32>
    %c1_95 = arith.constant 1 : index
    %c0_96 = arith.constant 0 : index
    %c0_97 = arith.constant 0 : index
    %199 = vector.load %arg10[%c1_95, %c0_96, %c0_97] : memref<2x1x32xf32, #tpu.memory_space<vmem>>, vector<1x1x32xf32>
    %200 = vector.shape_cast %199 : vector<1x1x32xf32> to vector<1x32xf32>
    %cst_98 = arith.constant dense<0.000000e+00> : vector<16xf32>
    %201 = vector.multi_reduction <add>, %196, %cst_98 [1] : vector<16x32xf32> to vector<16xf32>
    %202 = vector.shape_cast %201 : vector<16xf32> to vector<16x1xf32>
    %cst_99 = arith.constant 3.200000e+01 : f32
    %203 = vector.broadcast %cst_99 : f32 to vector<16x1xf32>
    %204 = arith.divf %202, %203 : vector<16x1xf32>
    %205 = vector.broadcast %204 : vector<16x1xf32> to vector<16x32xf32>
    %206 = arith.subf %196, %205 : vector<16x32xf32>
    %207 = arith.mulf %206, %206 : vector<16x32xf32>
    %cst_100 = arith.constant dense<0.000000e+00> : vector<16xf32>
    %208 = vector.multi_reduction <add>, %207, %cst_100 [1] : vector<16x32xf32> to vector<16xf32>
    %209 = vector.shape_cast %208 : vector<16xf32> to vector<16x1xf32>
    %cst_101 = arith.constant 3.200000e+01 : f32
    %210 = vector.broadcast %cst_101 : f32 to vector<16x1xf32>
    %211 = arith.divf %209, %210 : vector<16x1xf32>
    %cst_102 = arith.constant 9.99999997E-7 : f32
    %212 = vector.broadcast %cst_102 : f32 to vector<16x1xf32>
    %213 = arith.addf %211, %212 : vector<16x1xf32>
    %214 = math.rsqrt %213 : vector<16x1xf32>
    %215 = vector.broadcast %214 : vector<16x1xf32> to vector<16x32xf32>
    %216 = arith.mulf %206, %215 : vector<16x32xf32>
    %217 = vector.broadcast %198 : vector<1x32xf32> to vector<16x32xf32>
    %218 = arith.mulf %216, %217 : vector<16x32xf32>
    %219 = vector.broadcast %200 : vector<1x32xf32> to vector<16x32xf32>
    %220 = arith.addf %218, %219 : vector<16x32xf32>
    %c1_103 = arith.constant 1 : index
    %c0_104 = arith.constant 0 : index
    %c0_105 = arith.constant 0 : index
    %221 = vector.load %arg5[%c1_103, %c0_104, %c0_105] : memref<2x32x96xf32, #tpu.memory_space<vmem>>, vector<1x32x96xf32>
    %222 = vector.shape_cast %221 : vector<1x32x96xf32> to vector<32x96xf32>
    %cst_106 = arith.constant dense<0.000000e+00> : vector<16x96xf32>
    %223 = tpu.matmul %220, %222, %cst_106 {dimension_numbers = #tpu.dot_dimension_numbers<[1], [0], [0], [1], [0, 0, 1, 1], [], []>} : vector<16x32xf32>, vector<32x96xf32>, vector<16x96xf32> -> vector<16x96xf32>
    %c1_107 = arith.constant 1 : index
    %c0_108 = arith.constant 0 : index
    %c0_109 = arith.constant 0 : index
    %224 = vector.load %arg6[%c1_107, %c0_108, %c0_109] : memref<2x1x96xf32, #tpu.memory_space<vmem>>, vector<1x1x96xf32>
    %225 = vector.shape_cast %224 : vector<1x1x96xf32> to vector<1x96xf32>
    %226 = vector.broadcast %225 : vector<1x96xf32> to vector<16x96xf32>
    %227 = arith.addf %223, %226 : vector<16x96xf32>
    %c1_110 = arith.constant 1 : index
    %c0_111 = arith.constant 0 : index
    %c0_112 = arith.constant 0 : index
    %228 = vector.load %arg7[%c1_110, %c0_111, %c0_112] : memref<2x32x32xf32, #tpu.memory_space<vmem>>, vector<1x32x32xf32>
    %229 = vector.shape_cast %228 : vector<1x32x32xf32> to vector<32x32xf32>
    %230 = vector.extract_strided_slice %227 {offsets = [0, 0], sizes = [16, 8], strides = [1, 1]} : vector<16x96xf32> to vector<16x8xf32>
    %231 = vector.extract_strided_slice %227 {offsets = [0, 32], sizes = [16, 8], strides = [1, 1]} : vector<16x96xf32> to vector<16x8xf32>
    %232 = vector.extract_strided_slice %227 {offsets = [0, 64], sizes = [16, 8], strides = [1, 1]} : vector<16x96xf32> to vector<16x8xf32>
    "tpu.trace_start"() <{level = 10 : i32, message = "qd,kd->qk"}> : () -> ()
    %cst_113 = arith.constant dense<0.000000e+00> : vector<16x16xf32>
    %233 = tpu.matmul %230, %231, %cst_113 {dimension_numbers = #tpu.dot_dimension_numbers<[1], [1], [0], [0], [0, 0, 1, 0], [], []>} : vector<16x8xf32>, vector<16x8xf32>, vector<16x16xf32> -> vector<16x16xf32>
    "tpu.trace_stop"() : () -> ()
    %234 = arith.addf %233, %8 : vector<16x16xf32>
    %cst_114 = arith.constant dense<0xFF800000> : vector<16xf32>
    %235 = vector.multi_reduction <maximumf>, %234, %cst_114 [1] : vector<16x16xf32> to vector<16xf32>
    %236 = vector.shape_cast %235 : vector<16xf32> to vector<16x1xf32>
    %237 = vector.broadcast %236 : vector<16x1xf32> to vector<16x16xf32>
    %238 = arith.subf %234, %237 : vector<16x16xf32>
    %239 = math.exp %238 : vector<16x16xf32>
    %cst_115 = arith.constant dense<0.000000e+00> : vector<16xf32>
    %240 = vector.multi_reduction <add>, %239, %cst_115 [1] : vector<16x16xf32> to vector<16xf32>
    %241 = vector.shape_cast %240 : vector<16xf32> to vector<16x1xf32>
    %242 = vector.broadcast %241 : vector<16x1xf32> to vector<16x16xf32>
    %243 = arith.divf %239, %242 : vector<16x16xf32>
    %cst_116 = arith.constant dense<0.000000e+00> : vector<16x8xf32>
    %244 = tpu.matmul %243, %232, %cst_116 {dimension_numbers = #tpu.dot_dimension_numbers<[1], [0], [0], [1], [0, 0, 1, 1], [], []>} : vector<16x16xf32>, vector<16x8xf32>, vector<16x8xf32> -> vector<16x8xf32>
    %245 = vector.extract_strided_slice %229 {offsets = [0, 0], sizes = [8, 32], strides = [1, 1]} : vector<32x32xf32> to vector<8x32xf32>
    %cst_117 = arith.constant dense<0.000000e+00> : vector<16x32xf32>
    %246 = tpu.matmul %244, %245, %cst_117 {dimension_numbers = #tpu.dot_dimension_numbers<[1], [0], [0], [1], [0, 0, 1, 1], [], []>} : vector<16x8xf32>, vector<8x32xf32>, vector<16x32xf32> -> vector<16x32xf32>
    %247 = vector.extract_strided_slice %227 {offsets = [0, 8], sizes = [16, 8], strides = [1, 1]} : vector<16x96xf32> to vector<16x8xf32>
    %248 = vector.extract_strided_slice %227 {offsets = [0, 40], sizes = [16, 8], strides = [1, 1]} : vector<16x96xf32> to vector<16x8xf32>
    %249 = vector.extract_strided_slice %227 {offsets = [0, 72], sizes = [16, 8], strides = [1, 1]} : vector<16x96xf32> to vector<16x8xf32>
    "tpu.trace_start"() <{level = 10 : i32, message = "qd,kd->qk"}> : () -> ()
    %cst_118 = arith.constant dense<0.000000e+00> : vector<16x16xf32>
    %250 = tpu.matmul %247, %248, %cst_118 {dimension_numbers = #tpu.dot_dimension_numbers<[1], [1], [0], [0], [0, 0, 1, 0], [], []>} : vector<16x8xf32>, vector<16x8xf32>, vector<16x16xf32> -> vector<16x16xf32>
    "tpu.trace_stop"() : () -> ()
    %251 = arith.addf %250, %8 : vector<16x16xf32>
    %cst_119 = arith.constant dense<0xFF800000> : vector<16xf32>
    %252 = vector.multi_reduction <maximumf>, %251, %cst_119 [1] : vector<16x16xf32> to vector<16xf32>
    %253 = vector.shape_cast %252 : vector<16xf32> to vector<16x1xf32>
    %254 = vector.broadcast %253 : vector<16x1xf32> to vector<16x16xf32>
    %255 = arith.subf %251, %254 : vector<16x16xf32>
    %256 = math.exp %255 : vector<16x16xf32>
    %cst_120 = arith.constant dense<0.000000e+00> : vector<16xf32>
    %257 = vector.multi_reduction <add>, %256, %cst_120 [1] : vector<16x16xf32> to vector<16xf32>
    %258 = vector.shape_cast %257 : vector<16xf32> to vector<16x1xf32>
    %259 = vector.broadcast %258 : vector<16x1xf32> to vector<16x16xf32>
    %260 = arith.divf %256, %259 : vector<16x16xf32>
    %cst_121 = arith.constant dense<0.000000e+00> : vector<16x8xf32>
    %261 = tpu.matmul %260, %249, %cst_121 {dimension_numbers = #tpu.dot_dimension_numbers<[1], [0], [0], [1], [0, 0, 1, 1], [], []>} : vector<16x16xf32>, vector<16x8xf32>, vector<16x8xf32> -> vector<16x8xf32>
    %262 = vector.extract_strided_slice %229 {offsets = [8, 0], sizes = [8, 32], strides = [1, 1]} : vector<32x32xf32> to vector<8x32xf32>
    %cst_122 = arith.constant dense<0.000000e+00> : vector<16x32xf32>
    %263 = tpu.matmul %261, %262, %cst_122 {dimension_numbers = #tpu.dot_dimension_numbers<[1], [0], [0], [1], [0, 0, 1, 1], [], []>} : vector<16x8xf32>, vector<8x32xf32>, vector<16x32xf32> -> vector<16x32xf32>
    %264 = arith.addf %246, %263 : vector<16x32xf32>
    %265 = vector.extract_strided_slice %227 {offsets = [0, 16], sizes = [16, 8], strides = [1, 1]} : vector<16x96xf32> to vector<16x8xf32>
    %266 = vector.extract_strided_slice %227 {offsets = [0, 48], sizes = [16, 8], strides = [1, 1]} : vector<16x96xf32> to vector<16x8xf32>
    %267 = vector.extract_strided_slice %227 {offsets = [0, 80], sizes = [16, 8], strides = [1, 1]} : vector<16x96xf32> to vector<16x8xf32>
    "tpu.trace_start"() <{level = 10 : i32, message = "qd,kd->qk"}> : () -> ()
    %cst_123 = arith.constant dense<0.000000e+00> : vector<16x16xf32>
    %268 = tpu.matmul %265, %266, %cst_123 {dimension_numbers = #tpu.dot_dimension_numbers<[1], [1], [0], [0], [0, 0, 1, 0], [], []>} : vector<16x8xf32>, vector<16x8xf32>, vector<16x16xf32> -> vector<16x16xf32>
    "tpu.trace_stop"() : () -> ()
    %269 = arith.addf %268, %8 : vector<16x16xf32>
    %cst_124 = arith.constant dense<0xFF800000> : vector<16xf32>
    %270 = vector.multi_reduction <maximumf>, %269, %cst_124 [1] : vector<16x16xf32> to vector<16xf32>
    %271 = vector.shape_cast %270 : vector<16xf32> to vector<16x1xf32>
    %272 = vector.broadcast %271 : vector<16x1xf32> to vector<16x16xf32>
    %273 = arith.subf %269, %272 : vector<16x16xf32>
    %274 = math.exp %273 : vector<16x16xf32>
    %cst_125 = arith.constant dense<0.000000e+00> : vector<16xf32>
    %275 = vector.multi_reduction <add>, %274, %cst_125 [1] : vector<16x16xf32> to vector<16xf32>
    %276 = vector.shape_cast %275 : vector<16xf32> to vector<16x1xf32>
    %277 = vector.broadcast %276 : vector<16x1xf32> to vector<16x16xf32>
    %278 = arith.divf %274, %277 : vector<16x16xf32>
    %cst_126 = arith.constant dense<0.000000e+00> : vector<16x8xf32>
    %279 = tpu.matmul %278, %267, %cst_126 {dimension_numbers = #tpu.dot_dimension_numbers<[1], [0], [0], [1], [0, 0, 1, 1], [], []>} : vector<16x16xf32>, vector<16x8xf32>, vector<16x8xf32> -> vector<16x8xf32>
    %280 = vector.extract_strided_slice %229 {offsets = [16, 0], sizes = [8, 32], strides = [1, 1]} : vector<32x32xf32> to vector<8x32xf32>
    %cst_127 = arith.constant dense<0.000000e+00> : vector<16x32xf32>
    %281 = tpu.matmul %279, %280, %cst_127 {dimension_numbers = #tpu.dot_dimension_numbers<[1], [0], [0], [1], [0, 0, 1, 1], [], []>} : vector<16x8xf32>, vector<8x32xf32>, vector<16x32xf32> -> vector<16x32xf32>
    %282 = arith.addf %264, %281 : vector<16x32xf32>
    %283 = vector.extract_strided_slice %227 {offsets = [0, 24], sizes = [16, 8], strides = [1, 1]} : vector<16x96xf32> to vector<16x8xf32>
    %284 = vector.extract_strided_slice %227 {offsets = [0, 56], sizes = [16, 8], strides = [1, 1]} : vector<16x96xf32> to vector<16x8xf32>
    %285 = vector.extract_strided_slice %227 {offsets = [0, 88], sizes = [16, 8], strides = [1, 1]} : vector<16x96xf32> to vector<16x8xf32>
    "tpu.trace_start"() <{level = 10 : i32, message = "qd,kd->qk"}> : () -> ()
    %cst_128 = arith.constant dense<0.000000e+00> : vector<16x16xf32>
    %286 = tpu.matmul %283, %284, %cst_128 {dimension_numbers = #tpu.dot_dimension_numbers<[1], [1], [0], [0], [0, 0, 1, 0], [], []>} : vector<16x8xf32>, vector<16x8xf32>, vector<16x16xf32> -> vector<16x16xf32>
    "tpu.trace_stop"() : () -> ()
    %287 = arith.addf %286, %8 : vector<16x16xf32>
    %cst_129 = arith.constant dense<0xFF800000> : vector<16xf32>
    %288 = vector.multi_reduction <maximumf>, %287, %cst_129 [1] : vector<16x16xf32> to vector<16xf32>
    %289 = vector.shape_cast %288 : vector<16xf32> to vector<16x1xf32>
    %290 = vector.broadcast %289 : vector<16x1xf32> to vector<16x16xf32>
    %291 = arith.subf %287, %290 : vector<16x16xf32>
    %292 = math.exp %291 : vector<16x16xf32>
    %cst_130 = arith.constant dense<0.000000e+00> : vector<16xf32>
    %293 = vector.multi_reduction <add>, %292, %cst_130 [1] : vector<16x16xf32> to vector<16xf32>
    %294 = vector.shape_cast %293 : vector<16xf32> to vector<16x1xf32>
    %295 = vector.broadcast %294 : vector<16x1xf32> to vector<16x16xf32>
    %296 = arith.divf %292, %295 : vector<16x16xf32>
    %cst_131 = arith.constant dense<0.000000e+00> : vector<16x8xf32>
    %297 = tpu.matmul %296, %285, %cst_131 {dimension_numbers = #tpu.dot_dimension_numbers<[1], [0], [0], [1], [0, 0, 1, 1], [], []>} : vector<16x16xf32>, vector<16x8xf32>, vector<16x8xf32> -> vector<16x8xf32>
    %298 = vector.extract_strided_slice %229 {offsets = [24, 0], sizes = [8, 32], strides = [1, 1]} : vector<32x32xf32> to vector<8x32xf32>
    %cst_132 = arith.constant dense<0.000000e+00> : vector<16x32xf32>
    %299 = tpu.matmul %297, %298, %cst_132 {dimension_numbers = #tpu.dot_dimension_numbers<[1], [0], [0], [1], [0, 0, 1, 1], [], []>} : vector<16x8xf32>, vector<8x32xf32>, vector<16x32xf32> -> vector<16x32xf32>
    %300 = arith.addf %282, %299 : vector<16x32xf32>
    %301 = arith.addf %196, %300 : vector<16x32xf32>
    %c1_133 = arith.constant 1 : index
    %c0_134 = arith.constant 0 : index
    %c0_135 = arith.constant 0 : index
    %302 = vector.load %arg8[%c1_133, %c0_134, %c0_135] : memref<2x1x32xf32, #tpu.memory_space<vmem>>, vector<1x1x32xf32>
    %303 = vector.shape_cast %302 : vector<1x1x32xf32> to vector<1x32xf32>
    %304 = vector.broadcast %303 : vector<1x32xf32> to vector<16x32xf32>
    %305 = arith.addf %301, %304 : vector<16x32xf32>
    %c1_136 = arith.constant 1 : index
    %c0_137 = arith.constant 0 : index
    %c0_138 = arith.constant 0 : index
    %306 = vector.load %arg11[%c1_136, %c0_137, %c0_138] : memref<2x1x32xf32, #tpu.memory_space<vmem>>, vector<1x1x32xf32>
    %307 = vector.shape_cast %306 : vector<1x1x32xf32> to vector<1x32xf32>
    %c1_139 = arith.constant 1 : index
    %c0_140 = arith.constant 0 : index
    %c0_141 = arith.constant 0 : index
    %308 = vector.load %arg12[%c1_139, %c0_140, %c0_141] : memref<2x1x32xf32, #tpu.memory_space<vmem>>, vector<1x1x32xf32>
    %309 = vector.shape_cast %308 : vector<1x1x32xf32> to vector<1x32xf32>
    %cst_142 = arith.constant dense<0.000000e+00> : vector<16xf32>
    %310 = vector.multi_reduction <add>, %305, %cst_142 [1] : vector<16x32xf32> to vector<16xf32>
    %311 = vector.shape_cast %310 : vector<16xf32> to vector<16x1xf32>
    %cst_143 = arith.constant 3.200000e+01 : f32
    %312 = vector.broadcast %cst_143 : f32 to vector<16x1xf32>
    %313 = arith.divf %311, %312 : vector<16x1xf32>
    %314 = vector.broadcast %313 : vector<16x1xf32> to vector<16x32xf32>
    %315 = arith.subf %305, %314 : vector<16x32xf32>
    %316 = arith.mulf %315, %315 : vector<16x32xf32>
    %cst_144 = arith.constant dense<0.000000e+00> : vector<16xf32>
    %317 = vector.multi_reduction <add>, %316, %cst_144 [1] : vector<16x32xf32> to vector<16xf32>
    %318 = vector.shape_cast %317 : vector<16xf32> to vector<16x1xf32>
    %cst_145 = arith.constant 3.200000e+01 : f32
    %319 = vector.broadcast %cst_145 : f32 to vector<16x1xf32>
    %320 = arith.divf %318, %319 : vector<16x1xf32>
    %cst_146 = arith.constant 9.99999997E-7 : f32
    %321 = vector.broadcast %cst_146 : f32 to vector<16x1xf32>
    %322 = arith.addf %320, %321 : vector<16x1xf32>
    %323 = math.rsqrt %322 : vector<16x1xf32>
    %324 = vector.broadcast %323 : vector<16x1xf32> to vector<16x32xf32>
    %325 = arith.mulf %315, %324 : vector<16x32xf32>
    %326 = vector.broadcast %307 : vector<1x32xf32> to vector<16x32xf32>
    %327 = arith.mulf %325, %326 : vector<16x32xf32>
    %328 = vector.broadcast %309 : vector<1x32xf32> to vector<16x32xf32>
    %329 = arith.addf %327, %328 : vector<16x32xf32>
    %c1_147 = arith.constant 1 : index
    %c0_148 = arith.constant 0 : index
    %c0_149 = arith.constant 0 : index
    %330 = vector.load %arg13[%c1_147, %c0_148, %c0_149] : memref<2x32x128xf32, #tpu.memory_space<vmem>>, vector<1x32x128xf32>
    %331 = vector.shape_cast %330 : vector<1x32x128xf32> to vector<32x128xf32>
    %cst_150 = arith.constant dense<0.000000e+00> : vector<16x128xf32>
    %332 = tpu.matmul %329, %331, %cst_150 {dimension_numbers = #tpu.dot_dimension_numbers<[1], [0], [0], [1], [0, 0, 1, 1], [], []>} : vector<16x32xf32>, vector<32x128xf32>, vector<16x128xf32> -> vector<16x128xf32>
    %c1_151 = arith.constant 1 : index
    %c0_152 = arith.constant 0 : index
    %c0_153 = arith.constant 0 : index
    %333 = vector.load %arg14[%c1_151, %c0_152, %c0_153] : memref<2x1x128xf32, #tpu.memory_space<vmem>>, vector<1x1x128xf32>
    %334 = vector.shape_cast %333 : vector<1x1x128xf32> to vector<1x128xf32>
    %335 = vector.broadcast %334 : vector<1x128xf32> to vector<16x128xf32>
    %336 = arith.addf %332, %335 : vector<16x128xf32>
    %cst_154 = arith.constant 5.000000e-01 : f32
    %337 = vector.broadcast %cst_154 : f32 to vector<16x128xf32>
    %338 = arith.mulf %337, %336 : vector<16x128xf32>
    %cst_155 = arith.constant 0.707106769 : f32
    %339 = vector.broadcast %cst_155 : f32 to vector<16x128xf32>
    %340 = arith.mulf %336, %339 : vector<16x128xf32>
    %341 = math.absf %340 : vector<16x128xf32>
    %cst_156 = arith.constant 0.327591091 : f32
    %342 = vector.broadcast %cst_156 : f32 to vector<16x128xf32>
    %343 = arith.mulf %342, %341 : vector<16x128xf32>
    %cst_157 = arith.constant 1.000000e+00 : f32
    %344 = vector.broadcast %cst_157 : f32 to vector<16x128xf32>
    %345 = arith.addf %344, %343 : vector<16x128xf32>
    %cst_158 = arith.constant 1.000000e+00 : f32
    %346 = vector.broadcast %cst_158 : f32 to vector<16x128xf32>
    %347 = arith.divf %346, %345 : vector<16x128xf32>
    %cst_159 = arith.constant 1.06140542 : f32
    %348 = vector.broadcast %cst_159 : f32 to vector<16x128xf32>
    %349 = arith.mulf %348, %347 : vector<16x128xf32>
    %cst_160 = arith.constant 1.45315206 : f32
    %350 = vector.broadcast %cst_160 : f32 to vector<16x128xf32>
    %351 = arith.subf %349, %350 : vector<16x128xf32>
    %352 = arith.mulf %351, %347 : vector<16x128xf32>
    %cst_161 = arith.constant 1.42141378 : f32
    %353 = vector.broadcast %cst_161 : f32 to vector<16x128xf32>
    %354 = arith.addf %352, %353 : vector<16x128xf32>
    %355 = arith.mulf %354, %347 : vector<16x128xf32>
    %cst_162 = arith.constant 0.284496725 : f32
    %356 = vector.broadcast %cst_162 : f32 to vector<16x128xf32>
    %357 = arith.subf %355, %356 : vector<16x128xf32>
    %358 = arith.mulf %357, %347 : vector<16x128xf32>
    %cst_163 = arith.constant 0.254829586 : f32
    %359 = vector.broadcast %cst_163 : f32 to vector<16x128xf32>
    %360 = arith.addf %358, %359 : vector<16x128xf32>
    %361 = arith.mulf %360, %347 : vector<16x128xf32>
    %cst_164 = arith.constant 0.000000e+00 : f32
    %362 = vector.broadcast %cst_164 : f32 to vector<16x128xf32>
    %363 = arith.subf %362, %341 : vector<16x128xf32>
    %364 = arith.mulf %363, %341 : vector<16x128xf32>
    %365 = math.exp %364 : vector<16x128xf32>
    %366 = arith.mulf %361, %365 : vector<16x128xf32>
    %cst_165 = arith.constant 1.000000e+00 : f32
    %367 = vector.broadcast %cst_165 : f32 to vector<16x128xf32>
    %368 = arith.subf %367, %366 : vector<16x128xf32>
    %cst_166 = arith.constant 0.000000e+00 : f32
    %369 = vector.broadcast %cst_166 : f32 to vector<16x128xf32>
    %370 = arith.cmpf oge, %340, %369 : vector<16x128xf32>
    %cst_167 = arith.constant 0.000000e+00 : f32
    %371 = vector.broadcast %cst_167 : f32 to vector<16x128xf32>
    %372 = arith.subf %371, %368 : vector<16x128xf32>
    %373 = arith.select %370, %368, %372 : vector<16x128xi1>, vector<16x128xf32>
    %cst_168 = arith.constant 1.000000e+00 : f32
    %374 = vector.broadcast %cst_168 : f32 to vector<16x128xf32>
    %375 = arith.addf %374, %373 : vector<16x128xf32>
    %376 = arith.mulf %338, %375 : vector<16x128xf32>
    %c1_169 = arith.constant 1 : index
    %c0_170 = arith.constant 0 : index
    %c0_171 = arith.constant 0 : index
    %377 = vector.load %arg15[%c1_169, %c0_170, %c0_171] : memref<2x128x32xf32, #tpu.memory_space<vmem>>, vector<1x128x32xf32>
    %378 = vector.shape_cast %377 : vector<1x128x32xf32> to vector<128x32xf32>
    %cst_172 = arith.constant dense<0.000000e+00> : vector<16x32xf32>
    %379 = tpu.matmul %376, %378, %cst_172 {dimension_numbers = #tpu.dot_dimension_numbers<[1], [0], [0], [1], [0, 0, 1, 1], [], []>} : vector<16x128xf32>, vector<128x32xf32>, vector<16x32xf32> -> vector<16x32xf32>
    %380 = arith.addf %305, %379 : vector<16x32xf32>
    %c1_173 = arith.constant 1 : index
    %c0_174 = arith.constant 0 : index
    %c0_175 = arith.constant 0 : index
    %381 = vector.load %arg16[%c1_173, %c0_174, %c0_175] : memref<2x1x32xf32, #tpu.memory_space<vmem>>, vector<1x1x32xf32>
    %382 = vector.shape_cast %381 : vector<1x1x32xf32> to vector<1x32xf32>
    %383 = vector.broadcast %382 : vector<1x32xf32> to vector<16x32xf32>
    %384 = arith.addf %380, %383 : vector<16x32xf32>
    %385 = vector.extract_strided_slice %384 {offsets = [8, 0], sizes = [1, 32], strides = [1, 1]} : vector<16x32xf32> to vector<1x32xf32>
    %c0_176 = arith.constant 0 : index
    %c0_177 = arith.constant 0 : index
    %386 = vector.load %arg17[%c0_176, %c0_177] : memref<1x32xf32, #tpu.memory_space<vmem>>, vector<1x32xf32>
    %c0_178 = arith.constant 0 : index
    %c0_179 = arith.constant 0 : index
    %387 = vector.load %arg18[%c0_178, %c0_179] : memref<1x32xf32, #tpu.memory_space<vmem>>, vector<1x32xf32>
    %cst_180 = arith.constant dense<0.000000e+00> : vector<1xf32>
    %388 = vector.multi_reduction <add>, %385, %cst_180 [1] : vector<1x32xf32> to vector<1xf32>
    %389 = vector.shape_cast %388 : vector<1xf32> to vector<1x1xf32>
    %cst_181 = arith.constant 3.200000e+01 : f32
    %390 = vector.broadcast %cst_181 : f32 to vector<1x1xf32>
    %391 = arith.divf %389, %390 : vector<1x1xf32>
    %392 = vector.broadcast %391 : vector<1x1xf32> to vector<1x32xf32>
    %393 = arith.subf %385, %392 : vector<1x32xf32>
    %394 = arith.mulf %393, %393 : vector<1x32xf32>
    %cst_182 = arith.constant dense<0.000000e+00> : vector<1xf32>
    %395 = vector.multi_reduction <add>, %394, %cst_182 [1] : vector<1x32xf32> to vector<1xf32>
    %396 = vector.shape_cast %395 : vector<1xf32> to vector<1x1xf32>
    %cst_183 = arith.constant 3.200000e+01 : f32
    %397 = vector.broadcast %cst_183 : f32 to vector<1x1xf32>
    %398 = arith.divf %396, %397 : vector<1x1xf32>
    %cst_184 = arith.constant 9.99999997E-7 : f32
    %399 = vector.broadcast %cst_184 : f32 to vector<1x1xf32>
    %400 = arith.addf %398, %399 : vector<1x1xf32>
    %401 = math.rsqrt %400 : vector<1x1xf32>
    %402 = vector.broadcast %401 : vector<1x1xf32> to vector<1x32xf32>
    %403 = arith.mulf %393, %402 : vector<1x32xf32>
    %404 = arith.mulf %403, %386 : vector<1x32xf32>
    %405 = arith.addf %404, %387 : vector<1x32xf32>
    %406 = vector.shape_cast %405 : vector<1x32xf32> to vector<1x1x32xf32>
    %c0_185 = arith.constant 0 : index
    %c0_186 = arith.constant 0 : index
    %c0_187 = arith.constant 0 : index
    %407 = vector.load %arg19[%c0_185, %c0_186, %c0_187] : memref<1x1x32xf32, #tpu.memory_space<vmem>>, vector<1x1x32xf32>
    tpu.vector_store %arg19[%c0_185, %c0_186, %c0_187], %406 {strides = array<i32>} : memref<1x1x32xf32, #tpu.memory_space<vmem>>, vector<1x1x32xf32>,
    return
  }
  func.func @transform_0(%arg0: i32) -> (i32, i32, i32) {
    %c0_i32 = arith.constant 0 : i32
    %c0_i32_0 = arith.constant 0 : i32
    %c0_i32_1 = arith.constant 0 : i32
    return %arg0, %c0_i32, %c0_i32_0 : i32, i32, i32
  }
  func.func @transform_1(%arg0: i32) -> (i32, i32) {
    %c0_i32 = arith.constant 0 : i32
    %c0_i32_0 = arith.constant 0 : i32
    %c0_i32_1 = arith.constant 0 : i32
    return %c0_i32, %c0_i32_0 : i32, i32
  }
  func.func @transform_2(%arg0: i32) -> (i32, i32) {
    %c0_i32 = arith.constant 0 : i32
    %c0_i32_0 = arith.constant 0 : i32
    %c0_i32_1 = arith.constant 0 : i32
    return %c0_i32, %c0_i32_0 : i32, i32
  }
  func.func @transform_3(%arg0: i32) -> (i32, i32) {
    %c0_i32 = arith.constant 0 : i32
    %c0_i32_0 = arith.constant 0 : i32
    %c0_i32_1 = arith.constant 0 : i32
    return %c0_i32, %c0_i32_0 : i32, i32
  }
  func.func @transform_4(%arg0: i32) -> (i32, i32, i32) {
    %c0_i32 = arith.constant 0 : i32
    %c0_i32_0 = arith.constant 0 : i32
    %c0_i32_1 = arith.constant 0 : i32
    %c0_i32_2 = arith.constant 0 : i32
    return %c0_i32, %c0_i32_0, %c0_i32_1 : i32, i32, i32
  }
  func.func @transform_5(%arg0: i32) -> (i32, i32, i32) {
    %c0_i32 = arith.constant 0 : i32
    %c0_i32_0 = arith.constant 0 : i32
    %c0_i32_1 = arith.constant 0 : i32
    %c0_i32_2 = arith.constant 0 : i32
    return %c0_i32, %c0_i32_0, %c0_i32_1 : i32, i32, i32
  }
  func.func @transform_6(%arg0: i32) -> (i32, i32, i32) {
    %c0_i32 = arith.constant 0 : i32
    %c0_i32_0 = arith.constant 0 : i32
    %c0_i32_1 = arith.constant 0 : i32
    %c0_i32_2 = arith.constant 0 : i32
    return %c0_i32, %c0_i32_0, %c0_i32_1 : i32, i32, i32
  }
  func.func @transform_7(%arg0: i32) -> (i32, i32, i32) {
    %c0_i32 = arith.constant 0 : i32
    %c0_i32_0 = arith.constant 0 : i32
    %c0_i32_1 = arith.constant 0 : i32
    %c0_i32_2 = arith.constant 0 : i32
    return %c0_i32, %c0_i32_0, %c0_i32_1 : i32, i32, i32
  }
  func.func @transform_8(%arg0: i32) -> (i32, i32, i32) {
    %c0_i32 = arith.constant 0 : i32
    %c0_i32_0 = arith.constant 0 : i32
    %c0_i32_1 = arith.constant 0 : i32
    %c0_i32_2 = arith.constant 0 : i32
    return %c0_i32, %c0_i32_0, %c0_i32_1 : i32, i32, i32
  }
  func.func @transform_9(%arg0: i32) -> (i32, i32, i32) {
    %c0_i32 = arith.constant 0 : i32
    %c0_i32_0 = arith.constant 0 : i32
    %c0_i32_1 = arith.constant 0 : i32
    %c0_i32_2 = arith.constant 0 : i32
    return %c0_i32, %c0_i32_0, %c0_i32_1 : i32, i32, i32
  }
  func.func @transform_10(%arg0: i32) -> (i32, i32, i32) {
    %c0_i32 = arith.constant 0 : i32
    %c0_i32_0 = arith.constant 0 : i32
    %c0_i32_1 = arith.constant 0 : i32
    %c0_i32_2 = arith.constant 0 : i32
    return %c0_i32, %c0_i32_0, %c0_i32_1 : i32, i32, i32
  }
  func.func @transform_11(%arg0: i32) -> (i32, i32, i32) {
    %c0_i32 = arith.constant 0 : i32
    %c0_i32_0 = arith.constant 0 : i32
    %c0_i32_1 = arith.constant 0 : i32
    %c0_i32_2 = arith.constant 0 : i32
    return %c0_i32, %c0_i32_0, %c0_i32_1 : i32, i32, i32
  }
  func.func @transform_12(%arg0: i32) -> (i32, i32, i32) {
    %c0_i32 = arith.constant 0 : i32
    %c0_i32_0 = arith.constant 0 : i32
    %c0_i32_1 = arith.constant 0 : i32
    %c0_i32_2 = arith.constant 0 : i32
    return %c0_i32, %c0_i32_0, %c0_i32_1 : i32, i32, i32
  }
  func.func @transform_13(%arg0: i32) -> (i32, i32, i32) {
    %c0_i32 = arith.constant 0 : i32
    %c0_i32_0 = arith.constant 0 : i32
    %c0_i32_1 = arith.constant 0 : i32
    %c0_i32_2 = arith.constant 0 : i32
    return %c0_i32, %c0_i32_0, %c0_i32_1 : i32, i32, i32
  }
  func.func @transform_14(%arg0: i32) -> (i32, i32, i32) {
    %c0_i32 = arith.constant 0 : i32
    %c0_i32_0 = arith.constant 0 : i32
    %c0_i32_1 = arith.constant 0 : i32
    %c0_i32_2 = arith.constant 0 : i32
    return %c0_i32, %c0_i32_0, %c0_i32_1 : i32, i32, i32
  }
  func.func @transform_15(%arg0: i32) -> (i32, i32, i32) {
    %c0_i32 = arith.constant 0 : i32
    %c0_i32_0 = arith.constant 0 : i32
    %c0_i32_1 = arith.constant 0 : i32
    %c0_i32_2 = arith.constant 0 : i32
    return %c0_i32, %c0_i32_0, %c0_i32_1 : i32, i32, i32
  }
  func.func @transform_16(%arg0: i32) -> (i32, i32) {
    %c0_i32 = arith.constant 0 : i32
    %c0_i32_0 = arith.constant 0 : i32
    %c0_i32_1 = arith.constant 0 : i32
    return %c0_i32, %c0_i32_0 : i32, i32
  }
  func.func @transform_17(%arg0: i32) -> (i32, i32) {
    %c0_i32 = arith.constant 0 : i32
    %c0_i32_0 = arith.constant 0 : i32
    %c0_i32_1 = arith.constant 0 : i32
    return %c0_i32, %c0_i32_0 : i32, i32
  }
  func.func @transform_18(%arg0: i32) -> (i32, i32, i32) {
    %c0_i32 = arith.constant 0 : i32
    %c0_i32_0 = arith.constant 0 : i32
    %c0_i32_1 = arith.constant 0 : i32
    return %arg0, %c0_i32, %c0_i32_0 : i32, i32, i32
  }
}

</mosaic_0001>

<bundles_post_ra>
// kernel: vit_forward.1
= control target key start
LH: loop header
LB: loop body
LE: loop exit
PB: predicated region body
PF: predicated region fallthrough
CT: control target
= control target key end

     0   :  { %s7861_s0 = inlined_call_operand.vmem [shape: bf16[2,8,2048], index: 0, kind: input, shape index: {}]   ;;  %s7862_s1 = inlined_call_operand.vmem [shape: f32[16,32], index: 1, kind: input, shape index: {}]   ;;  %s7863_s2 = inlined_call_operand.vmem [shape: f32[16,16], index: 2, kind: input, shape index: {}]   ;;  %s7864_s3 = inlined_call_operand.vmem [shape: bf16[2048,32], index: 3, kind: input, shape index: {}]   ;;  %s7865_s4 = inlined_call_operand.vmem [shape: f32[2,32,96], index: 4, kind: input, shape index: {}]   ;;  %s7866_s5 = inlined_call_operand.vmem [shape: f32[2,1,96], index: 5, kind: input, shape index: {}]   ;;  %s7867_s6 = inlined_call_operand.vmem [shape: f32[2,32,32], index: 6, kind: input, shape index: {}]   ;;  %s7868_s7 = inlined_call_operand.vmem [shape: f32[2,1,32], index: 7, kind: input, shape index: {}]   ;;  %s7869_s8 = inlined_call_operand.vmem [shape: f32[2,1,32], index: 8, kind: input, shape index: {}]   ;;  %s7870_s9 = inlined_call_operand.vmem [shape: f32[2,1,32], index: 9, kind: input, shape index: {}]   ;;  %s7871_s10 = inlined_call_operand.vmem [shape: f32[2,1,32], index: 10, kind: input, shape index: {}]   ;;  %s7872_s11 = inlined_call_operand.vmem [shape: f32[2,1,32], index: 11, kind: input, shape index: {}]   ;;  %s7873_s12 = inlined_call_operand.vmem [shape: f32[2,32,128], index: 12, kind: input, shape index: {}]   ;;  %s7874_s13 = inlined_call_operand.vmem [shape: f32[2,1,128], index: 13, kind: input, shape index: {}]   ;;  %s7875_s14 = inlined_call_operand.vmem [shape: f32[2,128,32], index: 14, kind: input, shape index: {}]   ;;  %s7876_s15 = inlined_call_operand.vmem [shape: f32[2,1,32], index: 15, kind: input, shape index: {}]   ;;  %s7877_s16 = inlined_call_operand.vmem [shape: f32[1,32], index: 16, kind: input, shape index: {}]   ;;  %s7878_s17 = inlined_call_operand.vmem [shape: f32[1,32], index: 17, kind: input, shape index: {}]   ;;  %s7879_s18 = inlined_call_operand.hbm [shape: f32[2,1,32], index: 18, kind: output, shape index: {}]  }
   0x1   :  { %7900 = sst [smem:[#allocation11_spill]] %s7861_s0 }
   0x2   :  { %7901 = sst [smem:[#allocation12_spill]] %s7862_s1 }
   0x3   :  { %7902 = sst [smem:[#allocation13_spill]] %s7863_s2 }
   0x4   :  { %7903 = sst [smem:[#allocation14_spill]] %s7864_s3 }
   0x5   :  { %23 = vsyncpa [#allocation3], 0 }
   0x6   :  { %25 = vsyncpa [#allocation3 + $0x1], 0  ;;  %s6835_s27 = smov 0   ;;  %s6837_s28 = smov 0  }
   0x7   :  { %s6839_s29 = smov 0   ;;  %s6841_s30 = smov 0  }
   0x8 LB: > { %7904 = sst [smem:[#allocation5_spill]] %s6714_s27  ;;  %s6856_s0 = sadd.s32 4294967295, %s6726_s30   ;;  %s6726_s30 = sphi %s6841_s30, %s7930_s30   ;;  %s6722_s29 = sphi %s6839_s29, %s7932_s29   ;;  %s6718_s28 = sphi %s6837_s28, %s7934_s28   ;;  %s6714_s27 = sphi %s6835_s27, %s7933_s27  }
   0x9   : > { %7905 = sst [smem:[#allocation6_spill]] %s6722_s29  ;;  %s5226_s19 = sadd.s32 4294967294, %s6726_s30  }
   0xa   : > { %7906 = sst [smem:[#allocation7_spill]] %s6726_s30  ;;  %s6860_s1 = sadd.s32 1, %s6726_s30  }
   0xb   : > { %7907 = sst [smem:[#allocation8_spill]] %s6860_s1  ;;  %s421_s20 = sadd.s32 1, %s6722_s29 }
   0xc   : > { %s418_s21 = ssub.s32 %s6726_s30, %s6860_s1  ;;  %p431_p0 = scmp.ne.s32.totalorder %s6722_s29, %s6718_s28 }
   0xd   : > { %p419_p1 = scmp.eq.s32.totalorder %s418_s21, 0  ;;  %p432_p2 = scmp.eq.s32.totalorder %s6856_s0, 1 }
   0xe   : > { %p437_p3 = scmp.ne.s32.totalorder %s6718_s28, %s6714_s27  ;;  %p438_p4 = scmp.eq.s32.totalorder %s5226_s19, 1 }
   0xf   : > { %s6871_s22 = scalar_select %p419_p1, %s6722_s29, %s421_s20  }
  0x10   : > { %p6873_p5 = por %p432_p2, %p431_p0  ;;  %p6877_p6 = por %p438_p4, %p437_p3 }
  0x11   : > { %7908 = sst [smem:[#allocation9_spill]] %s6871_s22  ;;  %p5229_p7 = scmp.ge.s32.totalorder %s6726_s30, 1 }
  0x12   : > { %s7910_s23 = scalar_select %p6877_p6, 1, 0 }
  0x13   : > { %p515_p8 = scmp.lt.s32.totalorder %s6726_s30, 3 }
  0x14   : > { %7911 = sst [smem:[#allocation10_spill]] %s7910_s23 }
  0x15   : > { %p516_p9 = pnand %p5229_p7, %p515_p8 }
  0x16   : > { %s7912_s3 = sld [smem:[#allocation14_spill]] (!%p516_p9)  ;;  %p568_p10 = scmp.lt.s32.totalorder (!%p516_p9), %s6856_s0, 1  ;;  %vm1990_vm0 = vcmask (!%p516_p9), 261120   ;;  %vm2136_vm1 = vcmask (!%p516_p9), 64512   ;;  %vm2220_vm3 = vcmask (!%p516_p9), 130048   ;;  %vm5141_vm8 = vcmask (!%p516_p9), 253952  }
  0x17   : > { %519 = sbr.rel (%p516_p9) target bundleno = 8167 (0x1fe7), region = 92  ;;  %s7913_s19 = sld [smem:[#allocation11_spill]] (!%p516_p9)  ;;  %vm7343_vm2 = vmpackc.low (!%p516_p9), %vm2136_vm1, %vm2136_vm1 }
  0x18   : > { %s6729_s23 = smov (!%p516_p9), 88   ;;  %s7898_s24 = smov (!%p516_p9), 120  }
  0x19   : > { %s7917_s26 = sld [smem:[#allocation13_spill]] (!%p516_p9)  ;;  %s7897_s22 = smov (!%p516_p9), 64  }
  0x1a   : > { %s7896_s1 = smov (!%p516_p9), 56   ;;  %s7894_s30 = smov (!%p516_p9), 112  }
  0x1b   : > { %s7891_s25 = smov (!%p516_p9), 72   ;;  %s7888_s27 = smov (!%p516_p9), 80  }
  0x1c   : > { %v6420_v0 = vld [vmem:[%s7912_s3 + $0x40] sm:$0xff] (!%p516_p9)   ;;  %v6424_v4 = vld [vmem:[%s7912_s3 + $0x48] sm:$0xff] (!%p516_p9)   ;;  %v6428_v8 = vld [vmem:[%s7912_s3 + $0x50] sm:$0xff] (!%p516_p9)  }
  0x1d   : > { %v6421_v1 = vld [vmem:[%s7912_s3 + $0xc0] sm:$0xff] (!%p516_p9)   ;;  %5512 = vmatprep.subr.bf16.mxu0 (!%p516_p9), %v6420_v0  ;;  %v6425_v5 = vld [vmem:[%s7912_s3 + $0xc8] sm:$0xff] (!%p516_p9)   ;;  %v6429_v9 = vld [vmem:[%s7912_s3 + $0xd0] sm:$0xff] (!%p516_p9)  }
  0x1e   : > { %v6422_v2 = vld [vmem:[%s7912_s3] sm:$0xff]   ;;  %5534 = vmatprep.subr.bf16.mxu1 %v6421_v1  ;;  %v6426_v6 = vld [vmem:[%s7912_s3 + $0x8] sm:$0xff]   ;;  %v6430_v10 = vld [vmem:[%s7912_s3 + $0x10] sm:$0xff]   ;;  %s569_s29 = scalar_select %p568_p10, %s6856_s0, 1 }
  0x1f   : > { %v6423_v3 = vld [vmem:[%s7912_s3 + $0x80] sm:$0xff]   ;;  %5513 = vmatpush3.bf16.msra.mxu0 %v6422_v2  ;;  %v6427_v7 = vld [vmem:[%s7912_s3 + $0x88] sm:$0xff]   ;;  %v6431_v11 = vld [vmem:[%s7912_s3 + $0x90] sm:$0xff]  }
  0x20   : > { %5535 = vmatpush3.bf16.msra.mxu1 %v6423_v3  ;;  %5514 = vmatprep.subr.bf16.mxu0 %v6424_v4  ;;  %v6432_v12 = vld [vmem:[%s7912_s3 + $0x58] sm:$0xff]   ;;  %v6436_v16 = vld [vmem:[%s7912_s3 + $0x60] sm:$0xff]   ;;  %v6440_v20 = vld [vmem:[%s7912_s3 + $0x68] sm:$0xff]   ;;  %s5511_s21 = sshll.u32 %s569_s29, 6  ;;  %s7918_s29 = smov 120  }
  0x21   : > { %5536 = vmatprep.subr.bf16.mxu1 %v6425_v5  ;;  %v6433_v13 = vld [vmem:[%s7912_s3 + $0xd8] sm:$0xff]   ;;  %v6437_v17 = vld [vmem:[%s7912_s3 + $0xe0] sm:$0xff]   ;;  %v6441_v21 = vld [vmem:[%s7912_s3 + $0xe8] sm:$0xff]   ;;  %s6978_s20 = scalar_lea.vmem %s7913_s19, %s5511_s21  ;;  %s7914_s19 = sld [smem:[#allocation12_spill]] }
  0x22   : > { %v6434_v14 = vld [vmem:[%s7912_s3 + $0x18] sm:$0xff]   ;;  %v6438_v18 = vld [vmem:[%s7912_s3 + $0x20] sm:$0xff]   ;;  %v6442_v22 = vld [vmem:[%s7912_s3 + $0x28] sm:$0xff]   ;;  %s6728_s21 = smov 96  }
  0x23   : > { %5515 = vmatpush3.bf16.msra.mxu0 %v6426_v6  ;;  %v6435_v15 = vld [vmem:[%s7912_s3 + $0x98] sm:$0xff]   ;;  %v6439_v19 = vld [vmem:[%s7912_s3 + $0xa0] sm:$0xff]   ;;  %v6443_v23 = vld [vmem:[%s7912_s3 + $0xa8] sm:$0xff]  }
  0x24   : > { %5537 = vmatpush3.bf16.msra.mxu1 %v6427_v7  ;;  %5516 = vmatprep.subr.bf16.mxu0 %v6428_v8  ;;  %v6444_v24 = vld [vmem:[%s7912_s3 + $0x70] sm:$0xff]   ;;  %v6448_v28 = vld [vmem:[%s7912_s3 + $0x78] sm:$0xff]   ;;  %v830_v32 = vld [vmem:[%s6978_s20] sm:$0xff] }
  0x25   : > { %5538 = vmatprep.subr.bf16.mxu1 %v6429_v9  ;;  %v6445_v25 = vld [vmem:[%s7912_s3 + $0xf0] sm:$0xff]   ;;  %v6449_v29 = vld [vmem:[%s7912_s3 + $0xf8] sm:$0xff]   ;;  %v831_v33 = vld [vmem:[%s6978_s20 + $0x8] sm:$0xff]  ;;  %v5232_v34 = vcombine.low %v830_v32, %v830_v32  ;;  %v5233_v35 = vcombine.high %v830_v32, %v830_v32 }
  0x26   : > { %v6446_v26 = vld [vmem:[%s7912_s3 + $0x30] sm:$0xff]   ;;  %v6450_v30 = vld [vmem:[%s7912_s3 + $0x38] sm:$0xff]   ;;  %v5234_v36 = vcombine.low %v831_v33, %v831_v33  ;;  %v5235_v37 = vcombine.high %v831_v33, %v831_v33  ;;  %v6456_v38 = vld [vmem:[%s7912_s3 + $0x140] sm:$0xff]  }
  0x27   : > { %5517 = vmatpush3.bf16.msra.mxu0 %v6430_v10  ;;  %v6447_v27 = vld [vmem:[%s7912_s3 + $0xb0] sm:$0xff]   ;;  %v6451_v31 = vld [vmem:[%s7912_s3 + $0xb8] sm:$0xff]   ;;  %v6457_v39 = vld [vmem:[%s7912_s3 + $0x1c0] sm:$0xff]   ;;  %1694 = vmatprep.mubr.bf16.mxu0 %v5233_v35 }
  0x28   : > { %5539 = vmatpush3.bf16.msra.mxu1 %v6431_v11  ;;  %5518 = vmatprep.subr.bf16.mxu0 %v6432_v12  ;;  %v6458_v40 = vld [vmem:[%s7912_s3 + $0x100] sm:$0xff]   ;;  %v6460_v42 = vld [vmem:[%s7912_s3 + $0x148] sm:$0xff]   ;;  %v6464_v46 = vld [vmem:[%s7912_s3 + $0x150] sm:$0xff]  }
  0x29   : > { %5540 = vmatprep.subr.bf16.mxu1 %v6433_v13  ;;  %1734 = vmatprep.mubr.bf16.mxu1 %v5235_v37  ;;  %v6459_v41 = vld [vmem:[%s7912_s3 + $0x180] sm:$0xff]   ;;  %v6461_v43 = vld [vmem:[%s7912_s3 + $0x1c8] sm:$0xff]   ;;  %v6465_v47 = vld [vmem:[%s7912_s3 + $0x1d0] sm:$0xff]  }
  0x2a   : > { %v6462_v44 = vld [vmem:[%s7912_s3 + $0x108] sm:$0xff]   ;;  %v6466_v48 = vld [vmem:[%s7912_s3 + $0x110] sm:$0xff]   ;;  %v6468_v50 = vld [vmem:[%s7912_s3 + $0x158] sm:$0xff]  }
  0x2b   : > { %5519 = vmatpush3.bf16.msra.mxu0 %v6434_v14  ;;  %v6463_v45 = vld [vmem:[%s7912_s3 + $0x188] sm:$0xff]   ;;  %v6467_v49 = vld [vmem:[%s7912_s3 + $0x190] sm:$0xff]   ;;  %v6469_v51 = vld [vmem:[%s7912_s3 + $0x1d8] sm:$0xff]  }
  0x2c   : > { %5541 = vmatpush3.bf16.msra.mxu1 %v6435_v15  ;;  %5520 = vmatprep.subr.bf16.mxu0 %v6436_v16  ;;  %v6470_v52 = vld [vmem:[%s7912_s3 + $0x118] sm:$0xff]   ;;  %v6472_v54 = vld [vmem:[%s7912_s3 + $0x160] sm:$0xff]   ;;  %v6476_v58 = vld [vmem:[%s7912_s3 + $0x168] sm:$0xff]  }
  0x2d   : > { %5542 = vmatprep.subr.bf16.mxu1 %v6437_v17  ;;  %v6471_v53 = vld [vmem:[%s7912_s3 + $0x198] sm:$0xff]   ;;  %v6473_v55 = vld [vmem:[%s7912_s3 + $0x1e0] sm:$0xff]   ;;  %v6477_v59 = vld [vmem:[%s7912_s3 + $0x1e8] sm:$0xff]  }
  0x2e   : > { %v6474_v56 = vld [vmem:[%s7912_s3 + $0x120] sm:$0xff]   ;;  %v6478_v60 = vld [vmem:[%s7912_s3 + $0x128] sm:$0xff]   ;;  %v6480_v62 = vld [vmem:[%s7912_s3 + $0x170] sm:$0xff]  }
  0x2f   : > { %5521 = vmatpush3.bf16.msra.mxu0 %v6438_v18  ;;  %v6475_v57 = vld [vmem:[%s7912_s3 + $0x1a0] sm:$0xff]   ;;  %v6479_v61 = vld [vmem:[%s7912_s3 + $0x1a8] sm:$0xff]   ;;  %v6481_v63 = vld [vmem:[%s7912_s3 + $0x1f0] sm:$0xff]  }
  0x30   : > { %5543 = vmatpush3.bf16.msra.mxu1 %v6439_v19  ;;  %5522 = vmatprep.subr.bf16.mxu0 %v6440_v20  ;;  %v6482_v0 = vld [vmem:[%s7912_s3 + $0x130] sm:$0xff]   ;;  %v6484_v2 = vld [vmem:[%s7912_s3 + $0x178] sm:$0xff]   ;;  %v6492_v12 = vld [vmem:[%s7912_s3 + $0x240] sm:$0xff]  }
  0x31   : > { %5544 = vmatprep.subr.bf16.mxu1 %v6441_v21  ;;  %v6483_v1 = vld [vmem:[%s7912_s3 + $0x1b0] sm:$0xff]   ;;  %v6485_v3 = vld [vmem:[%s7912_s3 + $0x1f8] sm:$0xff]   ;;  %v6493_v13 = vld [vmem:[%s7912_s3 + $0x2c0] sm:$0xff]  }
  0x32   : > { %v6486_v4 = vld [vmem:[%s7912_s3 + $0x138] sm:$0xff]   ;;  %v832_v6 = vld [vmem:[%s6978_s20 + $0x10] sm:$0xff]  ;;  %v6494_v14 = vld [vmem:[%s7912_s3 + $0x200] sm:$0xff]  }
  0x33   : > { %5523 = vmatpush3.bf16.msra.mxu0 %v6442_v22  ;;  %v6487_v5 = vld [vmem:[%s7912_s3 + $0x1b8] sm:$0xff]   ;;  %v5236_v7 = vcombine.low %v832_v6, %v832_v6  ;;  %v5237_v8 = vcombine.high %v832_v6, %v832_v6  ;;  %v6495_v15 = vld [vmem:[%s7912_s3 + $0x280] sm:$0xff]   ;;  %v6496_v16 = vld [vmem:[%s7912_s3 + $0x248] sm:$0xff]  }
  0x34   : > { %5545 = vmatpush3.bf16.msra.mxu1 %v6443_v23  ;;  %5524 = vmatprep.subr.bf16.mxu0 %v6444_v24  ;;  %v833_v9 = vld [vmem:[%s6978_s20 + $0x18] sm:$0xff]  ;;  %v6497_v17 = vld [vmem:[%s7912_s3 + $0x2c8] sm:$0xff]   ;;  %v6500_v20 = vld [vmem:[%s7912_s3 + $0x250] sm:$0xff]  }
  0x35   : > { %5546 = vmatprep.subr.bf16.mxu1 %v6445_v25  ;;  %v5238_v10 = vcombine.low %v833_v9, %v833_v9  ;;  %v5239_v11 = vcombine.high %v833_v9, %v833_v9  ;;  %v6498_v18 = vld [vmem:[%s7912_s3 + $0x208] sm:$0xff]   ;;  %v6501_v21 = vld [vmem:[%s7912_s3 + $0x2d0] sm:$0xff]   ;;  %v6504_v24 = vld [vmem:[%s7912_s3 + $0x258] sm:$0xff]  }
  0x36   : > { %v6499_v19 = vld [vmem:[%s7912_s3 + $0x288] sm:$0xff]   ;;  %v6502_v22 = vld [vmem:[%s7912_s3 + $0x210] sm:$0xff]   ;;  %v6505_v25 = vld [vmem:[%s7912_s3 + $0x2d8] sm:$0xff]  }
  0x37   : > { %5525 = vmatpush3.bf16.msra.mxu0 %v6446_v26  ;;  %v6503_v23 = vld [vmem:[%s7912_s3 + $0x290] sm:$0xff]   ;;  %v6506_v26 = vld [vmem:[%s7912_s3 + $0x218] sm:$0xff]   ;;  %v6512_v32 = vld [vmem:[%s7912_s3 + $0x268] sm:$0xff]  }
  0x38   : > { %5547 = vmatpush3.bf16.msra.mxu1 %v6447_v27  ;;  %5526 = vmatprep.subr.bf16.mxu0 %v6448_v28  ;;  %v6507_v27 = vld [vmem:[%s7912_s3 + $0x298] sm:$0xff]   ;;  %v6508_v28 = vld [vmem:[%s7912_s3 + $0x260] sm:$0xff]   ;;  %v6513_v33 = vld [vmem:[%s7912_s3 + $0x2e8] sm:$0xff]  }
  0x39   : > { %5548 = vmatprep.subr.bf16.mxu1 %v6449_v29  ;;  %v6509_v29 = vld [vmem:[%s7912_s3 + $0x2e0] sm:$0xff]   ;;  %v6515_v35 = vld [vmem:[%s7912_s3 + $0x2a8] sm:$0xff]   ;;  %v6517_v37 = vld [vmem:[%s7912_s3 + $0x2f0] sm:$0xff]  }
  0x3a   : > { %v6548_v6 = vld [vmem:[%s7912_s3 + $0x368] sm:$0xff]  }
  0x3b   : > { %5527 = vmatpush3.bf16.msra.mxu0 %v6450_v30  ;;  %v6510_v30 = vld [vmem:[%s7912_s3 + $0x220] sm:$0xff]   ;;  %v6551_v9 = vld [vmem:[%s7912_s3 + $0x3a8] sm:$0xff]  }
  0x3c   : > { %5549 = vmatpush3.bf16.msra.mxu1 %v6451_v31  ;;  %5556 = vmatprep.subr.bf16.mxu0 %v6456_v38  ;;  %v6511_v31 = vld [vmem:[%s7912_s3 + $0x2a0] sm:$0xff]   ;;  %v6518_v38 = vld [vmem:[%s7912_s3 + $0x230] sm:$0xff]  }
  0x3d   : > { %5578 = vmatprep.subr.bf16.mxu1 %v6457_v39  ;;  %v6519_v39 = vld [vmem:[%s7912_s3 + $0x2b0] sm:$0xff]  }
  0x3e   : > { %1695 = vmatmul.mubr.bf16.vlgmr.msra.gmra.mrb[0].mxu0 %v5232_v34  ;;  %v6514_v34 = vld [vmem:[%s7912_s3 + $0x228] sm:$0xff]  }
  0x3f   : > { %1735 = vmatmul.mubr.bf16.vlgmr.msra.gmra.mrb[0].mxu1 %v5234_v36  ;;  %5557 = vmatpush3.bf16.msra.mxu0 %v6458_v40  ;;  %v6516_v36 = vld [vmem:[%s7912_s3 + $0x270] sm:$0xff]   ;;  %v6520_v40 = vld [vmem:[%s7912_s3 + $0x278] sm:$0xff]  }
  0x40   : > { %5579 = vmatpush3.bf16.msra.mxu1 %v6459_v41  ;;  %5558 = vmatprep.subr.bf16.mxu0 %v6460_v42  ;;  %v6521_v41 = vld [vmem:[%s7912_s3 + $0x2f8] sm:$0xff]  }
  0x41   : > { %5580 = vmatprep.subr.bf16.mxu1 %v6461_v43  ;;  %1774 = vmatprep.mubr.bf16.mxu0 %v5237_v8  ;;  %v6522_v42 = vld [vmem:[%s7912_s3 + $0x238] sm:$0xff]   ;;  %v6550_v8 = vld [vmem:[%s7912_s3 + $0x328] sm:$0xff]  }
  0x42   : > { %1814 = vmatprep.mubr.bf16.mxu1 %v5239_v11  ;;  %v6523_v43 = vld [vmem:[%s7912_s3 + $0x2b8] sm:$0xff]   ;;  %v6553_v11 = vld [vmem:[%s7912_s3 + $0x3f0] sm:$0xff]  }
  0x43   : > { %5559 = vmatpush3.bf16.msra.mxu0 %v6462_v44  ;;  %v834_v44 = vld [vmem:[%s6978_s20 + $0x20] sm:$0xff] }
  0x44   : > { %5581 = vmatpush3.bf16.msra.mxu1 %v6463_v45  ;;  %5560 = vmatprep.subr.bf16.mxu0 %v6464_v46  ;;  %v835_v45 = vld [vmem:[%s6978_s20 + $0x28] sm:$0xff]  ;;  %v5240_v46 = vcombine.low %v834_v44, %v834_v44 }
  0x45   : > { %5582 = vmatprep.subr.bf16.mxu1 %v6465_v47  ;;  %v5241_v47 = vcombine.high %v834_v44, %v834_v44 }
  0x47   : > { %5561 = vmatpush3.bf16.msra.mxu0 %v6466_v48  ;;  %v5242_v48 = vcombine.low %v835_v45, %v835_v45 }
  0x48   : > { %5583 = vmatpush3.bf16.msra.mxu1 %v6467_v49  ;;  %5562 = vmatprep.subr.bf16.mxu0 %v6468_v50  ;;  %v5243_v49 = vcombine.high %v835_v45, %v835_v45  ;;  %v6528_v50 = vld [vmem:[%s7912_s3 + $0x340] sm:$0xff]  }
  0x49   : > { %5584 = vmatprep.subr.bf16.mxu1 %v6469_v51  ;;  %v6529_v51 = vld [vmem:[%s7912_s3 + $0x3c0] sm:$0xff]  }
  0x4b   : > { %5563 = vmatpush3.bf16.msra.mxu0 %v6470_v52  ;;  %v6530_v52 = vld [vmem:[%s7912_s3 + $0x300] sm:$0xff]  }
  0x4c   : > { %5585 = vmatpush3.bf16.msra.mxu1 %v6471_v53  ;;  %5564 = vmatprep.subr.bf16.mxu0 %v6472_v54  ;;  %v6531_v53 = vld [vmem:[%s7912_s3 + $0x380] sm:$0xff]   ;;  %v6532_v54 = vld [vmem:[%s7912_s3 + $0x348] sm:$0xff]  }
  0x4d   : > { %5586 = vmatprep.subr.bf16.mxu1 %v6473_v55  ;;  %v6533_v55 = vld [vmem:[%s7912_s3 + $0x3c8] sm:$0xff]  }
  0x4f   : > { %5565 = vmatpush3.bf16.msra.mxu0 %v6474_v56  ;;  %v6534_v56 = vld [vmem:[%s7912_s3 + $0x308] sm:$0xff]  }
  0x50   : > { %5587 = vmatpush3.bf16.msra.mxu1 %v6475_v57  ;;  %5566 = vmatprep.subr.bf16.mxu0 %v6476_v58  ;;  %v6535_v57 = vld [vmem:[%s7912_s3 + $0x388] sm:$0xff]   ;;  %v6536_v58 = vld [vmem:[%s7912_s3 + $0x350] sm:$0xff]  }
  0x51   : > { %5588 = vmatprep.subr.bf16.mxu1 %v6477_v59  ;;  %v6537_v59 = vld [vmem:[%s7912_s3 + $0x3d0] sm:$0xff]  }
  0x53   : > { %5567 = vmatpush3.bf16.msra.mxu0 %v6478_v60  ;;  %v6538_v60 = vld [vmem:[%s7912_s3 + $0x310] sm:$0xff]  }
  0x54   : > { %5589 = vmatpush3.bf16.msra.mxu1 %v6479_v61  ;;  %5568 = vmatprep.subr.bf16.mxu0 %v6480_v62  ;;  %v6539_v61 = vld [vmem:[%s7912_s3 + $0x390] sm:$0xff]   ;;  %v6540_v62 = vld [vmem:[%s7912_s3 + $0x358] sm:$0xff]  }
  0x55   : > { %5590 = vmatprep.subr.bf16.mxu1 %v6481_v63  ;;  %v6541_v63 = vld [vmem:[%s7912_s3 + $0x3d8] sm:$0xff]  }
  0x57   : > { %5569 = vmatpush3.bf16.msra.mxu0 %v6482_v0  ;;  %v6542_v0 = vld [vmem:[%s7912_s3 + $0x318] sm:$0xff]  }
  0x58   : > { %5591 = vmatpush3.bf16.msra.mxu1 %v6483_v1  ;;  %5570 = vmatprep.subr.bf16.mxu0 %v6484_v2  ;;  %v6543_v1 = vld [vmem:[%s7912_s3 + $0x398] sm:$0xff]   ;;  %v6544_v2 = vld [vmem:[%s7912_s3 + $0x360] sm:$0xff]  }
  0x59   : > { %5592 = vmatprep.subr.bf16.mxu1 %v6485_v3  ;;  %v6545_v3 = vld [vmem:[%s7912_s3 + $0x3e0] sm:$0xff]  }
  0x5b   : > { %5571 = vmatpush3.bf16.msra.mxu0 %v6486_v4  ;;  %v6546_v4 = vld [vmem:[%s7912_s3 + $0x320] sm:$0xff]  }
  0x5c   : > { %5593 = vmatpush3.bf16.msra.mxu1 %v6487_v5  ;;  %5600 = vmatprep.subr.bf16.mxu0 %v6492_v12  ;;  %v6547_v5 = vld [vmem:[%s7912_s3 + $0x3a0] sm:$0xff]   ;;  %v6554_v12 = vld [vmem:[%s7912_s3 + $0x330] sm:$0xff]  }
  0x5d   : > { %5622 = vmatprep.subr.bf16.mxu1 %v6493_v13  ;;  %v6555_v13 = vld [vmem:[%s7912_s3 + $0x3b0] sm:$0xff]  }
  0x5e   : > { %1775 = vmatmul.mubr.bf16.vlgmr.msra.gmra.mrb[4].mxu0 %v5236_v7  ;;  %v6549_v7 = vld [vmem:[%s7912_s3 + $0x3e8] sm:$0xff]  }
  0x5f   : > { %1815 = vmatmul.mubr.bf16.vlgmr.msra.gmra.mrb[4].mxu1 %v5238_v10  ;;  %5601 = vmatpush3.bf16.msra.mxu0 %v6494_v14  ;;  %v6552_v10 = vld [vmem:[%s7912_s3 + $0x370] sm:$0xff]   ;;  %v6556_v14 = vld [vmem:[%s7912_s3 + $0x378] sm:$0xff]  }
  0x60   : > { %5623 = vmatpush3.bf16.msra.mxu1 %v6495_v15  ;;  %5602 = vmatprep.subr.bf16.mxu0 %v6496_v16  ;;  %v6557_v15 = vld [vmem:[%s7912_s3 + $0x3f8] sm:$0xff]  }
  0x61   : > { %5624 = vmatprep.subr.bf16.mxu1 %v6497_v17  ;;  %1854 = vmatprep.mubr.bf16.mxu0 %v5241_v47  ;;  %v6558_v16 = vld [vmem:[%s7912_s3 + $0x338] sm:$0xff]  }
  0x62   : > { %1894 = vmatprep.mubr.bf16.mxu1 %v5243_v49  ;;  %v6559_v17 = vld [vmem:[%s7912_s3 + $0x3b8] sm:$0xff]  }
  0x63   : > { %5603 = vmatpush3.bf16.msra.mxu0 %v6498_v18  ;;  %v836_v18 = vld [vmem:[%s6978_s20 + $0x30] sm:$0xff] }
  0x64   : > { %5625 = vmatpush3.bf16.msra.mxu1 %v6499_v19  ;;  %5604 = vmatprep.subr.bf16.mxu0 %v6500_v20  ;;  %v837_v19 = vld [vmem:[%s6978_s20 + $0x38] sm:$0xff]  ;;  %v5244_v20 = vcombine.low %v836_v18, %v836_v18  ;;  %s7889_s20 = smov 104  }
  0x65   : > { %5626 = vmatprep.subr.bf16.mxu1 %v6501_v21  ;;  %v5245_v21 = vcombine.high %v836_v18, %v836_v18 }
  0x67   : > { %5605 = vmatpush3.bf16.msra.mxu0 %v6502_v22  ;;  %v5246_v22 = vcombine.low %v837_v19, %v837_v19 }
  0x68   : > { %5627 = vmatpush3.bf16.msra.mxu1 %v6503_v23  ;;  %5606 = vmatprep.subr.bf16.mxu0 %v6504_v24  ;;  %v5247_v23 = vcombine.high %v837_v19, %v837_v19 }
  0x69   : > { %5628 = vmatprep.subr.bf16.mxu1 %v6505_v25 }
  0x6b   : > { %5607 = vmatpush3.bf16.msra.mxu0 %v6506_v26 }
  0x6c   : > { %5629 = vmatpush3.bf16.msra.mxu1 %v6507_v27  ;;  %5608 = vmatprep.subr.bf16.mxu0 %v6508_v28 }
  0x6d   : > { %5630 = vmatprep.subr.bf16.mxu1 %v6509_v29 }
  0x6f   : > { %5609 = vmatpush3.bf16.msra.mxu0 %v6510_v30 }
  0x70   : > { %5631 = vmatpush3.bf16.msra.mxu1 %v6511_v31  ;;  %5610 = vmatprep.subr.bf16.mxu0 %v6512_v32 }
  0x71   : > { %5632 = vmatprep.subr.bf16.mxu1 %v6513_v33 }
  0x73   : > { %5611 = vmatpush3.bf16.msra.mxu0 %v6514_v34 }
  0x74   : > { %5633 = vmatpush3.bf16.msra.mxu1 %v6515_v35  ;;  %5612 = vmatprep.subr.bf16.mxu0 %v6516_v36 }
  0x75   : > { %5634 = vmatprep.subr.bf16.mxu1 %v6517_v37 }
  0x77   : > { %5613 = vmatpush3.bf16.msra.mxu0 %v6518_v38 }
  0x78   : > { %5635 = vmatpush3.bf16.msra.mxu1 %v6519_v39  ;;  %5614 = vmatprep.subr.bf16.mxu0 %v6520_v40 }
  0x79   : > { %5636 = vmatprep.subr.bf16.mxu1 %v6521_v41 }
  0x7b   : > { %5615 = vmatpush3.bf16.msra.mxu0 %v6522_v42 }
  0x7c   : > { %5637 = vmatpush3.bf16.msra.mxu1 %v6523_v43  ;;  %5644 = vmatprep.subr.bf16.mxu0 %v6528_v50 }
  0x7d   : > { %5666 = vmatprep.subr.bf16.mxu1 %v6529_v51 }
  0x7e   : > { %1855 = vmatmul.mubr.bf16.vlgmr.msra.gmra.mrb[8].mxu0 %v5240_v46 }
  0x7f   : > { %1895 = vmatmul.mubr.bf16.vlgmr.msra.gmra.mrb[8].mxu1 %v5242_v48  ;;  %5645 = vmatpush3.bf16.msra.mxu0 %v6530_v52 }
  0x80   : > { %5667 = vmatpush3.bf16.msra.mxu1 %v6531_v53  ;;  %5646 = vmatprep.subr.bf16.mxu0 %v6532_v54 }
  0x81   : > { %5668 = vmatprep.subr.bf16.mxu1 %v6533_v55  ;;  %1934 = vmatprep.mubr.bf16.mxu0 %v5245_v21 }
  0x82   : > { %1974 = vmatprep.mubr.bf16.mxu1 %v5247_v23  ;;  %v2035_v23 = vld [vmem:[%s7865_s4 + $0x8] sm:$0xff] }
  0x83   : > { %5647 = vmatpush3.bf16.msra.mxu0 %v6534_v56 }
  0x84   : > { %5669 = vmatpush3.bf16.msra.mxu1 %v6535_v57  ;;  %5648 = vmatprep.subr.bf16.mxu0 %v6536_v58 }
  0x85   : > { %5670 = vmatprep.subr.bf16.mxu1 %v6537_v59 }
  0x87   : > { %5649 = vmatpush3.bf16.msra.mxu0 %v6538_v60 }
  0x88   : > { %5671 = vmatpush3.bf16.msra.mxu1 %v6539_v61  ;;  %5650 = vmatprep.subr.bf16.mxu0 %v6540_v62 }
  0x89   : > { %5672 = vmatprep.subr.bf16.mxu1 %v6541_v63 }
  0x8b   : > { %5651 = vmatpush3.bf16.msra.mxu0 %v6542_v0 }
  0x8c   : > { %5673 = vmatpush3.bf16.msra.mxu1 %v6543_v1  ;;  %5652 = vmatprep.subr.bf16.mxu0 %v6544_v2 }
  0x8d   : > { %5674 = vmatprep.subr.bf16.mxu1 %v6545_v3 }
  0x8f   : > { %5653 = vmatpush3.bf16.msra.mxu0 %v6546_v4 }
  0x90   : > { %5675 = vmatpush3.bf16.msra.mxu1 %v6547_v5  ;;  %5654 = vmatprep.subr.bf16.mxu0 %v6548_v6  ;;  %v1982_v6 = vld [vmem:[%s7914_s19] sm:$0xff] }
  0x91   : > { %5676 = vmatprep.subr.bf16.mxu1 %v6549_v7 }
  0x93   : > { %5655 = vmatpush3.bf16.msra.mxu0 %v6550_v8 }
  0x94   : > { %5677 = vmatpush3.bf16.msra.mxu1 %v6551_v9  ;;  %5656 = vmatprep.subr.bf16.mxu0 %v6552_v10  ;;  %v7290_v9 = vld [vmem:[%s7914_s19 + $0x8] sm:$0xff] }
  0x95   : > { %5678 = vmatprep.subr.bf16.mxu1 %v6553_v11  ;;  %v1994_v11 = vsel %vm1990_vm0, %v7290_v9, 0.0 }
  0x97   : > { %5657 = vmatpush3.bf16.msra.mxu0 %v6554_v12 }
  0x98   : > { %5679 = vmatpush3.bf16.msra.mxu1 %v6555_v13  ;;  %5658 = vmatprep.subr.bf16.mxu0 %v6556_v14 }
  0x99   : > { %5680 = vmatprep.subr.bf16.mxu1 %v6557_v15 }
  0x9b   : > { %5659 = vmatpush3.bf16.msra.mxu0 %v6558_v16 }
  0x9c   : > { %5681 = vmatpush3.bf16.msra.mxu1 %v6559_v17 }
  0x9e   : > { %1935 = vmatmul.mubr.bf16.vlgmr.msra.gmra.mrb[12].mxu0 %v5244_v20 }
  0x9f   : > { %1975 = vmatmul.mubr.bf16.vlgmr.msra.gmra.mrb[12].mxu1 %v5246_v22  ;;  %v2034_v22 = vld [vmem:[%s7865_s4] sm:$0xff] }
 0x111   : > { %v5528_v24 = vpop.f32.mrb[0].mxu0 }
 0x112   : > { %v5550_v25 = vpop.f32.mrb[0].mxu1  ;;  %v5529_v26 = vpop.f32.mrb[1].mxu0 }
 0x113   : > { %v5551_v27 = vpop.f32.mrb[1].mxu1  ;;  %v5530_v28 = vadd.f32 %v5529_v26, %v5528_v24  ;;  %v5531_v30 = vpop.f32.mrb[2].mxu0  ;;  %v6102_v24 = vpack.c.bf16 %v2035_v23, %v2034_v22  ;;  %v2037_v26 = vld [vmem:[%s7865_s4 + $0x18] sm:$0xff] }
 0x114   : > { %v5552_v29 = vadd.f32 %v5551_v27, %v5550_v25  ;;  %v5553_v31 = vpop.f32.mrb[2].mxu1  ;;  %v5532_v32 = vpop.f32.mrb[3].mxu0  ;;  %v2036_v25 = vld [vmem:[%s7865_s4 + $0x10] sm:$0xff] }
 0x115   : > { %v5554_v33 = vpop.f32.mrb[3].mxu1  ;;  %6103 = vmatprep.subr.bf16.mxu1 %v6102_v24  ;;  %v6106_v27 = vpack.c.bf16 %v2037_v26, %v2036_v25 }
 0x116   : > { %v1737_v34 = vadd.f32 %v5552_v29, %v5530_v28  ;;  %6105 = vmatpush3.bf16.msra.mxu1 %v6102_v24 }
 0x117   : > { %6107 = vmatprep.subr.bf16.mxu1 %v6106_v27 }
 0x11a   : > { %6109 = vmatpush3.bf16.msra.mxu1 %v6106_v27 }
 0x131   : > { %v5572_v35 = vpop.f32.mrb[4].mxu0 }
 0x132   : > { %v5594_v36 = vpop.f32.mrb[4].mxu1  ;;  %v5573_v37 = vpop.f32.mrb[5].mxu0 }
 0x133   : > { %v5595_v38 = vpop.f32.mrb[5].mxu1  ;;  %v5574_v39 = vadd.f32 %v5573_v37, %v5572_v35  ;;  %v5575_v41 = vpop.f32.mrb[6].mxu0  ;;  %v5376_v35 = vld [vmem:[%s7869_s8] ss:$0 sm:$0xff] }
 0x134   : > { %v5596_v40 = vadd.f32 %v5595_v38, %v5594_v36  ;;  %v5597_v42 = vpop.f32.mrb[6].mxu1  ;;  %v5576_v43 = vpop.f32.mrb[7].mxu0  ;;  %v5377_v37 = vld [vmem:[%s7870_s9] ss:$0 sm:$0xff] }
 0x135   : > { %v5598_v44 = vpop.f32.mrb[7].mxu1  ;;  %v1777_v45 = vadd.f32 %v5574_v39, %v1737_v34 }
 0x136   : > { %v5378_v44 = vld [vmem:[%s7866_s5] ss:$0 sm:$0xff] }
 0x137   : > { %v1817_v46 = vadd.f32 %v5596_v40, %v1777_v45 }
 0x151   : > { %v5616_v47 = vpop.f32.mrb[8].mxu0 }
 0x152   : > { %v5638_v48 = vpop.f32.mrb[8].mxu1  ;;  %v5617_v49 = vpop.f32.mrb[9].mxu0 }
 0x153   : > { %v5618_v50 = vadd.f32 %v5617_v49, %v5616_v47  ;;  %v5639_v51 = vpop.f32.mrb[9].mxu1  ;;  %v5619_v52 = vpop.f32.mrb[10].mxu0 }
 0x154   : > { %v5640_v53 = vadd.f32 %v5639_v51, %v5638_v48  ;;  %v5641_v54 = vpop.f32.mrb[10].mxu1  ;;  %v5620_v55 = vpop.f32.mrb[11].mxu0 }
 0x155   : > { %v1857_v56 = vadd.f32 %v5618_v50, %v1817_v46  ;;  %v5642_v57 = vpop.f32.mrb[11].mxu1  ;;  %v7356_v55 = vld [vmem:[%s7917_s26] sm:$0xff] }
 0x156   : > { %v7361_v57 = vld [vmem:[%s7917_s26 + $0x8] sm:$0xff] }
 0x157   : > { %v1897_v58 = vadd.f32 %v5640_v53, %v1857_v56 }
 0x171   : > { %v5660_v59 = vpop.f32.mrb[12].mxu0 }
 0x172   : > { %v5682_v60 = vpop.f32.mrb[12].mxu1  ;;  %v5661_v61 = vpop.f32.mrb[13].mxu0 }
 0x173   : > { %v5662_v62 = vadd.f32 %v5661_v61, %v5660_v59  ;;  %v5683_v63 = vpop.f32.mrb[13].mxu1  ;;  %v5663_v0 = vpop.f32.mrb[14].mxu0 }
 0x174   : > { %v5684_v1 = vadd.f32 %v5683_v63, %v5682_v60  ;;  %v5685_v2 = vpop.f32.mrb[14].mxu1  ;;  %v5664_v3 = vpop.f32.mrb[15].mxu0 }
 0x175   : > { %v1937_v4 = vadd.f32 %v5662_v62, %v1897_v58  ;;  %v5686_v5 = vpop.f32.mrb[15].mxu1 }
 0x177   : > { %v1977_v7 = vadd.f32 %v5684_v1, %v1937_v4 }
 0x179   : > { %v7285_v8 = vadd.f32 %v1982_v6, %v1977_v7 }
 0x17b   : > { %v1991_v10 = vsel %vm1990_vm0, %v7285_v8, 0.0 }
 0x17c   : > { %1992 = vadd.xlane.f32.xlu0 %v1991_v10 }
 0x180   : > { %1995 = vadd.xlane.f32.xlu0 %v1994_v11 }
 0x209   : > { %v1993_v12 = vpop.xlane.xlu0 %1992 }
 0x20a   : > { %v1998_v13 = vmul.f32 0.03125, %v1993_v12 }
 0x20c   : > { %v2000_v14 = vsub.f32 %v7285_v8, %v1998_v13 }
 0x20d   : > { %v1996_v15 = vpop.xlane.xlu0 %1995 }
 0x20e   : > { %v1999_v16 = vmul.f32 0.03125, %v1996_v15  ;;  %v2002_v17 = vmul.f32 %v2000_v14, %v2000_v14 }
 0x210   : > { %v2001_v18 = vsub.f32 %v7290_v9, %v1999_v16  ;;  %v2004_v19 = vsel %vm1990_vm0, %v2002_v17, 0.0 }
 0x211   : > { %2005 = vadd.xlane.f32.xlu1 %v2004_v19 }
 0x212   : > { %v2003_v20 = vmul.f32 %v2001_v18, %v2001_v18 }
 0x214   : > { %v2007_v21 = vsel %vm1990_vm0, %v2003_v20, 0.0 }
 0x215   : > { %2008 = vadd.xlane.f32.xlu1 %v2007_v21 }
 0x29e   : > { %v2006_v28 = vpop.xlane.xlu1 %2005 }
 0x29f   : > { %v2010_v29 = vmul.f32 0.03125, %v2006_v28 }
 0x2a1   : > { %v2012_v30 = vadd.f32 1e-06, %v2010_v29 }
 0x2a2   : > { %v2009_v31 = vpop.xlane.xlu1 %2008 }
 0x2a3   : > { %6564 = vrsqrt.f32 %v2012_v30  ;;  %v2011_v32 = vmul.f32 0.03125, %v2009_v31 }
 0x2a5   : > { %v2013_v33 = vadd.f32 1e-06, %v2011_v32 }
 0x2a7   : > { %6566 = vrsqrt.f32 %v2013_v33 }
 0x2ad   : > { %v6565_v34 = vpop.eup %6564 }
 0x2ae   : > { %v2016_v36 = vmul.f32 %v6565_v34, %v2000_v14 }
 0x2b0   : > { %v2024_v38 = vmul.f32 %v5376_v35, %v2016_v36 }
 0x2b1   : > { %v6567_v39 = vpop.eup %6566 }
 0x2b2   : > { %v2017_v40 = vmul.f32 %v6567_v39, %v2001_v18  ;;  %v2032_v41 = vadd.f32 %v5377_v37, %v2024_v38 }
 0x2b4   : > { %v2025_v42 = vmul.f32 %v5376_v35, %v2017_v40  ;;  %5844 = vmatprep.mubr.msk.f32.mxu1 %vm1990_vm0, %v2032_v41 }
 0x2b6   : > { %v2033_v43 = vadd.f32 %v5377_v37, %v2025_v42 }
 0x2b8   : > { %5845 = vmatmul.mubr.msk.f32.vlgmr.msra.gmra.mrb[16].mxu1 %vm1990_vm0, %v2033_v43 }
 0x38b   : > { %v5846_v45 = vpop.f32.mrb[16].mxu1 }
 0x38c   : > { %v7323_v46 = vadd.f32 %v5846_v45, %v5378_v44  ;;  %v2117_v47 = vpop.f32.mrb[17].mxu1 }
 0x38d   : > { %v7325_v48 = vadd.f32 %v5378_v44, %v2117_v47 }
 0x38f   : > { %5851 = vmatprep.mubr.msk.f32.mxu1 %vm2136_vm1, %v7325_v48  ;;  %v7331_v49 = vpack.i.bf16 %v7323_v46, %v7325_v48 }
 0x391   : > { %6341 = vrot.lane.b32.xlu0 %v7331_v49, %s6728_s21 }
 0x395   : > { %6351 = vrot.lane.b32.xlu0 %v7331_v49, %s6729_s23 }
 0x399   : > { %2330 = vrot.lane.b32.xlu0 %v7325_v48, %s7898_s24 }
 0x39d   : > { %2332 = vrot.lane.b32.xlu0 %v7323_v46, %s7898_s24  ;;  %s7921_s24 = smov 112  }
 0x403   : > { %v6342_v50 = vpop.permute.xlu0 %6341 }
 0x404   : > { %v6344_v51 = vunpack.i.h.bf16 %v6342_v50  ;;  %v6343_v52 = vunpack.i.l.bf16 %v6342_v50 }
 0x406   : > { %v6110_v54 = vpack.c.bf16 %v6344_v51, %v6343_v52 }
 0x407   : > { %v6352_v13 = vpop.permute.xlu0 %6351 }
 0x408   : > { %6112 = vmatprep.subr.msk.bf16.mxu1 %vm7343_vm2, %v6110_v54  ;;  %v6354_v15 = vunpack.i.h.bf16 %v6352_v13  ;;  %v6353_v16 = vunpack.i.l.bf16 %v6352_v13 }
 0x409   : > { %6115 = vmatpush3.bf16.xpose.msk.msra.mxu1 %vm7343_vm2, %v6110_v54 }
 0x40a   : > { %v6120_v20 = vpack.c.bf16 %v6354_v15, %v6353_v16 }
 0x40b   : > { %v2331_v25 = vpop.permute.xlu0 %2330 }
 0x40f   : > { %v2333_v26 = vpop.permute.xlu0 %2332 }
 0x410   : > { %5852 = vmatmul.mubr.msk.f32.vlgmr.msra.gmra.mrb[18].mxu1 %vm2136_vm1, %v7323_v46 }
 0x4e3   : > { %v5853_v56 = vpop.f32.mrb[18].mxu1 }
 0x4e4   : > { %v2211_v58 = vpop.f32.mrb[19].mxu1  ;;  %v2217_v60 = vadd.f32 %v5853_v56, %v7361_v57 }
 0x4e5   : > { %v2212_v59 = vadd.f32 %v2211_v58, %v7356_v55 }
 0x4e6   : > { %v2224_v62 = vsel %vm2220_vm3, %v2217_v60, -inf }
 0x4e7   : > { %v2221_v61 = vsel %vm2220_vm3, %v2212_v59, -inf }
 0x4e8   : > { %2222 = vmax.xlane.f32.xlu1 %v2221_v61 }
 0x4ec   : > { %2225 = vmax.xlane.f32.xlu1 %v2224_v62 }
 0x575   : > { %v2223_v63 = vpop.xlane.xlu1 %2222 }
 0x576   : > { %v2227_v0 = vsub.f32 %v2212_v59, %v2223_v63 }
 0x578   : > { %v2229_v3 = vmul.f32 1.442695, %v2227_v0 }
 0x579   : > { %v2226_v1 = vpop.xlane.xlu1 %2225 }
 0x57a   : > { %v2228_v2 = vsub.f32 %v2217_v60, %v2226_v1 }
 0x57c   : > { %v2231_v4 = vmul.f32 1.442695, %v2228_v2 }
 0x57e   : > { %6568 = vpow2.f32 %v2231_v4 }
 0x57f   : > { %6570 = vpow2.f32 %v2229_v3 }
 0x588   : > { %v6569_v5 = vpop.eup %6568 }
 0x589   : > { %v2236_v6 = vsel %vm2220_vm3, %v6569_v5, 0.0  ;;  %v6571_v7 = vpop.eup %6570 }
 0x58a   : > { %2237 = vadd.xlane.f32.xlu1 %v2236_v6  ;;  %v2233_v10 = vsel %vm2220_vm3, %v6571_v7, 0.0 }
 0x58e   : > { %2234 = vadd.xlane.f32.xlu1 %v2233_v10  ;;  %v2126_v10 = vld [vmem:[%s7867_s6] sm:$0xff] }
 0x59f   : > { %6346 = vrot.lane.b32.xlu1 %v7331_v49, %s7897_s22  ;;  %s7922_s22 = smov 72  }
 0x617   : > { %v2238_v11 = vpop.xlane.xlu1 %2237 }
 0x618   : > { %6572 = vrcp.f32 %v2238_v11 }
 0x61b   : > { %v2235_v12 = vpop.xlane.xlu1 %2234 }
 0x61c   : > { %6574 = vrcp.f32 %v2235_v12 }
 0x61f   : > { %v6347_v14 = vpop.permute.xlu1 %6346 }
 0x620   : > { %v6349_v17 = vunpack.i.h.bf16 %v6347_v14  ;;  %v6348_v18 = vunpack.i.l.bf16 %v6347_v14 }
 0x622   : > { %v6116_v19 = vpack.c.bf16 %v6349_v17, %v6348_v18  ;;  %v6573_v21 = vpop.eup %6572 }
 0x623   : > { %v2242_v24 = vmul.f32 %v6573_v21, %v6569_v5 }
 0x624   : > { %6117 = vmatprep.subr.bf16.mxu1 %v6116_v19 }
 0x625   : > { %6119 = vmatpush3.bf16.msra.mxu1 %v6116_v19 }
 0x626   : > { %v6575_v22 = vpop.eup %6574  ;;  %6122 = vmatprep.subr.msk.bf16.mxu1 %vm7343_vm2, %v6120_v20 }
 0x627   : > { %v2240_v23 = vmul.f32 %v6575_v22, %v6571_v7  ;;  %v2127_v7 = vld [vmem:[%s7867_s6 + $0x8] sm:$0xff] }
 0x628   : > { %5875 = vmatprep.subr.mxu0 %v2127_v7 }
 0x629   : > { %5858 = vmatprep.mubr.msk.f32.mxu1 %vm2220_vm3, %v2240_v23  ;;  %5876 = vmatpush3.msra.mxu0 %v2127_v7 }
 0x62a   : > { %5859 = vmatmul.mubr.msk.f32.vlgmr.msra.gmra.mrb[20].mxu1 %vm2220_vm3, %v2242_v24  ;;  %5880 = vmatprep.subr.mxu0 %v2126_v10 }
 0x62b   : > { %5865 = vmatprep.mubr.msk.f32.mxu1 %vm2136_vm1, %v2331_v25 }
 0x62e   : > { %6125 = vmatpush3.bf16.xpose.msk.msra.mxu1 %vm7343_vm2, %v6120_v20 }
 0x635   : > { %5866 = vmatmul.mubr.msk.f32.vlgmr.msra.gmra.mrb[22].mxu1 %vm2136_vm1, %v2333_v26 }
 0x6fd   : > { %v7379_v27 = vpop.f32.mrb[20].mxu1 }
 0x6fe   : > { %v7381_v28 = vpop.f32.mrb[21].mxu1 }
 0x708   : > { %v5867_v29 = vpop.f32.mrb[22].mxu1 }
 0x709   : > { %v2418_v30 = vadd.f32 %v5867_v29, %v7361_v57  ;;  %v2412_v31 = vpop.f32.mrb[23].mxu1 }
 0x70a   : > { %v2413_v32 = vadd.f32 %v2412_v31, %v7356_v55 }
 0x70b   : > { %v2424_v33 = vsel %vm2220_vm3, %v2418_v30, -inf }
 0x70c   : > { %2425 = vmax.xlane.f32.xlu0 %v2424_v33  ;;  %v2421_v34 = vsel %vm2220_vm3, %v2413_v32, -inf }
 0x70d   : > { %2422 = vmax.xlane.f32.xlu1 %v2421_v34 }
 0x71e   : > { %6356 = vrot.lane.b32.xlu1 %v7331_v49, %s7896_s1  ;;  %s7920_s1 = smov 56  }
 0x722   : > { %2692 = vrot.lane.b32.xlu1 %v7325_v48, %s7894_s30 }
 0x726   : > { %2694 = vrot.lane.b32.xlu1 %v7323_v46, %s7894_s30  ;;  %s7923_s30 = smov 104  }
 0x72a   : > { %6366 = vrot.lane.b32.xlu1 %v7331_v49, %s7891_s25  ;;  %s7893_s25 = smov 48  }
 0x72e   : > { %2977 = vrot.lane.b32.xlu1 %v7323_v46, %s7889_s20 }
 0x799   : > { %v2426_v35 = vpop.xlane.xlu0 %2425 }
 0x79a   : > { %v2428_v36 = vsub.f32 %v2418_v30, %v2426_v35  ;;  %v2423_v37 = vpop.xlane.xlu1 %2422 }
 0x79b   : > { %v2427_v38 = vsub.f32 %v2413_v32, %v2423_v37 }
 0x79c   : > { %v2431_v39 = vmul.f32 1.442695, %v2428_v36 }
 0x79d   : > { %v2429_v40 = vmul.f32 1.442695, %v2427_v38 }
 0x79e   : > { %6576 = vpow2.f32 %v2431_v39  ;;  %v6357_v41 = vpop.permute.xlu1 %6356 }
 0x79f   : > { %v6359_v42 = vunpack.i.h.bf16 %v6357_v41  ;;  %v6358_v43 = vunpack.i.l.bf16 %v6357_v41  ;;  %6578 = vpow2.f32 %v2429_v40 }
 0x7a1   : > { %v6126_v44 = vpack.c.bf16 %v6359_v42, %v6358_v43 }
 0x7a2   : > { %v2693_v51 = vpop.permute.xlu1 %2692 }
 0x7a3   : > { %6127 = vmatprep.subr.bf16.mxu1 %v6126_v44 }
 0x7a4   : > { %6129 = vmatpush3.bf16.msra.mxu1 %v6126_v44 }
 0x7a6   : > { %v2695_v56 = vpop.permute.xlu1 %2694 }
 0x7a8   : > { %v6577_v45 = vpop.eup %6576 }
 0x7a9   : > { %v2436_v47 = vsel %vm2220_vm3, %v6577_v45, 0.0  ;;  %v6579_v50 = vpop.eup %6578 }
 0x7aa   : > { %2437 = vadd.xlane.f32.xlu0 %v2436_v47  ;;  %v2433_v46 = vsel %vm2220_vm3, %v6579_v50, 0.0  ;;  %v6367_v62 = vpop.permute.xlu1 %6366 }
 0x7ab   : > { %v6369_v1 = vunpack.i.h.bf16 %v6367_v62  ;;  %v6368_v2 = vunpack.i.l.bf16 %v6367_v62 }
 0x7ad   : > { %v6140_v4 = vpack.c.bf16 %v6369_v1, %v6368_v2 }
 0x7ae   : > { %2434 = vadd.xlane.f32.xlu0 %v2433_v46  ;;  %v2978_v6 = vpop.permute.xlu1 %2977 }
 0x7c4   : > { %6361 = vrot.lane.b32.xlu0 %v7331_v49, %s7888_s27 }
 0x7c8   : > { %2975 = vrot.lane.b32.xlu0 %v7325_v48, %s7889_s20  ;;  %s7892_s20 = smov 40  }
 0x837   : > { %v2438_v52 = vpop.xlane.xlu0 %2437 }
 0x838   : > { %6580 = vrcp.f32 %v2438_v52 }
 0x83b   : > { %v2435_v54 = vpop.xlane.xlu0 %2434 }
 0x83c   : > { %6582 = vrcp.f32 %v2435_v54  ;;  %v2128_v54 = vld [vmem:[%s7867_s6 + $0x10] sm:$0xff] }
 0x83f   : > { %v6362_v58 = vpop.permute.xlu0 %6361 }
 0x840   : > { %v6364_v59 = vunpack.i.h.bf16 %v6362_v58  ;;  %v6363_v60 = vunpack.i.l.bf16 %v6362_v58 }
 0x842   : > { %v6130_v61 = vpack.c.bf16 %v6364_v59, %v6363_v60  ;;  %v6581_v63 = vpop.eup %6580 }
 0x843   : > { %v2442_v48 = vmul.f32 %v6581_v63, %v6577_v45  ;;  %v2976_v5 = vpop.permute.xlu0 %2975 }
 0x844   : > { %6132 = vmatprep.subr.msk.bf16.mxu1 %vm7343_vm2, %v6130_v61 }
 0x846   : > { %v6583_v0 = vpop.eup %6582 }
 0x847   : > { %v2440_v3 = vmul.f32 %v6583_v0, %v6579_v50 }
 0x849   : > { %5872 = vmatprep.mubr.msk.f32.mxu1 %vm2220_vm3, %v2440_v3 }
 0x84a   : > { %5873 = vmatmul.mubr.msk.f32.vlgmr.msra.gmra.mrb[24].mxu1 %vm2220_vm3, %v2442_v48 }
 0x84b   : > { %6135 = vmatpush3.bf16.xpose.msk.msra.mxu1 %vm7343_vm2, %v6130_v61  ;;  %5889 = vmatprep.mubr.msk.f32.mxu1 %vm2136_vm1, %v2693_v51 }
 0x84c   : > { %6142 = vmatprep.subr.msk.bf16.mxu1 %vm7343_vm2, %v6140_v4 }
 0x852   : > { %5890 = vmatmul.mubr.msk.f32.vlgmr.msra.gmra.mrb[26].mxu1 %vm2136_vm1, %v2695_v56 }
 0x853   : > { %6145 = vmatpush3.bf16.xpose.msk.msra.mxu1 %vm7343_vm2, %v6140_v4  ;;  %5908 = vmatprep.mubr.msk.f32.mxu1 %vm2136_vm1, %v2976_v5 }
 0x85a   : > { %5909 = vmatmul.mubr.msk.f32.vlgmr.msra.gmra.mrb[28].mxu1 %vm2136_vm1, %v2978_v6  ;;  %v2129_v6 = vld [vmem:[%s7867_s6 + $0x18] sm:$0xff] }
 0x91d   : > { %v5874_v11 = vpop.f32.mrb[24].mxu1 }
 0x91e   : > { %v2521_v12 = vpop.f32.mrb[25].mxu1 }
 0x91f   : > { %5877 = vmatprep.mubr.msk.f32.mxu0 %vm2136_vm1, %v2521_v12 }
 0x920   : > { %5878 = vmatmul.mubr.msk.f32.vlgmr.msra.gmra.mrb[16].mxu0 %vm2136_vm1, %v5874_v11 }
 0x921   : > { %5882 = vmatprep.mubr.msk.f32.mxu0 %vm2136_vm1, %v7381_v28  ;;  %5881 = vmatpush3.msra.mxu0 %v2126_v10 }
 0x925   : > { %v5891_v13 = vpop.f32.mrb[26].mxu1 }
 0x926   : > { %v2780_v14 = vadd.f32 %v5891_v13, %v7361_v57  ;;  %v2774_v15 = vpop.f32.mrb[27].mxu1  ;;  %v5413_v13 = vld [vmem:[%s7868_s7] ss:$0 sm:$0xff] }
 0x927   : > { %v2775_v16 = vadd.f32 %v2774_v15, %v7356_v55 }
 0x928   : > { %v2786_v17 = vsel %vm2220_vm3, %v2780_v14, -inf  ;;  %5883 = vmatmul.mubr.msk.f32.vlgmr.msra.gmra.mrb[16].mxu0 %vm2136_vm1, %v7379_v27 }
 0x929   : > { %2787 = vmax.xlane.f32.xlu1 %v2786_v17  ;;  %v2783_v18 = vsel %vm2220_vm3, %v2775_v16, -inf }
 0x92a   : > { %2784 = vmax.xlane.f32.xlu0 %v2783_v18 }
 0x92d   : > { %v5910_v19 = vpop.f32.mrb[28].mxu1 }
 0x92e   : > { %v3057_v20 = vpop.f32.mrb[29].mxu1  ;;  %v3063_v22 = vadd.f32 %v5910_v19, %v7361_v57 }
 0x92f   : > { %v3058_v21 = vadd.f32 %v3057_v20, %v7356_v55 }
 0x930   : > { %v3069_v24 = vsel %vm2220_vm3, %v3063_v22, -inf }
 0x931   : > { %v3066_v23 = vsel %vm2220_vm3, %v3058_v21, -inf }
 0x932   : > { %3067 = vmax.xlane.f32.xlu1 %v3066_v23 }
 0x936   : > { %3070 = vmax.xlane.f32.xlu1 %v3069_v24 }
 0x9b6   : > { %v2788_v25 = vpop.xlane.xlu1 %2787 }
 0x9b7   : > { %v2790_v26 = vsub.f32 %v2780_v14, %v2788_v25  ;;  %v2785_v28 = vpop.xlane.xlu0 %2784 }
 0x9b8   : > { %v2789_v27 = vsub.f32 %v2775_v16, %v2785_v28 }
 0x9b9   : > { %v2793_v29 = vmul.f32 1.442695, %v2790_v26 }
 0x9ba   : > { %v2791_v30 = vmul.f32 1.442695, %v2789_v27 }
 0x9bb   : > { %6584 = vpow2.f32 %v2793_v29  ;;  %v3313_v29 = vld [vmem:[%s7873_s12] sm:$0xff] }
 0x9bc   : > { %6586 = vpow2.f32 %v2791_v30  ;;  %v3314_v30 = vld [vmem:[%s7873_s12 + $0x8] sm:$0xff] }
 0x9bf   : > { %v3068_v31 = vpop.xlane.xlu1 %3067 }
 0x9c0   : > { %v3072_v32 = vsub.f32 %v3058_v21, %v3068_v31  ;;  %v6150_v31 = vpack.c.bf16 %v3314_v30, %v3313_v29 }
 0x9c2   : > { %v3074_v36 = vmul.f32 1.442695, %v3072_v32  ;;  %6151 = vmatprep.subr.bf16.mxu1 %v6150_v31  ;;  %v3315_v32 = vld [vmem:[%s7873_s12 + $0x10] sm:$0xff] }
 0x9c3   : > { %v3071_v33 = vpop.xlane.xlu1 %3070  ;;  %6153 = vmatpush3.bf16.msra.mxu1 %v6150_v31 }
 0x9c4   : > { %v3073_v34 = vsub.f32 %v3063_v22, %v3071_v33  ;;  %v3316_v33 = vld [vmem:[%s7873_s12 + $0x18] sm:$0xff] }
 0x9c5   : > { %v6585_v35 = vpop.eup %6584 }
 0x9c6   : > { %v3076_v37 = vmul.f32 1.442695, %v3073_v34  ;;  %v2798_v38 = vsel %vm2220_vm3, %v6585_v35, 0.0  ;;  %v6587_v39 = vpop.eup %6586  ;;  %v6154_v34 = vpack.c.bf16 %v3316_v33, %v3315_v32 }
 0x9c7   : > { %2799 = vadd.xlane.f32.xlu0 %v2798_v38  ;;  %v2795_v40 = vsel %vm2220_vm3, %v6587_v39, 0.0 }
 0x9c8   : > { %6588 = vpow2.f32 %v3076_v37  ;;  %6155 = vmatprep.subr.bf16.mxu1 %v6154_v34 }
 0x9c9   : > { %6590 = vpow2.f32 %v3074_v36  ;;  %6157 = vmatpush3.bf16.msra.mxu1 %v6154_v34 }
 0x9cb   : > { %2796 = vadd.xlane.f32.xlu0 %v2795_v40 }
 0x9d2   : > { %v6589_v41 = vpop.eup %6588 }
 0x9d3   : > { %v3081_v42 = vsel %vm2220_vm3, %v6589_v41, 0.0  ;;  %v6591_v43 = vpop.eup %6590 }
 0x9d4   : > { %3082 = vadd.xlane.f32.xlu1 %v3081_v42  ;;  %v3078_v44 = vsel %vm2220_vm3, %v6591_v43, 0.0  ;;  %v5414_v42 = vld [vmem:[%s7871_s10] ss:$0 sm:$0xff] }
 0x9d8   : > { %3079 = vadd.xlane.f32.xlu1 %v3078_v44  ;;  %v5415_v44 = vld [vmem:[%s7872_s11] ss:$0 sm:$0xff] }
 0x9e1   : > { %6371 = vrot.lane.b32.xlu0 %v7331_v49, %s7893_s25 }
 0x9e9   : > { %6376 = vrot.lane.b32.xlu1 %v7331_v49, %s7892_s20  ;;  %s7925_s20 = smov 48  }
 0xa54   : > { %v2800_v45 = vpop.xlane.xlu0 %2799 }
 0xa55   : > { %6592 = vrcp.f32 %v2800_v45 }
 0xa58   : > { %v2797_v47 = vpop.xlane.xlu0 %2796 }
 0xa59   : > { %6594 = vrcp.f32 %v2797_v47 }
 0xa5c   : > { %v6372_v50 = vpop.permute.xlu0 %6371 }
 0xa5d   : > { %v6374_v46 = vunpack.i.h.bf16 %v6372_v50  ;;  %v6373_v51 = vunpack.i.l.bf16 %v6372_v50 }
 0xa5f   : > { %v6136_v52 = vpack.c.bf16 %v6374_v46, %v6373_v51  ;;  %v6593_v58 = vpop.eup %6592 }
 0xa60   : > { %v2804_v49 = vmul.f32 %v6593_v58, %v6585_v35 }
 0xa61   : > { %v3083_v56 = vpop.xlane.xlu1 %3082  ;;  %6137 = vmatprep.subr.bf16.mxu0 %v6136_v52 }
 0xa62   : > { %6139 = vmatpush3.bf16.msra.mxu0 %v6136_v52 }
 0xa63   : > { %v6595_v59 = vpop.eup %6594  ;;  %5899 = vmatprep.subr.mxu0 %v2128_v54 }
 0xa64   : > { %v2802_v60 = vmul.f32 %v6595_v59, %v6587_v39  ;;  %v3461_v59 = vld [vmem:[%s7875_s14 + $0x10] sm:$0xff] }
 0xa65   : > { %v3080_v61 = vpop.xlane.xlu1 %3079 }
 0xa66   : > { %5896 = vmatprep.mubr.msk.f32.mxu0 %vm2220_vm3, %v2802_v60  ;;  %6596 = vrcp.f32 %v3080_v61  ;;  %v3462_v60 = vld [vmem:[%s7875_s14 + $0x18] sm:$0xff]  ;;  %v3463_v61 = vld [vmem:[%s7875_s14 + $0x20] sm:$0xff] }
 0xa67   : > { %5897 = vmatmul.mubr.msk.f32.vlgmr.msra.gmra.mrb[18].mxu0 %vm2220_vm3, %v2804_v49  ;;  %6598 = vrcp.f32 %v3083_v56  ;;  %v3460_v56 = vld [vmem:[%s7875_s14 + $0x8] sm:$0xff]  ;;  %v6162_v49 = vpack.c.bf16 %v3462_v60, %v3461_v59 }
 0xa68   : > { %5900 = vmatpush3.msra.mxu0 %v2128_v54  ;;  %v3459_v54 = vld [vmem:[%s7875_s14] sm:$0xff] }
 0xa69   : > { %v6377_v62 = vpop.permute.xlu1 %6376  ;;  %v6158_v58 = vpack.c.bf16 %v3460_v56, %v3459_v54 }
 0xa6a   : > { %v6379_v63 = vunpack.i.h.bf16 %v6377_v62  ;;  %v6378_v0 = vunpack.i.l.bf16 %v6377_v62  ;;  %v3464_v62 = vld [vmem:[%s7875_s14 + $0x28] sm:$0xff] }
 0xa6c   : > { %v6146_v1 = vpack.c.bf16 %v6379_v63, %v6378_v0  ;;  %v6166_v63 = vpack.c.bf16 %v3464_v62, %v3463_v61  ;;  %v3465_v0 = vld [vmem:[%s7875_s14 + $0x30] sm:$0xff] }
 0xa6e   : > { %6147 = vmatprep.subr.bf16.mxu0 %v6146_v1 }
 0xa70   : > { %v6597_v2 = vpop.eup %6596 }
 0xa71   : > { %v6599_v4 = vpop.eup %6598  ;;  %v3085_v5 = vmul.f32 %v6597_v2, %v6591_v43 }
 0xa72   : > { %v3087_v7 = vmul.f32 %v6599_v4, %v6589_v41 }
 0xb3a   : > { %v5898_v3 = vpop.f32.mrb[18].mxu0 }
 0xb3b   : > { %v2883_v48 = vpop.f32.mrb[19].mxu0 }
 0xb3c   : > { %5901 = vmatprep.mubr.msk.f32.mxu0 %vm2136_vm1, %v2883_v48  ;;  %v3468_v48 = vld [vmem:[%s7875_s14 + $0x48] sm:$0xff] }
 0xb3d   : > { %5902 = vmatmul.mubr.msk.f32.vlgmr.msra.gmra.mrb[16].mxu0 %vm2136_vm1, %v5898_v3  ;;  %v3467_v3 = vld [vmem:[%s7875_s14 + $0x40] sm:$0xff] }
 0xb3e   : > { %6149 = vmatpush3.bf16.msra.mxu0 %v6146_v1  ;;  %5915 = vmatprep.mubr.msk.f32.mxu0 %vm2220_vm3, %v3085_v5  ;;  %v3466_v1 = vld [vmem:[%s7875_s14 + $0x38] sm:$0xff]  ;;  %v6174_v4 = vpack.c.bf16 %v3468_v48, %v3467_v3  ;;  %v3469_v5 = vld [vmem:[%s7875_s14 + $0x50] sm:$0xff] }
 0xb3f   : > { %5918 = vmatprep.subr.mxu0 %v2129_v6  ;;  %v6170_v2 = vpack.c.bf16 %v3466_v1, %v3465_v0 }
 0xb41   : > { %5916 = vmatmul.mubr.msk.f32.vlgmr.msra.gmra.mrb[20].mxu0 %vm2220_vm3, %v3087_v7 }
 0xb42   : > { %5919 = vmatpush3.msra.mxu0 %v2129_v6  ;;  %v3470_v6 = vld [vmem:[%s7875_s14 + $0x58] sm:$0xff] }
 0xb43   : > { %6159 = vmatprep.subr.bf16.mxu0 %v6158_v58  ;;  %v6178_v7 = vpack.c.bf16 %v3470_v6, %v3469_v5 }
 0xc14   : > { %v5917_v10 = vpop.f32.mrb[20].mxu0 }
 0xc15   : > { %v3166_v11 = vpop.f32.mrb[21].mxu0 }
 0xc16   : > { %5920 = vmatprep.mubr.msk.f32.mxu0 %vm2136_vm1, %v3166_v11  ;;  %v3472_v11 = vld [vmem:[%s7875_s14 + $0x68] sm:$0xff] }
 0xc17   : > { %5921 = vmatmul.mubr.msk.f32.vlgmr.msra.gmra.mrb[16].mxu0 %vm2136_vm1, %v5917_v10  ;;  %v3471_v10 = vld [vmem:[%s7875_s14 + $0x60] sm:$0xff] }
 0xc18   : > { %6161 = vmatpush3.bf16.msra.mxu0 %v6158_v58 }
 0xc19   : > { %6163 = vmatprep.subr.bf16.mxu0 %v6162_v49 }
 0xc1c   : > { %6165 = vmatpush3.bf16.msra.mxu0 %v6162_v49 }
 0xc1d   : > { %6167 = vmatprep.subr.bf16.mxu0 %v6166_v63 }
 0xc20   : > { %6169 = vmatpush3.bf16.msra.mxu0 %v6166_v63 }
 0xc21   : > { %6171 = vmatprep.subr.bf16.mxu0 %v6170_v2 }
 0xc24   : > { %6173 = vmatpush3.bf16.msra.mxu0 %v6170_v2 }
 0xc25   : > { %6175 = vmatprep.subr.bf16.mxu0 %v6174_v4 }
 0xc28   : > { %6177 = vmatpush3.bf16.msra.mxu0 %v6174_v4 }
 0xc29   : > { %6179 = vmatprep.subr.bf16.mxu0 %v6178_v7 }
 0xc2c   : > { %6181 = vmatpush3.bf16.msra.mxu0 %v6178_v7 }
 0xcea   : > { %v5922_v12 = vpop.f32.mrb[16].mxu0 }
 0xceb   : > { %v3259_v14 = vadd.f32 %v5922_v12, %v7290_v9  ;;  %v3247_v15 = vpop.f32.mrb[17].mxu0  ;;  %v6182_v12 = vpack.c.bf16 %v3472_v11, %v3471_v10 }
 0xcec   : > { %v3258_v16 = vadd.f32 %v3247_v15, %v7285_v8 }
 0xced   : > { %v7464_v17 = vadd.f32 %v5413_v13, %v3259_v14  ;;  %6183 = vmatprep.subr.bf16.mxu0 %v6182_v12  ;;  %v3474_v14 = vld [vmem:[%s7875_s14 + $0x78] sm:$0xff] }
 0xcee   : > { %v7466_v18 = vadd.f32 %v5413_v13, %v3258_v16  ;;  %6185 = vmatpush3.bf16.msra.mxu0 %v6182_v12  ;;  %v3473_v13 = vld [vmem:[%s7875_s14 + $0x70] sm:$0xff]  ;;  %v5416_v16 = vld [vmem:[%s7874_s13] ss:$0 sm:$0xff] }
 0xcef   : > { %v3274_v19 = vsel %vm1990_vm0, %v7464_v17, 0.0  ;;  %v6186_v15 = vpack.c.bf16 %v3474_v14, %v3473_v13  ;;  %v5423_v13 = vld [vmem:[%s7876_s15] ss:$0 sm:$0xff] }
 0xcf0   : > { %3275 = vadd.xlane.f32.xlu1 %v3274_v19  ;;  %v3271_v20 = vsel %vm1990_vm0, %v7466_v18, 0.0 }
 0xcf1   : > { %3272 = vadd.xlane.f32.xlu0 %v3271_v20  ;;  %6187 = vmatprep.subr.bf16.mxu0 %v6186_v15 }
 0xcf2   : > { %6189 = vmatpush3.bf16.msra.mxu0 %v6186_v15 }
 0xd7d   : > { %v3276_v21 = vpop.xlane.xlu1 %3275 }
 0xd7e   : > { %v3278_v22 = vmul.f32 0.03125, %v3276_v21  ;;  %v3273_v23 = vpop.xlane.xlu0 %3272 }
 0xd7f   : > { %v3277_v24 = vmul.f32 0.03125, %v3273_v23 }
 0xd80   : > { %v3280_v9 = vsub.f32 %v7464_v17, %v3278_v22 }
 0xd81   : > { %v3279_v8 = vsub.f32 %v7466_v18, %v3277_v24 }
 0xd82   : > { %v3282_v28 = vmul.f32 %v3280_v9, %v3280_v9 }
 0xd83   : > { %v3281_v25 = vmul.f32 %v3279_v8, %v3279_v8 }
 0xd84   : > { %v3286_v27 = vsel %vm1990_vm0, %v3282_v28, 0.0 }
 0xd85   : > { %v3283_v26 = vsel %vm1990_vm0, %v3281_v25, 0.0 }
 0xd86   : > { %3284 = vadd.xlane.f32.xlu0 %v3283_v26 }
 0xd8a   : > { %3287 = vadd.xlane.f32.xlu0 %v3286_v27 }
 0xe13   : > { %v3285_v35 = vpop.xlane.xlu0 %3284 }
 0xe14   : > { %v3289_v36 = vmul.f32 0.03125, %v3285_v35 }
 0xe16   : > { %v3291_v37 = vadd.f32 1e-06, %v3289_v36 }
 0xe17   : > { %v3288_v38 = vpop.xlane.xlu0 %3287 }
 0xe18   : > { %6600 = vrsqrt.f32 %v3291_v37  ;;  %v3290_v39 = vmul.f32 0.03125, %v3288_v38 }
 0xe1a   : > { %v3292_v40 = vadd.f32 1e-06, %v3290_v39 }
 0xe1c   : > { %6602 = vrsqrt.f32 %v3292_v40 }
 0xe22   : > { %v6601_v41 = vpop.eup %6600 }
 0xe23   : > { %v3295_v43 = vmul.f32 %v6601_v41, %v3279_v8 }
 0xe25   : > { %v3303_v45 = vmul.f32 %v5414_v42, %v3295_v43 }
 0xe26   : > { %v6603_v47 = vpop.eup %6602 }
 0xe27   : > { %v3296_v50 = vmul.f32 %v6603_v47, %v3280_v9  ;;  %v3311_v46 = vadd.f32 %v5415_v44, %v3303_v45 }
 0xe29   : > { %v3304_v51 = vmul.f32 %v5414_v42, %v3296_v50  ;;  %5931 = vmatprep.mubr.msk.f32.mxu1 %vm1990_vm0, %v3311_v46 }
 0xe2b   : > { %v3312_v52 = vadd.f32 %v5415_v44, %v3304_v51 }
 0xe2d   : > { %5932 = vmatmul.mubr.msk.f32.vlgmr.msra.gmra.mrb[30].mxu1 %vm1990_vm0, %v3312_v52 }
 0xf00   : > { %v5933_v19 = vpop.f32.mrb[30].mxu1 }
 0xf01   : > { %v3402_v20 = vadd.f32 %v5933_v19, %v5416_v16  ;;  %v3396_v21 = vpop.f32.mrb[31].mxu1 }
 0xf02   : > { %v3397_v22 = vadd.f32 %v5416_v16, %v3396_v21 }
 0xf03   : > { %v3408_v23 = vmul.f32 0.70710677, %v3402_v20  ;;  %v3406_v7 = vmul.f32 0.5, %v3402_v20 }
 0xf04   : > { %v3407_v24 = vmul.f32 0.70710677, %v3397_v22  ;;  %v3405_v5 = vmul.f32 0.5, %v3397_v22 }
 0xf05   : > { %v3410_v9 = vand.u32 2147483647, %v3408_v23  ;;  %vm3450_vm4 = vcmp.ge.f32.partialorder %v3408_v23, 0.0 }
 0xf06   : > { %v3409_v8 = vand.u32 2147483647, %v3407_v24  ;;  %vm3449_vm5 = vcmp.ge.f32.partialorder %v3407_v24, 0.0 }
 0xf07   : > { %v3412_v25 = vmul.f32 0.3275911, %v3410_v9  ;;  %v3438_v29 = vsub.f32 0.0, %v3410_v9 }
 0xf08   : > { %v3411_v26 = vmul.f32 0.3275911, %v3409_v8  ;;  %v3437_v30 = vsub.f32 0.0, %v3409_v8 }
 0xf09   : > { %v3414_v28 = vadd.f32 1.0, %v3412_v25  ;;  %v3440_v32 = vmul.f32 %v3438_v29, %v3410_v9  ;;  %v5428_v29 = vld [vmem:[%s7865_s4 + $0x20] sm:$0xff] }
 0xf0a   : > { %v3413_v27 = vadd.f32 1.0, %v3411_v26  ;;  %v3439_v35 = vmul.f32 %v3437_v30, %v3409_v8  ;;  %v5429_v30 = vld [vmem:[%s7865_s4 + $0x28] sm:$0xff] }
 0xf0b   : > { %6604 = vrcp.f32 %v3414_v28  ;;  %v3443_v38 = vmul.f32 1.442695, %v3440_v32  ;;  %v5430_v32 = vld [vmem:[%s7865_s4 + $0x30] sm:$0xff] }
 0xf0c   : > { %6606 = vrcp.f32 %v3413_v27  ;;  %v3441_v41 = vmul.f32 1.442695, %v3439_v35 }
 0xf0d   : > { %6608 = vpow2.f32 %v3443_v38 }
 0xf0e   : > { %6610 = vpow2.f32 %v3441_v41 }
 0xf15   : > { %v6605_v31 = vpop.eup %6604 }
 0xf16   : > { %v6607_v33 = vpop.eup %6606  ;;  %v3420_v34 = vmul.f32 1.0614054, %v6605_v31 }
 0xf17   : > { %v3419_v36 = vmul.f32 1.0614054, %v6607_v33  ;;  %v6609_v59 = vpop.eup %6608 }
 0xf18   : > { %v5420_v37 = vadd.f32 -1.4531521, %v3420_v34  ;;  %v6611_v49 = vpop.eup %6610 }
 0xf19   : > { %v5419_v39 = vadd.f32 -1.4531521, %v3419_v36 }
 0xf1a   : > { %v3424_v40 = vmul.f32 %v6605_v31, %v5420_v37 }
 0xf1b   : > { %v3423_v42 = vmul.f32 %v6607_v33, %v5419_v39 }
 0xf1c   : > { %v3426_v43 = vadd.f32 1.4214138, %v3424_v40 }
 0xf1d   : > { %v3425_v44 = vadd.f32 1.4214138, %v3423_v42  ;;  %v5426_v42 = vld [vmem:[%s7869_s8 + $0x1] ss:$0 sm:$0xff] }
 0xf1e   : > { %v3428_v45 = vmul.f32 %v6605_v31, %v3426_v43 }
 0xf1f   : > { %v3427_v47 = vmul.f32 %v6607_v33, %v3425_v44  ;;  %v5427_v44 = vld [vmem:[%s7870_s9 + $0x1] ss:$0 sm:$0xff] }
 0xf20   : > { %v5422_v50 = vadd.f32 -0.28449672, %v3428_v45 }
 0xf21   : > { %v5421_v46 = vadd.f32 -0.28449672, %v3427_v47 }
 0xf22   : > { %v3432_v51 = vmul.f32 %v6605_v31, %v5422_v50 }
 0xf23   : > { %v3431_v52 = vmul.f32 %v6607_v33, %v5421_v46 }
 0xf24   : > { %v3434_v54 = vadd.f32 0.2548296, %v3432_v51 }
 0xf25   : > { %v3433_v56 = vadd.f32 0.2548296, %v3431_v52 }
 0xf26   : > { %v3436_v58 = vmul.f32 %v6605_v31, %v3434_v54  ;;  %v6190_v31 = vpack.c.bf16 %v5429_v30, %v5428_v29  ;;  %v5433_v54 = vld [vmem:[%s7866_s5 + $0x1] ss:$0 sm:$0xff] }
 0xf27   : > { %v3435_v60 = vmul.f32 %v6607_v33, %v3433_v56  ;;  %v5431_v33 = vld [vmem:[%s7865_s4 + $0x38] sm:$0xff] }
 0xf28   : > { %v3446_v61 = vmul.f32 %v6609_v59, %v3436_v58  ;;  %6191 = vmatprep.subr.bf16.mxu1 %v6190_v31  ;;  %v6194_v34 = vpack.c.bf16 %v5431_v33, %v5430_v32 }
 0xf29   : > { %v3445_v62 = vmul.f32 %v6611_v49, %v3435_v60  ;;  %6193 = vmatpush3.bf16.msra.mxu1 %v6190_v31 }
 0xf2a   : > { %v3448_v63 = vsub.f32 1.0, %v3446_v61  ;;  %6195 = vmatprep.subr.bf16.mxu1 %v6194_v34 }
 0xf2b   : > { %v3447_v0 = vsub.f32 1.0, %v3445_v62 }
 0xf2c   : > { %v3452_v1 = vsub.f32 0.0, %v3448_v63 }
 0xf2d   : > { %v3451_v2 = vsub.f32 0.0, %v3447_v0  ;;  %6197 = vmatpush3.bf16.msra.mxu1 %v6194_v34 }
 0xf2e   : > { %v3454_v3 = vsel %vm3450_vm4, %v3448_v63, %v3452_v1 }
 0xf2f   : > { %v3456_v48 = vadd.f32 1.0, %v3454_v3  ;;  %v3453_v4 = vsel %vm3449_vm5, %v3447_v0, %v3451_v2 }
 0xf30   : > { %v3455_v6 = vadd.f32 1.0, %v3453_v4 }
 0xf31   : > { %v3458_v11 = vmul.f32 %v3456_v48, %v3406_v7 }
 0xf32   : > { %v3457_v10 = vmul.f32 %v3455_v6, %v3405_v5 }
 0xf34   : > { %5966 = vmatprep.mubr.f32.mxu0 %v3457_v10 }
 0xf35   : > { %5967 = vmatmul.mubr.f32.vlgmr.msra.gmra.mrb[22].mxu0 %v3458_v11 }
0x1008   : > { %v5968_v12 = vpop.f32.mrb[22].mxu0 }
0x1009   : > { %v3541_v14 = vpop.f32.mrb[23].mxu0  ;;  %v3551_v15 = vadd.f32 %v5968_v12, %v7464_v17 }
0x100a   : > { %v3550_v16 = vadd.f32 %v3541_v14, %v7466_v18 }
0x100b   : > { %v7554_v21 = vadd.f32 %v5423_v13, %v3551_v15 }
0x100c   : > { %v7552_v19 = vadd.f32 %v5423_v13, %v3550_v16 }
0x100d   : > { %v3568_v22 = vsel %vm1990_vm0, %v7554_v21, 0.0 }
0x100e   : > { %v3565_v20 = vsel %vm1990_vm0, %v7552_v19, 0.0 }
0x100f   : > { %3566 = vadd.xlane.f32.xlu0 %v3565_v20 }
0x1013   : > { %3569 = vadd.xlane.f32.xlu0 %v3568_v22 }
0x109c   : > { %v3567_v23 = vpop.xlane.xlu0 %3566 }
0x109d   : > { %v3571_v24 = vmul.f32 0.03125, %v3567_v23 }
0x109f   : > { %v3573_v9 = vsub.f32 %v7552_v19, %v3571_v24 }
0x10a0   : > { %v3570_v8 = vpop.xlane.xlu0 %3569 }
0x10a1   : > { %v3572_v17 = vmul.f32 0.03125, %v3570_v8  ;;  %v3575_v25 = vmul.f32 %v3573_v9, %v3573_v9 }
0x10a3   : > { %v3574_v18 = vsub.f32 %v7554_v21, %v3572_v17  ;;  %v3577_v26 = vsel %vm1990_vm0, %v3575_v25, 0.0 }
0x10a4   : > { %3578 = vadd.xlane.f32.xlu0 %v3577_v26 }
0x10a5   : > { %v3576_v28 = vmul.f32 %v3574_v18, %v3574_v18 }
0x10a7   : > { %v3580_v27 = vsel %vm1990_vm0, %v3576_v28, 0.0 }
0x10a8   : > { %3581 = vadd.xlane.f32.xlu1 %v3580_v27 }
0x1131   : > { %v3579_v35 = vpop.xlane.xlu0 %3578 }
0x1132   : > { %v3583_v36 = vmul.f32 0.03125, %v3579_v35  ;;  %v7634_v35 = vld [vmem:[%s7917_s26 + $0x8] sm:$0xff] }
0x1134   : > { %v3585_v37 = vadd.f32 1e-06, %v3583_v36 }
0x1135   : > { %v3582_v38 = vpop.xlane.xlu1 %3581 }
0x1136   : > { %6612 = vrsqrt.f32 %v3585_v37  ;;  %v3584_v39 = vmul.f32 0.03125, %v3582_v38  ;;  %v7640_v38 = vld [vmem:[%s7917_s26] sm:$0xff] }
0x1138   : > { %v3586_v40 = vadd.f32 1e-06, %v3584_v39 }
0x113a   : > { %6614 = vrsqrt.f32 %v3586_v40 }
0x1140   : > { %v6613_v41 = vpop.eup %6612 }
0x1141   : > { %v3589_v43 = vmul.f32 %v6613_v41, %v3573_v9 }
0x1143   : > { %v3597_v45 = vmul.f32 %v5426_v42, %v3589_v43 }
0x1144   : > { %v6615_v47 = vpop.eup %6614 }
0x1145   : > { %v3590_v50 = vmul.f32 %v6615_v47, %v3574_v18  ;;  %v3605_v46 = vadd.f32 %v5427_v44, %v3597_v45 }
0x1147   : > { %v3598_v51 = vmul.f32 %v5426_v42, %v3590_v50  ;;  %5977 = vmatprep.mubr.msk.f32.mxu1 %vm1990_vm0, %v3605_v46 }
0x1149   : > { %v3606_v52 = vadd.f32 %v5427_v44, %v3598_v51 }
0x114b   : > { %5978 = vmatmul.mubr.msk.f32.vlgmr.msra.gmra.mrb[32].mxu1 %vm1990_vm0, %v3606_v52 }
0x121e   : > { %v5979_v56 = vpop.f32.mrb[32].mxu1 }
0x121f   : > { %v7587_v58 = vadd.f32 %v5979_v56, %v5433_v54  ;;  %v3692_v59 = vpop.f32.mrb[33].mxu1 }
0x1220   : > { %v7589_v60 = vadd.f32 %v5433_v54, %v3692_v59 }
0x1222   : > { %5984 = vmatprep.mubr.msk.f32.mxu1 %vm2136_vm1, %v7589_v60  ;;  %v7595_v49 = vpack.i.bf16 %v7587_v58, %v7589_v60 }
0x1224   : > { %6381 = vrot.lane.b32.xlu0 %v7595_v49, %s6728_s21  ;;  %s7919_s21 = smov 64  }
0x1228   : > { %6391 = vrot.lane.b32.xlu0 %v7595_v49, %s6729_s23 }
0x122c   : > { %3904 = vrot.lane.b32.xlu0 %v7589_v60, %s7918_s29 }
0x1230   : > { %3906 = vrot.lane.b32.xlu0 %v7587_v58, %s7918_s29  ;;  %s7924_s29 = smov 80  }
0x1296   : > { %v6382_v61 = vpop.permute.xlu0 %6381 }
0x1297   : > { %v6384_v62 = vunpack.i.h.bf16 %v6382_v61  ;;  %v6383_v63 = vunpack.i.l.bf16 %v6382_v61 }
0x1299   : > { %v6198_v0 = vpack.c.bf16 %v6384_v62, %v6383_v63 }
0x129a   : > { %v6392_v22 = vpop.permute.xlu0 %6391 }
0x129b   : > { %6200 = vmatprep.subr.msk.bf16.mxu1 %vm7343_vm2, %v6198_v0  ;;  %v6394_v24 = vunpack.i.h.bf16 %v6392_v22  ;;  %v6393_v9 = vunpack.i.l.bf16 %v6392_v22 }
0x129c   : > { %6203 = vmatpush3.bf16.xpose.msk.msra.mxu1 %vm7343_vm2, %v6198_v0 }
0x129d   : > { %v6208_v18 = vpack.c.bf16 %v6394_v24, %v6393_v9 }
0x129e   : > { %v3905_v30 = vpop.permute.xlu0 %3904 }
0x12a2   : > { %v3907_v31 = vpop.permute.xlu0 %3906 }
0x12a3   : > { %5985 = vmatmul.mubr.msk.f32.vlgmr.msra.gmra.mrb[34].mxu1 %vm2136_vm1, %v7587_v58 }
0x1376   : > { %v5986_v1 = vpop.f32.mrb[34].mxu1 }
0x1377   : > { %v3786_v2 = vpop.f32.mrb[35].mxu1  ;;  %v3792_v48 = vadd.f32 %v5986_v1, %v7361_v57 }
0x1378   : > { %v3787_v3 = vadd.f32 %v3786_v2, %v7356_v55 }
0x1379   : > { %v3798_v5 = vsel %vm2220_vm3, %v3792_v48, -inf }
0x137a   : > { %v3795_v4 = vsel %vm2220_vm3, %v3787_v3, -inf }
0x137b   : > { %3796 = vmax.xlane.f32.xlu1 %v3795_v4 }
0x137f   : > { %3799 = vmax.xlane.f32.xlu1 %v3798_v5 }
0x1408   : > { %v3797_v6 = vpop.xlane.xlu1 %3796 }
0x1409   : > { %v3801_v7 = vsub.f32 %v3787_v3, %v3797_v6 }
0x140b   : > { %v3803_v12 = vmul.f32 1.442695, %v3801_v7 }
0x140c   : > { %v3800_v10 = vpop.xlane.xlu1 %3799 }
0x140d   : > { %v3802_v11 = vsub.f32 %v3792_v48, %v3800_v10 }
0x140f   : > { %v3805_v13 = vmul.f32 1.442695, %v3802_v11 }
0x1411   : > { %6616 = vpow2.f32 %v3805_v13 }
0x1412   : > { %6618 = vpow2.f32 %v3803_v12 }
0x141b   : > { %v6617_v14 = vpop.eup %6616 }
0x141c   : > { %v3810_v15 = vsel %vm2220_vm3, %v6617_v14, 0.0  ;;  %v6619_v55 = vpop.eup %6618 }
0x141d   : > { %3811 = vadd.xlane.f32.xlu1 %v3810_v15  ;;  %v3807_v57 = vsel %vm2220_vm3, %v6619_v55, 0.0 }
0x1421   : > { %3808 = vadd.xlane.f32.xlu1 %v3807_v57  ;;  %v5436_v57 = vld [vmem:[%s7867_s6 + $0x20] sm:$0xff] }
0x1432   : > { %6386 = vrot.lane.b32.xlu1 %v7595_v49, %s7919_s21  ;;  %s566_s21 = sand.u32 1, %s6718_s28  }
0x1433   : > { %s5159_s23 = scalar_lea.sflag [#allocation3], %s566_s21 }
0x14aa   : > { %v3812_v16 = vpop.xlane.xlu1 %3811 }
0x14ab   : > { %6620 = vrcp.f32 %v3812_v16 }
0x14ae   : > { %v3809_v20 = vpop.xlane.xlu1 %3808 }
0x14af   : > { %6622 = vrcp.f32 %v3809_v20 }
0x14b2   : > { %v6387_v23 = vpop.permute.xlu1 %6386 }
0x14b3   : > { %v6389_v8 = vunpack.i.h.bf16 %v6387_v23  ;;  %v6388_v17 = vunpack.i.l.bf16 %v6387_v23 }
0x14b5   : > { %v6204_v25 = vpack.c.bf16 %v6389_v8, %v6388_v17  ;;  %v6621_v26 = vpop.eup %6620 }
0x14b6   : > { %v3816_v29 = vmul.f32 %v6621_v26, %v6617_v14 }
0x14b7   : > { %6205 = vmatprep.subr.bf16.mxu1 %v6204_v25 }
0x14b8   : > { %6207 = vmatpush3.bf16.msra.mxu1 %v6204_v25 }
0x14b9   : > { %v6623_v28 = vpop.eup %6622  ;;  %6210 = vmatprep.subr.msk.bf16.mxu1 %vm7343_vm2, %v6208_v18 }
0x14ba   : > { %v3814_v27 = vmul.f32 %v6623_v28, %v6619_v55  ;;  %v5437_v55 = vld [vmem:[%s7867_s6 + $0x28] sm:$0xff] }
0x14bb   : > { %6008 = vmatprep.subr.mxu0 %v5437_v55 }
0x14bc   : > { %5991 = vmatprep.mubr.msk.f32.mxu1 %vm2220_vm3, %v3814_v27  ;;  %6009 = vmatpush3.msra.mxu0 %v5437_v55 }
0x14bd   : > { %5992 = vmatmul.mubr.msk.f32.vlgmr.msra.gmra.mrb[36].mxu1 %vm2220_vm3, %v3816_v29  ;;  %6013 = vmatprep.subr.mxu0 %v5436_v57 }
0x14be   : > { %5998 = vmatprep.mubr.msk.f32.mxu1 %vm2136_vm1, %v3905_v30 }
0x14c1   : > { %6213 = vmatpush3.bf16.xpose.msk.msra.mxu1 %vm7343_vm2, %v6208_v18 }
0x14c8   : > { %5999 = vmatmul.mubr.msk.f32.vlgmr.msra.gmra.mrb[38].mxu1 %vm2136_vm1, %v3907_v31 }
0x1590   : > { %v7627_v32 = vpop.f32.mrb[36].mxu1 }
0x1591   : > { %v7629_v33 = vpop.f32.mrb[37].mxu1 }
0x159b   : > { %v6000_v34 = vpop.f32.mrb[38].mxu1 }
0x159c   : > { %v3992_v36 = vadd.f32 %v7634_v35, %v6000_v34  ;;  %v3986_v37 = vpop.f32.mrb[39].mxu1 }
0x159d   : > { %v3987_v39 = vadd.f32 %v7640_v38, %v3986_v37 }
0x159e   : > { %v3998_v40 = vsel %vm2220_vm3, %v3992_v36, -inf }
0x159f   : > { %3999 = vmax.xlane.f32.xlu0 %v3998_v40  ;;  %v3995_v41 = vsel %vm2220_vm3, %v3987_v39, -inf }
0x15a0   : > { %3996 = vmax.xlane.f32.xlu1 %v3995_v41 }
0x15b1   : > { %6396 = vrot.lane.b32.xlu1 %v7595_v49, %s7920_s1  ;;  %s7926_s1 = smov 40  }
0x15b5   : > { %4266 = vrot.lane.b32.xlu1 %v7589_v60, %s7921_s24 }
0x15b9   : > { %4268 = vrot.lane.b32.xlu1 %v7587_v58, %s7921_s24  ;;  %s567_s24 = scalar_lea.vmem [#allocation2], %s566_s21 }
0x15bd   : > { %6406 = vrot.lane.b32.xlu1 %v7595_v49, %s7922_s22  ;;  %s5171_s22 = sshll.u32 %s567_s24, 4  ;;  %s7820_s22 = int_to_ptr.vmem [resolvable:$true] %s5171_s22 }
0x15be   : > { %s6664_s27 = scalar_lea.vmem %s7820_s22, 16 }
0x15bf   : > { %p6665_p11 = scmp.ne.s32.totalorder %s7820_s22, %s6664_s27 }
0x15c1   : > { %4551 = vrot.lane.b32.xlu1 %v7587_v58, %s7923_s30  ;;  %p6666_p12 = pnand %p6665_p11, %p6873_p5 }
0x15c3   : > { %p6667_p13 = pneg %p6666_p12 }
0x162c   : > { %v4000_v42 = vpop.xlane.xlu0 %3999 }
0x162d   : > { %v4002_v43 = vsub.f32 %v3992_v36, %v4000_v42  ;;  %v3997_v44 = vpop.xlane.xlu1 %3996 }
0x162e   : > { %v4001_v45 = vsub.f32 %v3987_v39, %v3997_v44 }
0x162f   : > { %v4005_v47 = vmul.f32 1.442695, %v4002_v43 }
0x1630   : > { %v4003_v50 = vmul.f32 1.442695, %v4001_v45 }
0x1631   : > { %6624 = vpow2.f32 %v4005_v47  ;;  %v6397_v46 = vpop.permute.xlu1 %6396 }
0x1632   : > { %v6399_v51 = vunpack.i.h.bf16 %v6397_v46  ;;  %v6398_v52 = vunpack.i.l.bf16 %v6397_v46  ;;  %6626 = vpow2.f32 %v4003_v50 }
0x1634   : > { %v6214_v54 = vpack.c.bf16 %v6399_v51, %v6398_v52 }
0x1635   : > { %v4267_v62 = vpop.permute.xlu1 %4266 }
0x1636   : > { %6215 = vmatprep.subr.bf16.mxu1 %v6214_v54 }
0x1637   : > { %6217 = vmatpush3.bf16.msra.mxu1 %v6214_v54 }
0x1639   : > { %v4269_v1 = vpop.permute.xlu1 %4268 }
0x163b   : > { %v6625_v56 = vpop.eup %6624 }
0x163c   : > { %v4010_v59 = vsel %vm2220_vm3, %v6625_v56, 0.0  ;;  %v6627_v61 = vpop.eup %6626 }
0x163d   : > { %4011 = vadd.xlane.f32.xlu0 %v4010_v59  ;;  %v4007_v58 = vsel %vm2220_vm3, %v6627_v61, 0.0  ;;  %v6407_v5 = vpop.permute.xlu1 %6406 }
0x163e   : > { %v6409_v10 = vunpack.i.h.bf16 %v6407_v5  ;;  %v6408_v11 = vunpack.i.l.bf16 %v6407_v5 }
0x1640   : > { %v6228_v13 = vpack.c.bf16 %v6409_v10, %v6408_v11 }
0x1641   : > { %4008 = vadd.xlane.f32.xlu0 %v4007_v58  ;;  %v4552_v15 = vpop.permute.xlu1 %4551  ;;  %v5438_v58 = vld [vmem:[%s7867_s6 + $0x30] sm:$0xff] }
0x1657   : > { %6401 = vrot.lane.b32.xlu0 %v7595_v49, %s7924_s29 }
0x165b   : > { %4549 = vrot.lane.b32.xlu0 %v7589_v60, %s7923_s30 }
0x16ca   : > { %v4012_v63 = vpop.xlane.xlu0 %4011 }
0x16cb   : > { %6628 = vrcp.f32 %v4012_v63 }
0x16ce   : > { %v4009_v0 = vpop.xlane.xlu0 %4008 }
0x16cf   : > { %6630 = vrcp.f32 %v4009_v0 }
0x16d2   : > { %v6402_v2 = vpop.permute.xlu0 %6401 }
0x16d3   : > { %v6404_v3 = vunpack.i.h.bf16 %v6402_v2  ;;  %v6403_v48 = vunpack.i.l.bf16 %v6402_v2 }
0x16d5   : > { %v6218_v4 = vpack.c.bf16 %v6404_v3, %v6403_v48  ;;  %v6629_v6 = vpop.eup %6628 }
0x16d6   : > { %v4016_v60 = vmul.f32 %v6629_v6, %v6625_v56  ;;  %v4550_v14 = vpop.permute.xlu0 %4549 }
0x16d7   : > { %6220 = vmatprep.subr.msk.bf16.mxu1 %vm7343_vm2, %v6218_v4 }
0x16d9   : > { %v6631_v7 = vpop.eup %6630 }
0x16da   : > { %v4014_v12 = vmul.f32 %v6631_v7, %v6627_v61 }
0x16dc   : > { %6005 = vmatprep.mubr.msk.f32.mxu1 %vm2220_vm3, %v4014_v12 }
0x16dd   : > { %6006 = vmatmul.mubr.msk.f32.vlgmr.msra.gmra.mrb[40].mxu1 %vm2220_vm3, %v4016_v60  ;;  %v5439_v60 = vld [vmem:[%s7867_s6 + $0x38] sm:$0xff] }
0x16de   : > { %6223 = vmatpush3.bf16.xpose.msk.msra.mxu1 %vm7343_vm2, %v6218_v4  ;;  %6022 = vmatprep.mubr.msk.f32.mxu1 %vm2136_vm1, %v4267_v62 }
0x16df   : > { %6230 = vmatprep.subr.msk.bf16.mxu1 %vm7343_vm2, %v6228_v13 }
0x16e5   : > { %6023 = vmatmul.mubr.msk.f32.vlgmr.msra.gmra.mrb[42].mxu1 %vm2136_vm1, %v4269_v1 }
0x16e6   : > { %6233 = vmatpush3.bf16.xpose.msk.msra.mxu1 %vm7343_vm2, %v6228_v13  ;;  %6041 = vmatprep.mubr.msk.f32.mxu1 %vm2136_vm1, %v4550_v14 }
0x16ed   : > { %6042 = vmatmul.mubr.msk.f32.vlgmr.msra.gmra.mrb[44].mxu1 %vm2136_vm1, %v4552_v15 }
0x17b0   : > { %v6007_v16 = vpop.f32.mrb[40].mxu1 }
0x17b1   : > { %v4095_v20 = vpop.f32.mrb[41].mxu1 }
0x17b2   : > { %6010 = vmatprep.mubr.msk.f32.mxu0 %vm2136_vm1, %v4095_v20 }
0x17b3   : > { %6011 = vmatmul.mubr.msk.f32.vlgmr.msra.gmra.mrb[24].mxu0 %vm2136_vm1, %v6007_v16 }
0x17b4   : > { %6015 = vmatprep.mubr.msk.f32.mxu0 %vm2136_vm1, %v7629_v33  ;;  %6014 = vmatpush3.msra.mxu0 %v5436_v57  ;;  %v5473_v57 = vld [vmem:[%s7868_s7 + $0x1] ss:$0 sm:$0xff] }
0x17b8   : > { %v6024_v53 = vpop.f32.mrb[42].mxu1 }
0x17b9   : > { %v4354_v22 = vadd.f32 %v7634_v35, %v6024_v53  ;;  %v4348_v23 = vpop.f32.mrb[43].mxu1 }
0x17ba   : > { %v4349_v24 = vadd.f32 %v7640_v38, %v4348_v23 }
0x17bb   : > { %v4360_v9 = vsel %vm2220_vm3, %v4354_v22, -inf  ;;  %6016 = vmatmul.mubr.msk.f32.vlgmr.msra.gmra.mrb[24].mxu0 %vm2136_vm1, %v7627_v32 }
0x17bc   : > { %4361 = vmax.xlane.f32.xlu1 %v4360_v9  ;;  %v4357_v8 = vsel %vm2220_vm3, %v4349_v24, -inf }
0x17bd   : > { %4358 = vmax.xlane.f32.xlu0 %v4357_v8 }
0x17c0   : > { %v6043_v17 = vpop.f32.mrb[44].mxu1 }
0x17c1   : > { %v4631_v25 = vpop.f32.mrb[45].mxu1  ;;  %v4637_v26 = vadd.f32 %v7634_v35, %v6043_v17 }
0x17c2   : > { %v4632_v18 = vadd.f32 %v7640_v38, %v4631_v25 }
0x17c3   : > { %v4643_v27 = vsel %vm2220_vm3, %v4637_v26, -inf }
0x17c4   : > { %v4640_v28 = vsel %vm2220_vm3, %v4632_v18, -inf }
0x17c5   : > { %4641 = vmax.xlane.f32.xlu1 %v4640_v28 }
0x17c9   : > { %4644 = vmax.xlane.f32.xlu1 %v4643_v27 }
0x1849   : > { %v4362_v29 = vpop.xlane.xlu1 %4361 }
0x184a   : > { %v4364_v30 = vsub.f32 %v4354_v22, %v4362_v29  ;;  %v4359_v31 = vpop.xlane.xlu0 %4358 }
0x184b   : > { %v4363_v32 = vsub.f32 %v4349_v24, %v4359_v31  ;;  %v5479_v31 = vld [vmem:[%s7873_s12 + $0x28] sm:$0xff] }
0x184c   : > { %v4367_v33 = vmul.f32 1.442695, %v4364_v30  ;;  %v5478_v30 = vld [vmem:[%s7873_s12 + $0x20] sm:$0xff] }
0x184d   : > { %v4365_v34 = vmul.f32 1.442695, %v4363_v32  ;;  %v6238_v32 = vpack.c.bf16 %v5479_v31, %v5478_v30 }
0x184e   : > { %6632 = vpow2.f32 %v4367_v33  ;;  %v5480_v33 = vld [vmem:[%s7873_s12 + $0x30] sm:$0xff] }
0x184f   : > { %6634 = vpow2.f32 %v4365_v34  ;;  %6239 = vmatprep.subr.bf16.mxu1 %v6238_v32  ;;  %v5481_v34 = vld [vmem:[%s7873_s12 + $0x38] sm:$0xff] }
0x1850   : > { %6241 = vmatpush3.bf16.msra.mxu1 %v6238_v32 }
0x1852   : > { %v4642_v36 = vpop.xlane.xlu1 %4641 }
0x1853   : > { %v4646_v37 = vsub.f32 %v4632_v18, %v4642_v36  ;;  %v6242_v36 = vpack.c.bf16 %v5481_v34, %v5480_v33 }
0x1855   : > { %v4648_v35 = vmul.f32 1.442695, %v4646_v37  ;;  %6243 = vmatprep.subr.bf16.mxu1 %v6242_v36 }
0x1856   : > { %v4645_v39 = vpop.xlane.xlu1 %4644  ;;  %6245 = vmatpush3.bf16.msra.mxu1 %v6242_v36 }
0x1857   : > { %v4647_v38 = vsub.f32 %v4637_v26, %v4645_v39 }
0x1858   : > { %v6633_v40 = vpop.eup %6632 }
0x1859   : > { %v4650_v41 = vmul.f32 1.442695, %v4647_v38  ;;  %v4372_v42 = vsel %vm2220_vm3, %v6633_v40, 0.0  ;;  %v6635_v43 = vpop.eup %6634 }
0x185a   : > { %4373 = vadd.xlane.f32.xlu0 %v4372_v42  ;;  %v4369_v44 = vsel %vm2220_vm3, %v6635_v43, 0.0 }
0x185b   : > { %6636 = vpow2.f32 %v4650_v41 }
0x185c   : > { %6638 = vpow2.f32 %v4648_v35 }
0x185e   : > { %4370 = vadd.xlane.f32.xlu0 %v4369_v44 }
0x1865   : > { %v6637_v45 = vpop.eup %6636 }
0x1866   : > { %v4655_v47 = vsel %vm2220_vm3, %v6637_v45, 0.0  ;;  %v6639_v50 = vpop.eup %6638 }
0x1867   : > { %4656 = vadd.xlane.f32.xlu1 %v4655_v47  ;;  %v4652_v46 = vsel %vm2220_vm3, %v6639_v50, 0.0 }
0x186b   : > { %4653 = vadd.xlane.f32.xlu1 %v4652_v46 }
0x1874   : > { %6411 = vrot.lane.b32.xlu0 %v7595_v49, %s7925_s20 }
0x187c   : > { %6416 = vrot.lane.b32.xlu1 %v7595_v49, %s7926_s1  ;;  %s5508_s1 = sshll.u32 %s6856_s0, 4  ;;  %s6739_s0 = smov [#allocation2]  }
0x187d   : > { %s7818_s3 = scalar_lea.hbm %s7879_s18, %s5508_s1  ;;  %s6668_s25 = sshll.u32 %s6739_s0, 4  ;;  %s6669_s25 = int_to_ptr.vmem [resolvable:$false] %s6668_s25 }
0x187e   : > { %s6670_s20 = scalar_lea.vmem %s6669_s25, 32  ;;  %p6671_p0 = scmp.lt.s32.totalorder %s7820_s22, %s6669_s25 }
0x187f   : > { %p6672_p1 = scmp.lt.s32.totalorder %s6670_s20, %s6664_s27 }
0x1881   : > { %p6673_p2 = por %p6672_p1, %p6671_p0 }
0x1883   : > { %p6674_p3 = pnand %p6673_p2, %p6667_p13 }
0x18e7   : > { %v4374_v51 = vpop.xlane.xlu0 %4373 }
0x18e8   : > { %6640 = vrcp.f32 %v4374_v51 }
0x18eb   : > { %v4371_v52 = vpop.xlane.xlu0 %4370 }
0x18ec   : > { %6642 = vrcp.f32 %v4371_v52 }
0x18ef   : > { %v6412_v54 = vpop.permute.xlu0 %6411 }
0x18f0   : > { %v6414_v56 = vunpack.i.h.bf16 %v6412_v54  ;;  %v6413_v59 = vunpack.i.l.bf16 %v6412_v54 }
0x18f2   : > { %v6224_v61 = vpack.c.bf16 %v6414_v56, %v6413_v59  ;;  %v6641_v63 = vpop.eup %6640  ;;  %v5490_v56 = vld [vmem:[%s7875_s14 + $0x80] sm:$0xff]  ;;  %v5491_v59 = vld [vmem:[%s7875_s14 + $0x88] sm:$0xff] }
0x18f3   : > { %v4378_v49 = vmul.f32 %v6641_v63, %v6633_v40 }
0x18f4   : > { %v4657_v62 = vpop.xlane.xlu1 %4656  ;;  %6225 = vmatprep.subr.bf16.mxu0 %v6224_v61 }
0x18f5   : > { %6227 = vmatpush3.bf16.msra.mxu0 %v6224_v61  ;;  %v6246_v61 = vpack.c.bf16 %v5491_v59, %v5490_v56 }
0x18f6   : > { %v6643_v0 = vpop.eup %6642  ;;  %6032 = vmatprep.subr.mxu0 %v5438_v58 }
0x18f7   : > { %v4376_v1 = vmul.f32 %v6643_v0, %v6635_v43  ;;  %v5476_v43 = vld [vmem:[%s7871_s10 + $0x1] ss:$0 sm:$0xff] }
0x18f8   : > { %v4654_v2 = vpop.xlane.xlu1 %4653  ;;  %v5494_v0 = vld [vmem:[%s7875_s14 + $0xa0] sm:$0xff] }
0x18f9   : > { %6029 = vmatprep.mubr.msk.f32.mxu0 %vm2220_vm3, %v4376_v1  ;;  %6644 = vrcp.f32 %v4654_v2  ;;  %v5495_v1 = vld [vmem:[%s7875_s14 + $0xa8] sm:$0xff]  ;;  %v5496_v2 = vld [vmem:[%s7875_s14 + $0xb0] sm:$0xff] }
0x18fa   : > { %6030 = vmatmul.mubr.msk.f32.vlgmr.msra.gmra.mrb[26].mxu0 %vm2220_vm3, %v4378_v49  ;;  %6646 = vrcp.f32 %v4657_v62  ;;  %v5493_v62 = vld [vmem:[%s7875_s14 + $0x98] sm:$0xff]  ;;  %v6254_v49 = vpack.c.bf16 %v5495_v1, %v5494_v0 }
0x18fb   : > { %6033 = vmatpush3.msra.mxu0 %v5438_v58  ;;  %v5492_v58 = vld [vmem:[%s7875_s14 + $0x90] sm:$0xff] }
0x18fc   : > { %v6417_v3 = vpop.permute.xlu1 %6416  ;;  %v6250_v63 = vpack.c.bf16 %v5493_v62, %v5492_v58 }
0x18fd   : > { %v6419_v48 = vunpack.i.h.bf16 %v6417_v3  ;;  %v6418_v4 = vunpack.i.l.bf16 %v6417_v3  ;;  %v5497_v3 = vld [vmem:[%s7875_s14 + $0xb8] sm:$0xff] }
0x18ff   : > { %v6234_v5 = vpack.c.bf16 %v6419_v48, %v6418_v4  ;;  %v6258_v48 = vpack.c.bf16 %v5497_v3, %v5496_v2  ;;  %v5498_v4 = vld [vmem:[%s7875_s14 + $0xc0] sm:$0xff] }
0x1901   : > { %6235 = vmatprep.subr.bf16.mxu0 %v6234_v5 }
0x1903   : > { %v6645_v6 = vpop.eup %6644 }
0x1904   : > { %v6647_v11 = vpop.eup %6646  ;;  %v4659_v12 = vmul.f32 %v6645_v6, %v6639_v50 }
0x1905   : > { %v4661_v13 = vmul.f32 %v6647_v11, %v6637_v45  ;;  %v5477_v45 = vld [vmem:[%s7872_s11 + $0x1] ss:$0 sm:$0xff] }
0x19cd   : > { %v6031_v7 = vpop.f32.mrb[26].mxu0 }
0x19ce   : > { %v4457_v10 = vpop.f32.mrb[27].mxu0 }
0x19cf   : > { %6034 = vmatprep.mubr.msk.f32.mxu0 %vm2136_vm1, %v4457_v10  ;;  %v5501_v10 = vld [vmem:[%s7875_s14 + $0xd8] sm:$0xff] }
0x19d0   : > { %6035 = vmatmul.mubr.msk.f32.vlgmr.msra.gmra.mrb[24].mxu0 %vm2136_vm1, %v6031_v7  ;;  %v5500_v7 = vld [vmem:[%s7875_s14 + $0xd0] sm:$0xff] }
0x19d1   : > { %6237 = vmatpush3.bf16.msra.mxu0 %v6234_v5  ;;  %6048 = vmatprep.mubr.msk.f32.mxu0 %vm2220_vm3, %v4659_v12  ;;  %v5499_v5 = vld [vmem:[%s7875_s14 + $0xc8] sm:$0xff]  ;;  %v6266_v11 = vpack.c.bf16 %v5501_v10, %v5500_v7  ;;  %v5502_v12 = vld [vmem:[%s7875_s14 + $0xe0] sm:$0xff] }
0x19d2   : > { %6051 = vmatprep.subr.mxu0 %v5439_v60  ;;  %v6262_v6 = vpack.c.bf16 %v5499_v5, %v5498_v4 }
0x19d4   : > { %6049 = vmatmul.mubr.msk.f32.vlgmr.msra.gmra.mrb[28].mxu0 %vm2220_vm3, %v4661_v13 }
0x19d5   : > { %6052 = vmatpush3.msra.mxu0 %v5439_v60  ;;  %v5503_v60 = vld [vmem:[%s7875_s14 + $0xe8] sm:$0xff] }
0x19d6   : > { %6247 = vmatprep.subr.bf16.mxu0 %v6246_v61  ;;  %v6270_v13 = vpack.c.bf16 %v5503_v60, %v5502_v12 }
0x1aa7   : > { %v6050_v14 = vpop.f32.mrb[28].mxu0 }
0x1aa8   : > { %v4740_v15 = vpop.f32.mrb[29].mxu0 }
0x1aa9   : > { %6053 = vmatprep.mubr.msk.f32.mxu0 %vm2136_vm1, %v4740_v15  ;;  %v5505_v15 = vld [vmem:[%s7875_s14 + $0xf8] sm:$0xff] }
0x1aaa   : > { %6054 = vmatmul.mubr.msk.f32.vlgmr.msra.gmra.mrb[24].mxu0 %vm2136_vm1, %v6050_v14  ;;  %v5504_v14 = vld [vmem:[%s7875_s14 + $0xf0] sm:$0xff] }
0x1aab   : > { %6249 = vmatpush3.bf16.msra.mxu0 %v6246_v61 }
0x1aac   : > { %6251 = vmatprep.subr.bf16.mxu0 %v6250_v63 }
0x1aaf   : > { %6253 = vmatpush3.bf16.msra.mxu0 %v6250_v63 }
0x1ab0   : > { %6255 = vmatprep.subr.bf16.mxu0 %v6254_v49 }
0x1ab3   : > { %6257 = vmatpush3.bf16.msra.mxu0 %v6254_v49 }
0x1ab4   : > { %6259 = vmatprep.subr.bf16.mxu0 %v6258_v48 }
0x1ab7   : > { %6261 = vmatpush3.bf16.msra.mxu0 %v6258_v48 }
0x1ab8   : > { %6263 = vmatprep.subr.bf16.mxu0 %v6262_v6 }
0x1abb   : > { %6265 = vmatpush3.bf16.msra.mxu0 %v6262_v6 }
0x1abc   : > { %6267 = vmatprep.subr.bf16.mxu0 %v6266_v11 }
0x1abf   : > { %6269 = vmatpush3.bf16.msra.mxu0 %v6266_v11  ;;  %v5507_v11 = vld [vmem:[%s7876_s15 + $0x1] ss:$0 sm:$0xff] }
0x1ac0   : > { %6271 = vmatprep.subr.bf16.mxu0 %v6270_v13 }
0x1ac3   : > { %6273 = vmatpush3.bf16.msra.mxu0 %v6270_v13 }
0x1b7d   : > { %v6055_v55 = vpop.f32.mrb[24].mxu0 }
0x1b7e   : > { %v4833_v16 = vadd.f32 %v6055_v55, %v7554_v21  ;;  %v4821_v20 = vpop.f32.mrb[25].mxu0  ;;  %v6274_v55 = vpack.c.bf16 %v5505_v15, %v5504_v14 }
0x1b7f   : > { %v4832_v53 = vadd.f32 %v4821_v20, %v7552_v19 }
0x1b80   : > { %v7722_v22 = vadd.f32 %v5473_v57, %v4833_v16  ;;  %6275 = vmatprep.subr.bf16.mxu0 %v6274_v55 }
0x1b81   : > { %v4842_v23 = vadd.f32 %v5473_v57, %v4832_v53  ;;  %6277 = vmatpush3.bf16.msra.mxu0 %v6274_v55  ;;  %v5483_v57 = vld [vmem:[%s7874_s13 + $0x1] ss:$0 sm:$0xff] }
0x1b82   : > { %v4851_v24 = vsel %vm1990_vm0, %v7722_v22, 0.0 }
0x1b83   : > { %4852 = vadd.xlane.f32.xlu1 %v4851_v24  ;;  %v4848_v9 = vsel %vm1990_vm0, %v4842_v23, 0.0 }
0x1b84   : > { %4849 = vadd.xlane.f32.xlu0 %v4848_v9 }
0x1c10   : > { %v4853_v8 = vpop.xlane.xlu1 %4852 }
0x1c11   : > { %v4855_v17 = vmul.f32 0.03125, %v4853_v8  ;;  %v4850_v25 = vpop.xlane.xlu0 %4849 }
0x1c12   : > { %v4854_v18 = vmul.f32 0.03125, %v4850_v25 }
0x1c13   : > { %v4857_v26 = vsub.f32 %v7722_v22, %v4855_v17 }
0x1c14   : > { %v4856_v21 = vsub.f32 %v4842_v23, %v4854_v18 }
0x1c15   : > { %v4859_v27 = vmul.f32 %v4857_v26, %v4857_v26 }
0x1c16   : > { %v4858_v28 = vmul.f32 %v4856_v21, %v4856_v21 }
0x1c17   : > { %v4863_v29 = vsel %vm1990_vm0, %v4859_v27, 0.0 }
0x1c18   : > { %v4860_v19 = vsel %vm1990_vm0, %v4858_v28, 0.0 }
0x1c19   : > { %4861 = vadd.xlane.f32.xlu0 %v4860_v19 }
0x1c1d   : > { %4864 = vadd.xlane.f32.xlu0 %v4863_v29 }
0x1ca6   : > { %v4862_v37 = vpop.xlane.xlu0 %4861 }
0x1ca7   : > { %v4866_v39 = vmul.f32 0.03125, %v4862_v37 }
0x1ca9   : > { %v4868_v38 = vadd.f32 1e-06, %v4866_v39 }
0x1caa   : > { %v4865_v40 = vpop.xlane.xlu0 %4864 }
0x1cab   : > { %6648 = vrsqrt.f32 %v4868_v38  ;;  %v4867_v35 = vmul.f32 0.03125, %v4865_v40 }
0x1cad   : > { %v4869_v41 = vadd.f32 1e-06, %v4867_v35 }
0x1caf   : > { %6650 = vrsqrt.f32 %v4869_v41 }
0x1cb5   : > { %v6649_v42 = vpop.eup %6648 }
0x1cb6   : > { %v4872_v44 = vmul.f32 %v6649_v42, %v4856_v21 }
0x1cb8   : > { %v4880_v47 = vmul.f32 %v5476_v43, %v4872_v44 }
0x1cb9   : > { %v6651_v50 = vpop.eup %6650 }
0x1cba   : > { %v4873_v46 = vmul.f32 %v6651_v50, %v4857_v26  ;;  %v4888_v51 = vadd.f32 %v5477_v45, %v4880_v47 }
0x1cbc   : > { %v4881_v52 = vmul.f32 %v5476_v43, %v4873_v46  ;;  %6064 = vmatprep.mubr.msk.f32.mxu1 %vm1990_vm0, %v4888_v51 }
0x1cbe   : > { %v4889_v54 = vadd.f32 %v5477_v45, %v4881_v52 }
0x1cc0   : > { %6065 = vmatmul.mubr.msk.f32.vlgmr.msra.gmra.mrb[46].mxu1 %vm1990_vm0, %v4889_v54 }
0x1d93   : > { %v6066_v16 = vpop.f32.mrb[46].mxu1 }
0x1d94   : > { %v4981_v20 = vadd.f32 %v6066_v16, %v5483_v57  ;;  %v4975_v53 = vpop.f32.mrb[47].mxu1 }
0x1d95   : > { %v4976_v23 = vadd.f32 %v5483_v57, %v4975_v53 }
0x1d96   : > { %v4987_v24 = vmul.f32 0.70710677, %v4981_v20  ;;  %v4985_v5 = vmul.f32 0.5, %v4981_v20 }
0x1d97   : > { %v4986_v9 = vmul.f32 0.70710677, %v4976_v23  ;;  %v4984_v48 = vmul.f32 0.5, %v4976_v23 }
0x1d98   : > { %v4989_v8 = vand.u32 2147483647, %v4987_v24  ;;  %vm5029_vm6 = vcmp.ge.f32.partialorder %v4987_v24, 0.0 }
0x1d99   : > { %v4988_v17 = vand.u32 2147483647, %v4986_v9  ;;  %vm5028_vm7 = vcmp.ge.f32.partialorder %v4986_v9, 0.0  ;;  %v5139_v9 = vld [vmem:[%s7877_s16] sm:$0x1] }
0x1d9a   : > { %v4991_v25 = vmul.f32 0.3275911, %v4989_v8  ;;  %v5017_v28 = vsub.f32 0.0, %v4989_v8 }
0x1d9b   : > { %v4990_v18 = vmul.f32 0.3275911, %v4988_v17  ;;  %v5016_v19 = vsub.f32 0.0, %v4988_v17 }
0x1d9c   : > { %v4993_v26 = vadd.f32 1.0, %v4991_v25  ;;  %v5019_v29 = vmul.f32 %v5017_v28, %v4989_v8 }
0x1d9d   : > { %v4992_v21 = vadd.f32 1.0, %v4990_v18  ;;  %v5018_v32 = vmul.f32 %v5016_v19, %v4988_v17  ;;  %v5140_v17 = vld [vmem:[%s7878_s17] sm:$0x1] }
0x1d9e   : > { %6652 = vrcp.f32 %v4993_v26  ;;  %v5022_v36 = vmul.f32 1.442695, %v5019_v29 }
0x1d9f   : > { %6654 = vrcp.f32 %v4992_v21  ;;  %v5020_v38 = vmul.f32 1.442695, %v5018_v32 }
0x1da0   : > { %6656 = vpow2.f32 %v5022_v36 }
0x1da1   : > { %6658 = vpow2.f32 %v5020_v38 }
0x1da8   : > { %v6653_v27 = vpop.eup %6652 }
0x1da9   : > { %v6655_v30 = vpop.eup %6654  ;;  %v4999_v31 = vmul.f32 1.0614054, %v6653_v27 }
0x1daa   : > { %v4998_v33 = vmul.f32 1.0614054, %v6655_v30  ;;  %v6657_v54 = vpop.eup %6656 }
0x1dab   : > { %v5487_v34 = vadd.f32 -1.4531521, %v4999_v31  ;;  %v6659_v59 = vpop.eup %6658 }
0x1dac   : > { %v5486_v37 = vadd.f32 -1.4531521, %v4998_v33 }
0x1dad   : > { %v5003_v39 = vmul.f32 %v6653_v27, %v5487_v34 }
0x1dae   : > { %v5002_v40 = vmul.f32 %v6655_v30, %v5486_v37 }
0x1daf   : > { %v5005_v35 = vadd.f32 1.4214138, %v5003_v39 }
0x1db0   : > { %v5004_v41 = vadd.f32 1.4214138, %v5002_v40 }
0x1db1   : > { %v5007_v42 = vmul.f32 %v6653_v27, %v5005_v35 }
0x1db2   : > { %v5006_v43 = vmul.f32 %v6655_v30, %v5004_v41 }
0x1db3   : > { %v5489_v44 = vadd.f32 -0.28449672, %v5007_v42 }
0x1db4   : > { %v5488_v45 = vadd.f32 -0.28449672, %v5006_v43 }
0x1db5   : > { %v5011_v47 = vmul.f32 %v6653_v27, %v5489_v44 }
0x1db6   : > { %v5010_v50 = vmul.f32 %v6655_v30, %v5488_v45 }
0x1db7   : > { %v5013_v46 = vadd.f32 0.2548296, %v5011_v47 }
0x1db8   : > { %v5012_v51 = vadd.f32 0.2548296, %v5010_v50 }
0x1db9   : > { %v5015_v52 = vmul.f32 %v6653_v27, %v5013_v46 }
0x1dba   : > { %v5014_v56 = vmul.f32 %v6655_v30, %v5012_v51 }
0x1dbb   : > { %v5025_v61 = vmul.f32 %v6657_v54, %v5015_v52 }
0x1dbc   : > { %v5024_v58 = vmul.f32 %v6659_v59, %v5014_v56 }
0x1dbd   : > { %v5027_v62 = vsub.f32 1.0, %v5025_v61 }
0x1dbe   : > { %v5026_v63 = vsub.f32 1.0, %v5024_v58 }
0x1dbf   : > { %v5031_v0 = vsub.f32 0.0, %v5027_v62 }
0x1dc0   : > { %v5030_v1 = vsub.f32 0.0, %v5026_v63 }
0x1dc1   : > { %v5033_v49 = vsel %vm5029_vm6, %v5027_v62, %v5031_v0 }
0x1dc2   : > { %v5035_v2 = vadd.f32 1.0, %v5033_v49  ;;  %v5032_v3 = vsel %vm5028_vm7, %v5026_v63, %v5030_v1 }
0x1dc3   : > { %v5034_v4 = vadd.f32 1.0, %v5032_v3 }
0x1dc4   : > { %v5037_v7 = vmul.f32 %v5035_v2, %v4985_v5 }
0x1dc5   : > { %v5036_v6 = vmul.f32 %v5034_v4, %v4984_v48 }
0x1dc7   : > { %6099 = vmatprep.mubr.f32.mxu0 %v5036_v6 }
0x1dc8   : > { %6100 = vmatmul.mubr.f32.vlgmr.msra.gmra.mrb[30].mxu0 %v5037_v7 }
0x1e9b   : > { %v6101_v10 = vpop.f32.mrb[30].mxu0 }
0x1e9c   : > { %v5129_v12 = vadd.f32 %v6101_v10, %v7722_v22  ;;  %v5121_v60 = vpop.f32.mrb[31].mxu0 }
0x1e9e   : > { %v5138_v13 = vadd.f32 %v5507_v11, %v5129_v12 }
0x1ea0   : > { %v5142_v14 = vsel %vm5141_vm8, %v5138_v13, 0.0 }
0x1ea1   : > { %5143 = vadd.xlane.f32.xlu0 %v5142_v14 }
0x1f2e   : > { %v5144_v15 = vpop.xlane.xlu0 %5143 }
0x1f2f   : > { %v5145_v55 = vmul.f32 0.03125, %v5144_v15 }
0x1f31   : > { %v5146_v57 = vsub.f32 %v5138_v13, %v5145_v55 }
0x1f33   : > { %v5147_v16 = vmul.f32 %v5146_v57, %v5146_v57 }
0x1f35   : > { %v5148_v20 = vsel %vm5141_vm8, %v5147_v16, 0.0 }
0x1f36   : > { %5149 = vadd.xlane.f32.xlu0 %v5148_v20 }
0x1fc3   : > { %v5150_v53 = vpop.xlane.xlu0 %5149 }
0x1fc4   : > { %v5151_v23 = vmul.f32 0.03125, %v5150_v53 }
0x1fc6   : > { %v5152_v24 = vadd.f32 1e-06, %v5151_v23 }
0x1fc8   : > { %6660 = vrsqrt.f32 %v5152_v24 }
0x1fd2   : > { %v6661_v22 = vpop.eup %6660 }
0x1fd3   : > { %v5154_v8 = vmul.f32 %v6661_v22, %v5146_v57 }
0x1fd5   : > { %v5155_v25 = vmul.f32 %v5154_v8, %v5139_v9 }
0x1fd7   : > { %v5156_v18 = vadd.f32 %v5155_v25, %v5140_v17 }
0x1fd9   : > { %5157 = vst.msk [vmem:[%s567_s24] sm:$0x1] %vm5141_vm8, %v5156_v18 }
0x1fda   : > { %6677 = shalt.err (!%p6674_p3)
}
0x1fdb   : > { %s6678_s21 = scalar_lea.hbm %s7818_s3, 16  ;;  %s6682_s30 = scalar_lea.hbm %s7879_s18, 32 }
0x1fdc   : > { %p6679_p4 = scmp.ne.s32.totalorder %s7818_s3, %s6678_s21  ;;  %p6683_p9 = scmp.lt.u32.totalorder %s7818_s3, %s7879_s18 }
0x1fdd   : > { %p6684_p10 = scmp.lt.u32.totalorder %s6682_s30, %s6678_s21  ;;  %p6686_p12 = scmp.lt.u32.totalorder %s6678_s21, %s7818_s3 }
0x1fde   : > { %p6680_p7 = pnand %p6679_p4, %p6873_p5 }
0x1fdf   : > { %p6685_p11 = por %p6684_p10, %p6683_p9 }
0x1fe0   : > { %p6681_p8 = pneg %p6680_p7 }
0x1fe1   : > { %p6687_p13 = por %p6686_p12, %p6685_p11 }
0x1fe3   : > { %p6688_p0 = pnand %p6687_p13, %p6681_p8 }
0x1fe5   : > { %6691 = shalt.err (!%p6688_p0)
}
0x1fe6   : > { %6290 = dma.vmem_to_hbm [thread:$0]  (%p6873_p5), %s7820_s22, 16, %s7818_s3, %s5159_s23  }
0x1fe7 PF: > { %s7927_s27 = sld [smem:[#allocation7_spill]]  ;;  %s7928_s25 = sld [smem:[#allocation5_spill]] }
0x1fed   : > { %p6296_p1 = scmp.ge.s32.totalorder %s7927_s27, 2  ;;  %s5183_s1 = sand.u32 1, %s7928_s25  }
0x1fee   : > { %s5184_s24 = scalar_lea.sflag [#allocation3], %s5183_s1 }
0x1fef   : > { %p6293_p2 = pnand %p6296_p1, %p6877_p6 }
0x1ff1   : > { %6709 = dma.done.wait (!%p6293_p2), %s5184_s24, 16  }
0x1ff2   : > { %6711 = vsyncadd (!%p6293_p2), %s5184_s24, 4294967280  ;;  %s7930_s30 = sld [smem:[#allocation8_spill]]  ;;  %s7931_s21 = sld [smem:[#allocation6_spill]] }
0x1ff3   : > { %s7932_s29 = sld [smem:[#allocation9_spill]]  ;;  %s7933_s27 = smov %s6718_s28 }
0x1ff8   : > { %p28_p3 = scmp.ge.s32.totalorder %s7930_s30, 4   ;;  %s7934_s28 = smov %s7931_s21 }
0x1ffa   :  { %30 = sbr.rel (!%p28_p3) target bundleno = 8 (0x8), region = 139 }
0x2001   :  { %5188 = vsyncpa [#allocation3], 1 }
0x2002   :  { %5190 = vsyncpa [#allocation3 + $0x1], 1 }

</bundles_post_ra>
